<compile_context>
chip_gen: v7x
topology: tpu7x:2x2x1
jax: 0.10.0
libtpu: 0.0.40
codegen_flags: <defaults>
</compile_context>

<pallas_src>
import functools

import jax
import jax.numpy as jnp
from jax import lax
from jax.experimental import pallas as pl
from jax.experimental.pallas import tpu as pltpu

EPS = 1e-5                      # PyTorch nn.LayerNorm default eps
ACT_DTYPE = jnp.bfloat16        # inter-kernel activation dtype (set f32 for bit-closeness)
_ACT_ITEMSIZE = jax.dtypes.canonicalize_dtype(ACT_DTYPE).itemsize


# ------------------------------ VMEM budgeting --------------------------------
def _vmem_limit_bytes():
    """Scoped-VMEM request: physical capacity minus headroom, capped at 64 MiB."""
    try:
        cap = pltpu.get_tpu_info().vmem_capacity_bytes
    except Exception:           # no TPU info available -> assume 128 MiB class chip
        cap = 128 * 1024 * 1024
    return int(min(cap - 16 * 1024 * 1024, 64 * 1024 * 1024))


_VMEM_LIMIT = _vmem_limit_bytes()


def _cparams(sem=("parallel",)):
    return pltpu.CompilerParams(
        dimension_semantics=sem,
        vmem_limit_bytes=_VMEM_LIMIT,
    )


def _pick_group(bn, s, d, *, inner=0, hm=0, weight_bytes=0,
                tile_target=4 << 20, min_grid=2):
    """Largest divisor g of `bn` whose per-step VMEM estimate fits the budget.

    Budgets the double-buffered bf16 I/O tiles, the f32 working activations
    (LN/residual, QKV, one head's score matrix, concat context) and the fused
    MLP hidden tensor -- not just the (g, s, d) x tile.  Also keeps the grid
    length >= min_grid so both v7x TensorCores receive work.
    """
    budget = _VMEM_LIMIT - weight_bytes - (4 << 20)      # headroom for compiler scratch
    min_grid = min(min_grid, bn)

    def step_bytes(g):
        io = 4 * g * s * d * _ACT_ITEMSIZE               # double-buffered in + out tiles
        act = g * s * (3 * d + 4 * inner) * 4            # x/LN/resid + qkv + ctx (f32)
        scores = 2 * g * s * s * 4                       # one head's scores + probs (f32)
        mlp = 2 * g * s * hm * 4                         # MLP hidden + GELU temps (f32)
        return io + act + scores + mlp

    best = 1
    for g in range(1, bn + 1):
        if bn % g:
            continue
        if bn // g < min_grid:
            continue
        if g * s * d * 4 > tile_target:
            continue
        if step_bytes(g) > budget:
            continue
        best = g
    return best


def _wspec(shape):
    """BlockSpec for a weight/bias whose block index never changes: single buffer."""
    return pl.BlockSpec(shape, lambda i: (0,) * len(shape),
                        pipeline_mode=pl.Buffered(1))


# ----------------------------- in-kernel helpers -----------------------------
def _layernorm(x, g, b):
    mu = jnp.mean(x, axis=-1, keepdims=True)
    var = jnp.mean((x - mu) ** 2, axis=-1, keepdims=True)
    return (x - mu) * lax.rsqrt(var + EPS) * g + b


def _attention(x, gamma, beta, wqkv, wo, bo, *, heads, dim_head):
    """Multi-head self-attention + residual on a (G, S, D) group (f32 in/out).

    The 1/sqrt(dim_head) attention scale is folded into the W_q columns of `wqkv`.
    """
    G, S, D = x.shape
    inner = heads * dim_head

    xn = _layernorm(x, gamma, beta)
    xb = xn.reshape(G * S, D).astype(jnp.bfloat16)

    # Fused Q/K/V projection: one full-width bf16 MXU matmul, f32 accumulation.
    qkv = jnp.dot(xb, wqkv, preferred_element_type=jnp.float32).reshape(G, S, 3 * inner)
    q = qkv[..., :inner]
    k = qkv[..., inner:2 * inner]
    v = qkv[..., 2 * inner:]

    # Per-head scores/context (contraction width is dim_head by construction).
    # TODO(synk): once Mosaic supports multi-batch-dim dot_general these `heads`
    # einsums could be one (G*heads)-batched einsum; kept as an unrolled loop of
    # single-leading-batch-dim einsums (the flash-attention pattern) for
    # lowering robustness.
    ctx = []
    for h in range(heads):
        lo, hi = h * dim_head, (h + 1) * dim_head
        s = jnp.einsum('gid,gjd->gij', q[..., lo:hi], k[..., lo:hi],
                       preferred_element_type=jnp.float32)          # (G, S, S)
        s = s - jnp.max(s, axis=-1, keepdims=True)
        e = jnp.exp(s)
        p = e * pl.reciprocal(jnp.sum(e, axis=-1, keepdims=True), approx=True)
        ctx.append(jnp.einsum('gij,gjd->gid', p, v[..., lo:hi],
                              preferred_element_type=jnp.float32))   # (G, S, dh)

    # Concat heads ('b h n d -> b n (h d)') and apply W_o as ONE full-width matmul.
    ctx = jnp.concatenate(ctx, axis=-1).reshape(G * S, inner).astype(jnp.bfloat16)
    out = jnp.dot(ctx, wo, preferred_element_type=jnp.float32).reshape(G, S, D)
    return out + bo + x


def _mlp(y, gamma, beta, w1, b1, w2, b2):
    """LayerNorm -> Linear -> GELU -> Linear + residual on a (G, S, D) group (f32)."""
    G, S, D = y.shape
    yn = _layernorm(y, gamma, beta).reshape(G * S, D).astype(jnp.bfloat16)
    h = jnp.dot(yn, w1, preferred_element_type=jnp.float32) + b1
    # TODO(synk): PyTorch nn.GELU() defaults to exact erf GELU; tanh approximation
    # is used to stay within guaranteed Mosaic transcendental support.
    h = 0.5 * h * (1.0 + jnp.tanh(0.7978845608028654 * (h + 0.044715 * h * h * h)))
    z = jnp.dot(h.astype(jnp.bfloat16), w2, preferred_element_type=jnp.float32) + b2
    return z.reshape(G, S, D) + y


# ----------------------------- tubelet embedding -----------------------------
def _embed_kernel(p_ref, w_ref, b_ref, pos_ref, o_ref):
    p = p_ref[...]                                               # (G, S, P) bf16
    G, S, P = p.shape
    D = w_ref.shape[1]
    x = jnp.dot(p.reshape(G * S, P), w_ref[...], preferred_element_type=jnp.float32)
    # positional embedding broadcast over the G sequences inside the kernel
    o_ref[...] = (x.reshape(G, S, D) + b_ref[...] + pos_ref[...]).astype(o_ref.dtype)


def tubelet_embed(patches, w, b, pos, grp):
    BN, S, P = patches.shape
    D = w.shape[1]
    return pl.pallas_call(
        _embed_kernel,
        out_shape=jax.ShapeDtypeStruct((BN, S, D), ACT_DTYPE),
        grid=(BN // grp,),
        in_specs=[
            pl.BlockSpec((grp, S, P), lambda i: (i, 0, 0)),
            _wspec((P, D)),
            _wspec((1, D)),
            _wspec((S, D)),
        ],
        out_specs=pl.BlockSpec((grp, S, D), lambda i: (i, 0, 0)),
        compiler_params=_cparams(),
    )(patches, w, b, pos)


# ------------------------------ spatial attention -----------------------------
def _spatial_attn_kernel(x_ref, g_ref, b_ref, wqkv_ref, wo_ref, bo_ref, o_ref,
                         *, heads, dim_head):
    y = _attention(x_ref[...].astype(jnp.float32), g_ref[...], b_ref[...],
                   wqkv_ref[...], wo_ref[...], bo_ref[...],
                   heads=heads, dim_head=dim_head)
    o_ref[...] = y.astype(o_ref.dtype)


def spatial_attn(x, p, heads, dim_head, grp):
    BN, S, D = x.shape
    I3 = p["wqkv"].shape[1]
    I = p["wo"].shape[0]
    kern = functools.partial(_spatial_attn_kernel, heads=heads, dim_head=dim_head)
    return pl.pallas_call(
        kern,
        out_shape=jax.ShapeDtypeStruct((BN, S, D), ACT_DTYPE),
        grid=(BN // grp,),
        in_specs=[
            pl.BlockSpec((grp, S, D), lambda i: (i, 0, 0)),
            _wspec((1, D)), _wspec((1, D)),                      # LN gamma / beta
            _wspec((D, I3)), _wspec((I, D)), _wspec((1, D)),     # wqkv / wo / bo
        ],
        out_specs=pl.BlockSpec((grp, S, D), lambda i: (i, 0, 0)),
        compiler_params=_cparams(),
    )(x, p["g"], p["b"], p["wqkv"], p["wo"], p["bo"])


# -------------------- temporal attention + fused feed-forward -----------------
def _temporal_attn_ff_kernel(x_ref, ag_ref, ab_ref, wqkv_ref, wo_ref, bo_ref,
                             fg_ref, fb_ref, w1_ref, b1_ref, w2_ref, b2_ref,
                             o_ref, *, heads, dim_head):
    y = _attention(x_ref[...].astype(jnp.float32), ag_ref[...], ab_ref[...],
                   wqkv_ref[...], wo_ref[...], bo_ref[...],
                   heads=heads, dim_head=dim_head)
    z = _mlp(y, fg_ref[...], fb_ref[...],
             w1_ref[...], b1_ref[...], w2_ref[...], b2_ref[...])
    o_ref[...] = z.astype(o_ref.dtype)


def attn_temporal_ff(x, ap, fp, heads, dim_head, grp):
    BN, S, D = x.shape
    I3 = ap["wqkv"].shape[1]
    I = ap["wo"].shape[0]
    Hm = fp["w1"].shape[1]
    # TODO(synk): for production Hm (>=2048) tile the Hm axis with an extra
    # 'arbitrary' grid dim instead of keeping full (D,Hm)/(Hm,D) weights resident.
    kern = functools.partial(_temporal_attn_ff_kernel, heads=heads, dim_head=dim_head)
    return pl.pallas_call(
        kern,
        out_shape=jax.ShapeDtypeStruct((BN, S, D), ACT_DTYPE),
        grid=(BN // grp,),
        in_specs=[
            pl.BlockSpec((grp, S, D), lambda i: (i, 0, 0)),
            _wspec((1, D)), _wspec((1, D)),                      # attn LN gamma / beta
            _wspec((D, I3)), _wspec((I, D)), _wspec((1, D)),     # wqkv / wo / bo
            _wspec((1, D)), _wspec((1, D)),                      # ff LN gamma / beta
            _wspec((D, Hm)), _wspec((1, Hm)),                    # w1 / b1
            _wspec((Hm, D)), _wspec((1, D)),                     # w2 / b2
        ],
        out_specs=pl.BlockSpec((grp, S, D), lambda i: (i, 0, 0)),
        compiler_params=_cparams(),
    )(x, ap["g"], ap["b"], ap["wqkv"], ap["wo"], ap["bo"],
      fp["g"], fp["b"], fp["w1"], fp["b1"], fp["w2"], fp["b2"])


# ------------------------------ classifier head -------------------------------
def _head_kernel(x_ref, g_ref, beta_ref, w_ref, bc_ref, o_ref):
    x = x_ref[...].astype(jnp.float32)               # (B, N, D)
    m = jnp.mean(x, axis=1)                          # token mean -> (B, D)
    mn = _layernorm(m, g_ref[...], beta_ref[...])
    o_ref[...] = jnp.dot(mn, w_ref[...], preferred_element_type=jnp.float32) + bc_ref[...]


def head_block(x, g, beta, w, bc):
    B, N, D = x.shape
    NC = w.shape[1]
    # TODO(synk): at production B*N*D this should be tiled over B (plus a
    # lane-dense / padded NC output); the whole-array block is fine at test scale.
    return pl.pallas_call(
        _head_kernel,
        out_shape=jax.ShapeDtypeStruct((B, NC), jnp.float32),
        grid=(1,),
        in_specs=[
            pl.BlockSpec((B, N, D), lambda i: (0, 0, 0)),
            _wspec((1, D)), _wspec((1, D)),
            _wspec((D, NC)), _wspec((1, NC)),
        ],
        out_specs=pl.BlockSpec((B, NC), lambda i: (0, 0)),
        compiler_params=_cparams(("arbitrary",)),
    )(x, g, beta, w, bc)


# ------------------------------- full forward ---------------------------------
def vivit_forward(video, params, *, cfg):
    B, C, T, H, W = video.shape
    t, h, w = cfg["t"], cfg["h"], cfg["w"]
    nt, nh, nw = T // t, H // h, W // w
    ns = nh * nw
    D = cfg["dim"]
    heads, dim_head = cfg["heads"], cfg["dim_head"]
    inner = heads * dim_head
    Hm = cfg["dim_mlp"]
    P = t * h * w * C

    # Rearrange 'b c (nt t) (nh h) (nw w) -> (b nt) (nh nw) (t h w c)'
    x = video.reshape(B, C, nt, t, nh, h, nw, w)
    x = x.transpose(0, 2, 4, 6, 3, 5, 7, 1)                      # b nt nh nw t h w c
    patches = x.reshape(B * nt, ns, P).astype(jnp.bfloat16)

    attn_wbytes = (D * 3 * inner + inner * D) * 2                # resident bf16 weights
    ff_wbytes = (D * Hm + Hm * D) * 2

    g_emb = _pick_group(B * nt, ns, max(P, D), weight_bytes=P * D * 2)
    g_sp = _pick_group(B * nt, ns, D, inner=inner, weight_bytes=attn_wbytes)
    g_tp = _pick_group(B * ns, nt, D, inner=inner, hm=Hm,
                       weight_bytes=attn_wbytes + ff_wbytes)

    x = tubelet_embed(patches, params["w_emb"], params["b_emb"], params["pos"], g_emb)
    # (B*nt, ns, D) bf16; dropout(p=0) == identity

    n_layers = len(params["layers"])
    for li, layer in enumerate(params["layers"]):
        # spatial attention over ns tokens, many sequences per grid step
        x = spatial_attn(x, layer["sp"], heads, dim_head, g_sp)   # (B*nt, ns, D)
        # regroup to temporal sequences.
        # TODO(synk): this XLA transpose (now bf16, half the bytes) could be removed
        # with an in-kernel spatial<->temporal view swap once Mosaic supports the
        # required non-minor transpose / multi-batch-dim dot_general.
        x = x.reshape(B, nt, ns, D).transpose(0, 2, 1, 3).reshape(B * ns, nt, D)
        # temporal attention over nt tokens + fused feed-forward (one HBM round trip)
        x = attn_temporal_ff(x, layer["tp"], layer["ff"], heads, dim_head, g_tp)
        if li + 1 < n_layers:
            # back to spatial grouping for the next layer
            x = x.reshape(B, ns, nt, D).transpose(0, 2, 1, 3).reshape(B * nt, ns, D)

    # The head's token mean is permutation-invariant, so the last regroup is skipped.
    x = x.reshape(B, nt * ns, D)
    return head_block(x, params["head_g"], params["head_b"],
                      params["w_head"], params["b_head"])


# --------------------------------- parameters ---------------------------------
def init_params(key, cfg, ns, C):
    D = cfg["dim"]
    heads, dim_head = cfg["heads"], cfg["dim_head"]
    inner = heads * dim_head
    P = cfg["t"] * cfg["h"] * cfg["w"] * C
    Hm = cfg["dim_mlp"]
    NC = cfg["num_classes"]

    keys = jax.random.split(key, 4)

    def nrm(k, shape, scale=0.02, dtype=jnp.bfloat16):
        return (scale * jax.random.normal(k, shape, jnp.float32)).astype(dtype)

    params = dict(
        w_emb=nrm(keys[0], (P, D)),
        b_emb=jnp.zeros((1, D), jnp.float32),
        pos=jax.random.normal(keys[1], (ns, D), jnp.float32),    # torch.randn(1,1,ns,D)
        head_g=jnp.ones((1, D), jnp.float32),
        head_b=jnp.zeros((1, D), jnp.float32),
        w_head=nrm(keys[2], (D, NC), dtype=jnp.float32),
        b_head=jnp.zeros((1, NC), jnp.float32),
        layers=[],
    )

    layer_keys = jax.random.split(keys[3], cfg["depth"])
    for i in range(cfg["depth"]):
        k = jax.random.split(layer_keys[i], 6)

        def attn_p(kqkv, ko):
            wf = 0.02 * jax.random.normal(kqkv, (D, 3 * inner), jnp.float32)
            # fold the 1/sqrt(dim_head) attention scale into the W_q columns
            wf = wf.at[:, :inner].multiply(dim_head ** -0.5)
            return dict(
                g=jnp.ones((1, D), jnp.float32),
                b=jnp.zeros((1, D), jnp.float32),
                wqkv=wf.astype(jnp.bfloat16),
                wo=nrm(ko, (inner, D)),
                bo=jnp.zeros((1, D), jnp.float32),
            )

        params["layers"].append(dict(
            sp=attn_p(k[0], k[1]),
            tp=attn_p(k[2], k[3]),
            ff=dict(
                g=jnp.ones((1, D), jnp.float32),
                b=jnp.zeros((1, D), jnp.float32),
                w1=nrm(k[4], (D, Hm)),
                b1=jnp.zeros((1, Hm), jnp.float32),
                w2=nrm(k[5], (Hm, D)),
                b2=jnp.zeros((1, D), jnp.float32),
            ),
        ))
    return params


# ------------------------------------ main -------------------------------------
if __name__ == "__main__":
    key = jax.random.PRNGKey(0)
    k_in, k_p = jax.random.split(key)

    # small shapes consistent with the module: video (B, C=3, T, H, W)
    B, C, T, H, W = 2, 3, 4, 8, 8
    cfg = dict(t=2, h=4, w=4, dim=32, heads=4, dim_head=8,
               dim_mlp=64, depth=2, num_classes=10)
    nt, nh, nw = T // cfg["t"], H // cfg["h"], W // cfg["w"]

    video = jax.random.normal(k_in, (B, C, T, H, W), jnp.float32)
    params = init_params(k_p, cfg, nh * nw, C)

    fwd = jax.jit(functools.partial(vivit_forward, cfg=cfg))
    out = fwd(video, params)
    out = jax.block_until_ready(out)

    assert out.shape == (B, cfg["num_classes"]), out.shape
    assert jnp.all(jnp.isfinite(out))
    print("KERNEL_OK")
</pallas_src>

<mosaic_0001>
module attributes {stable_mosaic.version = 11 : i64} {
  func.func @_embed_kernel(%arg0: i32, %arg1: memref<2x4x96xbf16, #tpu.memory_space<vmem>>, %arg2: memref<96x32xbf16, #tpu.memory_space<vmem>>, %arg3: memref<1x32xf32, #tpu.memory_space<vmem>>, %arg4: memref<4x32xf32, #tpu.memory_space<vmem>>, %arg5: memref<2x4x32xbf16, #tpu.memory_space<vmem>>) attributes {dimension_semantics = [#tpu.dimension_semantics<parallel>], iteration_bounds = array<i64: 2>, scalar_prefetch = 0 : i64, scratch_operands = 0 : i64, tpu.core_type = #tpu.core_type<tc>, window_params = [{transform_indices = @transform_0, window_bounds = array<i64: 2, 4, 96>}, {pipeline_mode = #tpu.pipeline_mode<synchronous>, transform_indices = @transform_1, window_bounds = array<i64: 96, 32>}, {pipeline_mode = #tpu.pipeline_mode<synchronous>, transform_indices = @transform_2, window_bounds = array<i64: 1, 32>}, {pipeline_mode = #tpu.pipeline_mode<synchronous>, transform_indices = @transform_3, window_bounds = array<i64: 4, 32>}, {transform_indices = @transform_4, window_bounds = array<i64: 2, 4, 32>}]} {
    %c0 = arith.constant 0 : index
    %c0_0 = arith.constant 0 : index
    %c0_1 = arith.constant 0 : index
    %0 = vector.load %arg1[%c0, %c0_0, %c0_1] : memref<2x4x96xbf16, #tpu.memory_space<vmem>>, vector<2x4x96xbf16>
    %1 = vector.shape_cast %0 : vector<2x4x96xbf16> to vector<8x96xbf16>
    %c0_2 = arith.constant 0 : index
    %c0_3 = arith.constant 0 : index
    %2 = vector.load %arg2[%c0_2, %c0_3] : memref<96x32xbf16, #tpu.memory_space<vmem>>, vector<96x32xbf16>
    %cst = arith.constant dense<0.000000e+00> : vector<8x32xf32>
    %3 = tpu.matmul %1, %2, %cst {dimension_numbers = #tpu.dot_dimension_numbers<[1], [0], [0], [1], [0, 0, 1, 1], [], []>} : vector<8x96xbf16>, vector<96x32xbf16>, vector<8x32xf32> -> vector<8x32xf32>
    %4 = vector.shape_cast %3 : vector<8x32xf32> to vector<2x4x32xf32>
    %c0_4 = arith.constant 0 : index
    %c0_5 = arith.constant 0 : index
    %5 = vector.load %arg3[%c0_4, %c0_5] : memref<1x32xf32, #tpu.memory_space<vmem>>, vector<1x32xf32>
    %6 = vector.shape_cast %5 : vector<1x32xf32> to vector<1x1x32xf32>
    %7 = vector.broadcast %6 : vector<1x1x32xf32> to vector<2x4x32xf32>
    %8 = arith.addf %4, %7 : vector<2x4x32xf32>
    %c0_6 = arith.constant 0 : index
    %c0_7 = arith.constant 0 : index
    %9 = vector.load %arg4[%c0_6, %c0_7] : memref<4x32xf32, #tpu.memory_space<vmem>>, vector<4x32xf32>
    %10 = vector.shape_cast %9 : vector<4x32xf32> to vector<1x4x32xf32>
    %11 = vector.broadcast %10 : vector<1x4x32xf32> to vector<2x4x32xf32>
    %12 = arith.addf %8, %11 : vector<2x4x32xf32>
    %13 = arith.truncf %12 : vector<2x4x32xf32> to vector<2x4x32xbf16>
    %c0_8 = arith.constant 0 : index
    %c0_9 = arith.constant 0 : index
    %c0_10 = arith.constant 0 : index
    %14 = vector.load %arg5[%c0_8, %c0_9, %c0_10] : memref<2x4x32xbf16, #tpu.memory_space<vmem>>, vector<2x4x32xbf16>
    tpu.vector_store %arg5[%c0_8, %c0_9, %c0_10], %13 {strides = array<i32>} : memref<2x4x32xbf16, #tpu.memory_space<vmem>>, vector<2x4x32xbf16>,
    return
  }
  func.func @transform_0(%arg0: i32) -> (i32, i32, i32) {
    %c0_i32 = arith.constant 0 : i32
    %c0_i32_0 = arith.constant 0 : i32
    %c0_i32_1 = arith.constant 0 : i32
    return %arg0, %c0_i32, %c0_i32_0 : i32, i32, i32
  }
  func.func @transform_1(%arg0: i32) -> (i32, i32) {
    %c0_i32 = arith.constant 0 : i32
    %c0_i32_0 = arith.constant 0 : i32
    %c0_i32_1 = arith.constant 0 : i32
    return %c0_i32, %c0_i32_0 : i32, i32
  }
  func.func @transform_2(%arg0: i32) -> (i32, i32) {
    %c0_i32 = arith.constant 0 : i32
    %c0_i32_0 = arith.constant 0 : i32
    %c0_i32_1 = arith.constant 0 : i32
    return %c0_i32, %c0_i32_0 : i32, i32
  }
  func.func @transform_3(%arg0: i32) -> (i32, i32) {
    %c0_i32 = arith.constant 0 : i32
    %c0_i32_0 = arith.constant 0 : i32
    %c0_i32_1 = arith.constant 0 : i32
    return %c0_i32, %c0_i32_0 : i32, i32
  }
  func.func @transform_4(%arg0: i32) -> (i32, i32, i32) {
    %c0_i32 = arith.constant 0 : i32
    %c0_i32_0 = arith.constant 0 : i32
    %c0_i32_1 = arith.constant 0 : i32
    return %arg0, %c0_i32, %c0_i32_0 : i32, i32, i32
  }
}

module attributes {stable_mosaic.version = 11 : i64} {
  func.func @_spatial_attn_kernel(%arg0: i32, %arg1: memref<2x4x32xbf16, #tpu.memory_space<vmem>>, %arg2: memref<1x32xf32, #tpu.memory_space<vmem>>, %arg3: memref<1x32xf32, #tpu.memory_space<vmem>>, %arg4: memref<32x96xbf16, #tpu.memory_space<vmem>>, %arg5: memref<32x32xbf16, #tpu.memory_space<vmem>>, %arg6: memref<1x32xf32, #tpu.memory_space<vmem>>, %arg7: memref<2x4x32xbf16, #tpu.memory_space<vmem>>) attributes {dimension_semantics = [#tpu.dimension_semantics<parallel>], iteration_bounds = array<i64: 2>, scalar_prefetch = 0 : i64, scratch_operands = 0 : i64, tpu.core_type = #tpu.core_type<tc>, window_params = [{transform_indices = @transform_0, window_bounds = array<i64: 2, 4, 32>}, {pipeline_mode = #tpu.pipeline_mode<synchronous>, transform_indices = @transform_1, window_bounds = array<i64: 1, 32>}, {pipeline_mode = #tpu.pipeline_mode<synchronous>, transform_indices = @transform_2, window_bounds = array<i64: 1, 32>}, {pipeline_mode = #tpu.pipeline_mode<synchronous>, transform_indices = @transform_3, window_bounds = array<i64: 32, 96>}, {pipeline_mode = #tpu.pipeline_mode<synchronous>, transform_indices = @transform_4, window_bounds = array<i64: 32, 32>}, {pipeline_mode = #tpu.pipeline_mode<synchronous>, transform_indices = @transform_5, window_bounds = array<i64: 1, 32>}, {transform_indices = @transform_6, window_bounds = array<i64: 2, 4, 32>}]} {
    %c0 = arith.constant 0 : index
    %c0_0 = arith.constant 0 : index
    %c0_1 = arith.constant 0 : index
    %0 = vector.load %arg1[%c0, %c0_0, %c0_1] : memref<2x4x32xbf16, #tpu.memory_space<vmem>>, vector<2x4x32xbf16>
    %1 = arith.extf %0 : vector<2x4x32xbf16> to vector<2x4x32xf32>
    %c0_2 = arith.constant 0 : index
    %c0_3 = arith.constant 0 : index
    %2 = vector.load %arg2[%c0_2, %c0_3] : memref<1x32xf32, #tpu.memory_space<vmem>>, vector<1x32xf32>
    %c0_4 = arith.constant 0 : index
    %c0_5 = arith.constant 0 : index
    %3 = vector.load %arg3[%c0_4, %c0_5] : memref<1x32xf32, #tpu.memory_space<vmem>>, vector<1x32xf32>
    %c0_6 = arith.constant 0 : index
    %c0_7 = arith.constant 0 : index
    %4 = vector.load %arg4[%c0_6, %c0_7] : memref<32x96xbf16, #tpu.memory_space<vmem>>, vector<32x96xbf16>
    %c0_8 = arith.constant 0 : index
    %c0_9 = arith.constant 0 : index
    %5 = vector.load %arg5[%c0_8, %c0_9] : memref<32x32xbf16, #tpu.memory_space<vmem>>, vector<32x32xbf16>
    %c0_10 = arith.constant 0 : index
    %c0_11 = arith.constant 0 : index
    %6 = vector.load %arg6[%c0_10, %c0_11] : memref<1x32xf32, #tpu.memory_space<vmem>>, vector<1x32xf32>
    %cst = arith.constant dense<0.000000e+00> : vector<2x4xf32>
    %7 = vector.multi_reduction <add>, %1, %cst [2] : vector<2x4x32xf32> to vector<2x4xf32>
    %8 = vector.shape_cast %7 : vector<2x4xf32> to vector<2x4x1xf32>
    %cst_12 = arith.constant 3.200000e+01 : f32
    %9 = vector.broadcast %cst_12 : f32 to vector<2x4x1xf32>
    %10 = arith.divf %8, %9 : vector<2x4x1xf32>
    %11 = vector.broadcast %10 : vector<2x4x1xf32> to vector<2x4x32xf32>
    %12 = arith.subf %1, %11 : vector<2x4x32xf32>
    %13 = arith.mulf %12, %12 : vector<2x4x32xf32>
    %cst_13 = arith.constant dense<0.000000e+00> : vector<2x4xf32>
    %14 = vector.multi_reduction <add>, %13, %cst_13 [2] : vector<2x4x32xf32> to vector<2x4xf32>
    %15 = vector.shape_cast %14 : vector<2x4xf32> to vector<2x4x1xf32>
    %cst_14 = arith.constant 3.200000e+01 : f32
    %16 = vector.broadcast %cst_14 : f32 to vector<2x4x1xf32>
    %17 = arith.divf %15, %16 : vector<2x4x1xf32>
    %18 = vector.broadcast %10 : vector<2x4x1xf32> to vector<2x4x32xf32>
    %19 = arith.subf %1, %18 : vector<2x4x32xf32>
    %cst_15 = arith.constant 9.99999974E-6 : f32
    %20 = vector.broadcast %cst_15 : f32 to vector<2x4x1xf32>
    %21 = arith.addf %17, %20 : vector<2x4x1xf32>
    %22 = math.rsqrt %21 : vector<2x4x1xf32>
    %23 = vector.broadcast %22 : vector<2x4x1xf32> to vector<2x4x32xf32>
    %24 = arith.mulf %19, %23 : vector<2x4x32xf32>
    %25 = vector.shape_cast %2 : vector<1x32xf32> to vector<1x1x32xf32>
    %26 = vector.broadcast %25 : vector<1x1x32xf32> to vector<2x4x32xf32>
    %27 = arith.mulf %24, %26 : vector<2x4x32xf32>
    %28 = vector.shape_cast %3 : vector<1x32xf32> to vector<1x1x32xf32>
    %29 = vector.broadcast %28 : vector<1x1x32xf32> to vector<2x4x32xf32>
    %30 = arith.addf %27, %29 : vector<2x4x32xf32>
    %31 = vector.shape_cast %30 : vector<2x4x32xf32> to vector<8x32xf32>
    %32 = arith.truncf %31 : vector<8x32xf32> to vector<8x32xbf16>
    %cst_16 = arith.constant dense<0.000000e+00> : vector<8x96xf32>
    %33 = tpu.matmul %32, %4, %cst_16 {dimension_numbers = #tpu.dot_dimension_numbers<[1], [0], [0], [1], [0, 0, 1, 1], [], []>} : vector<8x32xbf16>, vector<32x96xbf16>, vector<8x96xf32> -> vector<8x96xf32>
    %34 = vector.shape_cast %33 : vector<8x96xf32> to vector<2x4x96xf32>
    %35 = vector.extract_strided_slice %34 {offsets = [0, 0, 0], sizes = [2, 4, 32], strides = [1, 1, 1]} : vector<2x4x96xf32> to vector<2x4x32xf32>
    %36 = vector.extract_strided_slice %34 {offsets = [0, 0, 32], sizes = [2, 4, 32], strides = [1, 1, 1]} : vector<2x4x96xf32> to vector<2x4x32xf32>
    %37 = vector.extract_strided_slice %34 {offsets = [0, 0, 64], sizes = [2, 4, 32], strides = [1, 1, 1]} : vector<2x4x96xf32> to vector<2x4x32xf32>
    %38 = vector.extract_strided_slice %35 {offsets = [0, 0, 0], sizes = [2, 4, 8], strides = [1, 1, 1]} : vector<2x4x32xf32> to vector<2x4x8xf32>
    %39 = vector.extract_strided_slice %36 {offsets = [0, 0, 0], sizes = [2, 4, 8], strides = [1, 1, 1]} : vector<2x4x32xf32> to vector<2x4x8xf32>
    "tpu.trace_start"() <{level = 10 : i32, message = "gid,gjd->gij"}> : () -> ()
    %cst_17 = arith.constant dense<0.000000e+00> : vector<2x4x4xf32>
    %40 = tpu.matmul %38, %39, %cst_17 {dimension_numbers = #tpu.dot_dimension_numbers<[2], [2], [1], [1], [0, 0, 0, 1, 1, 1], [0], [0]>} : vector<2x4x8xf32>, vector<2x4x8xf32>, vector<2x4x4xf32> -> vector<2x4x4xf32>
    "tpu.trace_stop"() : () -> ()
    %cst_18 = arith.constant dense<0xFF800000> : vector<2x4xf32>
    %41 = vector.multi_reduction <maximumf>, %40, %cst_18 [2] : vector<2x4x4xf32> to vector<2x4xf32>
    %42 = vector.shape_cast %41 : vector<2x4xf32> to vector<2x4x1xf32>
    %43 = vector.broadcast %42 : vector<2x4x1xf32> to vector<2x4x4xf32>
    %44 = arith.subf %40, %43 : vector<2x4x4xf32>
    %45 = math.exp %44 : vector<2x4x4xf32>
    %cst_19 = arith.constant dense<0.000000e+00> : vector<2x4xf32>
    %46 = vector.multi_reduction <add>, %45, %cst_19 [2] : vector<2x4x4xf32> to vector<2x4xf32>
    %47 = vector.shape_cast %46 : vector<2x4xf32> to vector<2x4x1xf32>
    %48 = tpu.reciprocal %47 {approx = true} : vector<2x4x1xf32> -> vector<2x4x1xf32>
    %49 = vector.broadcast %48 : vector<2x4x1xf32> to vector<2x4x4xf32>
    %50 = arith.mulf %45, %49 : vector<2x4x4xf32>
    %51 = vector.extract_strided_slice %37 {offsets = [0, 0, 0], sizes = [2, 4, 8], strides = [1, 1, 1]} : vector<2x4x32xf32> to vector<2x4x8xf32>
    "tpu.trace_start"() <{level = 10 : i32, message = "gij,gjd->gid"}> : () -> ()
    %cst_20 = arith.constant dense<0.000000e+00> : vector<2x4x8xf32>
    %52 = tpu.matmul %50, %51, %cst_20 {dimension_numbers = #tpu.dot_dimension_numbers<[2], [1], [1], [2], [0, 0, 0, 1, 1, 2], [0], [0]>} : vector<2x4x4xf32>, vector<2x4x8xf32>, vector<2x4x8xf32> -> vector<2x4x8xf32>
    "tpu.trace_stop"() : () -> ()
    %53 = vector.extract_strided_slice %35 {offsets = [0, 0, 8], sizes = [2, 4, 8], strides = [1, 1, 1]} : vector<2x4x32xf32> to vector<2x4x8xf32>
    %54 = vector.extract_strided_slice %36 {offsets = [0, 0, 8], sizes = [2, 4, 8], strides = [1, 1, 1]} : vector<2x4x32xf32> to vector<2x4x8xf32>
    "tpu.trace_start"() <{level = 10 : i32, message = "gid,gjd->gij"}> : () -> ()
    %cst_21 = arith.constant dense<0.000000e+00> : vector<2x4x4xf32>
    %55 = tpu.matmul %53, %54, %cst_21 {dimension_numbers = #tpu.dot_dimension_numbers<[2], [2], [1], [1], [0, 0, 0, 1, 1, 1], [0], [0]>} : vector<2x4x8xf32>, vector<2x4x8xf32>, vector<2x4x4xf32> -> vector<2x4x4xf32>
    "tpu.trace_stop"() : () -> ()
    %cst_22 = arith.constant dense<0xFF800000> : vector<2x4xf32>
    %56 = vector.multi_reduction <maximumf>, %55, %cst_22 [2] : vector<2x4x4xf32> to vector<2x4xf32>
    %57 = vector.shape_cast %56 : vector<2x4xf32> to vector<2x4x1xf32>
    %58 = vector.broadcast %57 : vector<2x4x1xf32> to vector<2x4x4xf32>
    %59 = arith.subf %55, %58 : vector<2x4x4xf32>
    %60 = math.exp %59 : vector<2x4x4xf32>
    %cst_23 = arith.constant dense<0.000000e+00> : vector<2x4xf32>
    %61 = vector.multi_reduction <add>, %60, %cst_23 [2] : vector<2x4x4xf32> to vector<2x4xf32>
    %62 = vector.shape_cast %61 : vector<2x4xf32> to vector<2x4x1xf32>
    %63 = tpu.reciprocal %62 {approx = true} : vector<2x4x1xf32> -> vector<2x4x1xf32>
    %64 = vector.broadcast %63 : vector<2x4x1xf32> to vector<2x4x4xf32>
    %65 = arith.mulf %60, %64 : vector<2x4x4xf32>
    %66 = vector.extract_strided_slice %37 {offsets = [0, 0, 8], sizes = [2, 4, 8], strides = [1, 1, 1]} : vector<2x4x32xf32> to vector<2x4x8xf32>
    "tpu.trace_start"() <{level = 10 : i32, message = "gij,gjd->gid"}> : () -> ()
    %cst_24 = arith.constant dense<0.000000e+00> : vector<2x4x8xf32>
    %67 = tpu.matmul %65, %66, %cst_24 {dimension_numbers = #tpu.dot_dimension_numbers<[2], [1], [1], [2], [0, 0, 0, 1, 1, 2], [0], [0]>} : vector<2x4x4xf32>, vector<2x4x8xf32>, vector<2x4x8xf32> -> vector<2x4x8xf32>
    "tpu.trace_stop"() : () -> ()
    %68 = vector.extract_strided_slice %35 {offsets = [0, 0, 16], sizes = [2, 4, 8], strides = [1, 1, 1]} : vector<2x4x32xf32> to vector<2x4x8xf32>
    %69 = vector.extract_strided_slice %36 {offsets = [0, 0, 16], sizes = [2, 4, 8], strides = [1, 1, 1]} : vector<2x4x32xf32> to vector<2x4x8xf32>
    "tpu.trace_start"() <{level = 10 : i32, message = "gid,gjd->gij"}> : () -> ()
    %cst_25 = arith.constant dense<0.000000e+00> : vector<2x4x4xf32>
    %70 = tpu.matmul %68, %69, %cst_25 {dimension_numbers = #tpu.dot_dimension_numbers<[2], [2], [1], [1], [0, 0, 0, 1, 1, 1], [0], [0]>} : vector<2x4x8xf32>, vector<2x4x8xf32>, vector<2x4x4xf32> -> vector<2x4x4xf32>
    "tpu.trace_stop"() : () -> ()
    %cst_26 = arith.constant dense<0xFF800000> : vector<2x4xf32>
    %71 = vector.multi_reduction <maximumf>, %70, %cst_26 [2] : vector<2x4x4xf32> to vector<2x4xf32>
    %72 = vector.shape_cast %71 : vector<2x4xf32> to vector<2x4x1xf32>
    %73 = vector.broadcast %72 : vector<2x4x1xf32> to vector<2x4x4xf32>
    %74 = arith.subf %70, %73 : vector<2x4x4xf32>
    %75 = math.exp %74 : vector<2x4x4xf32>
    %cst_27 = arith.constant dense<0.000000e+00> : vector<2x4xf32>
    %76 = vector.multi_reduction <add>, %75, %cst_27 [2] : vector<2x4x4xf32> to vector<2x4xf32>
    %77 = vector.shape_cast %76 : vector<2x4xf32> to vector<2x4x1xf32>
    %78 = tpu.reciprocal %77 {approx = true} : vector<2x4x1xf32> -> vector<2x4x1xf32>
    %79 = vector.broadcast %78 : vector<2x4x1xf32> to vector<2x4x4xf32>
    %80 = arith.mulf %75, %79 : vector<2x4x4xf32>
    %81 = vector.extract_strided_slice %37 {offsets = [0, 0, 16], sizes = [2, 4, 8], strides = [1, 1, 1]} : vector<2x4x32xf32> to vector<2x4x8xf32>
    "tpu.trace_start"() <{level = 10 : i32, message = "gij,gjd->gid"}> : () -> ()
    %cst_28 = arith.constant dense<0.000000e+00> : vector<2x4x8xf32>
    %82 = tpu.matmul %80, %81, %cst_28 {dimension_numbers = #tpu.dot_dimension_numbers<[2], [1], [1], [2], [0, 0, 0, 1, 1, 2], [0], [0]>} : vector<2x4x4xf32>, vector<2x4x8xf32>, vector<2x4x8xf32> -> vector<2x4x8xf32>
    "tpu.trace_stop"() : () -> ()
    %83 = vector.extract_strided_slice %35 {offsets = [0, 0, 24], sizes = [2, 4, 8], strides = [1, 1, 1]} : vector<2x4x32xf32> to vector<2x4x8xf32>
    %84 = vector.extract_strided_slice %36 {offsets = [0, 0, 24], sizes = [2, 4, 8], strides = [1, 1, 1]} : vector<2x4x32xf32> to vector<2x4x8xf32>
    "tpu.trace_start"() <{level = 10 : i32, message = "gid,gjd->gij"}> : () -> ()
    %cst_29 = arith.constant dense<0.000000e+00> : vector<2x4x4xf32>
    %85 = tpu.matmul %83, %84, %cst_29 {dimension_numbers = #tpu.dot_dimension_numbers<[2], [2], [1], [1], [0, 0, 0, 1, 1, 1], [0], [0]>} : vector<2x4x8xf32>, vector<2x4x8xf32>, vector<2x4x4xf32> -> vector<2x4x4xf32>
    "tpu.trace_stop"() : () -> ()
    %cst_30 = arith.constant dense<0xFF800000> : vector<2x4xf32>
    %86 = vector.multi_reduction <maximumf>, %85, %cst_30 [2] : vector<2x4x4xf32> to vector<2x4xf32>
    %87 = vector.shape_cast %86 : vector<2x4xf32> to vector<2x4x1xf32>
    %88 = vector.broadcast %87 : vector<2x4x1xf32> to vector<2x4x4xf32>
    %89 = arith.subf %85, %88 : vector<2x4x4xf32>
    %90 = math.exp %89 : vector<2x4x4xf32>
    %cst_31 = arith.constant dense<0.000000e+00> : vector<2x4xf32>
    %91 = vector.multi_reduction <add>, %90, %cst_31 [2] : vector<2x4x4xf32> to vector<2x4xf32>
    %92 = vector.shape_cast %91 : vector<2x4xf32> to vector<2x4x1xf32>
    %93 = tpu.reciprocal %92 {approx = true} : vector<2x4x1xf32> -> vector<2x4x1xf32>
    %94 = vector.broadcast %93 : vector<2x4x1xf32> to vector<2x4x4xf32>
    %95 = arith.mulf %90, %94 : vector<2x4x4xf32>
    %96 = vector.extract_strided_slice %37 {offsets = [0, 0, 24], sizes = [2, 4, 8], strides = [1, 1, 1]} : vector<2x4x32xf32> to vector<2x4x8xf32>
    "tpu.trace_start"() <{level = 10 : i32, message = "gij,gjd->gid"}> : () -> ()
    %cst_32 = arith.constant dense<0.000000e+00> : vector<2x4x8xf32>
    %97 = tpu.matmul %95, %96, %cst_32 {dimension_numbers = #tpu.dot_dimension_numbers<[2], [1], [1], [2], [0, 0, 0, 1, 1, 2], [0], [0]>} : vector<2x4x4xf32>, vector<2x4x8xf32>, vector<2x4x8xf32> -> vector<2x4x8xf32>
    "tpu.trace_stop"() : () -> ()
    %98 = tpu.concatenate %52, %67, %82, %97 in 2 : vector<2x4x8xf32>, vector<2x4x8xf32>, vector<2x4x8xf32>, vector<2x4x8xf32> -> vector<2x4x32xf32>
    %99 = vector.shape_cast %98 : vector<2x4x32xf32> to vector<8x32xf32>
    %100 = arith.truncf %99 : vector<8x32xf32> to vector<8x32xbf16>
    %cst_33 = arith.constant dense<0.000000e+00> : vector<8x32xf32>
    %101 = tpu.matmul %100, %5, %cst_33 {dimension_numbers = #tpu.dot_dimension_numbers<[1], [0], [0], [1], [0, 0, 1, 1], [], []>} : vector<8x32xbf16>, vector<32x32xbf16>, vector<8x32xf32> -> vector<8x32xf32>
    %102 = vector.shape_cast %101 : vector<8x32xf32> to vector<2x4x32xf32>
    %103 = vector.shape_cast %6 : vector<1x32xf32> to vector<1x1x32xf32>
    %104 = vector.broadcast %103 : vector<1x1x32xf32> to vector<2x4x32xf32>
    %105 = arith.addf %102, %104 : vector<2x4x32xf32>
    %106 = arith.addf %105, %1 : vector<2x4x32xf32>
    %107 = arith.truncf %106 : vector<2x4x32xf32> to vector<2x4x32xbf16>
    %c0_34 = arith.constant 0 : index
    %c0_35 = arith.constant 0 : index
    %c0_36 = arith.constant 0 : index
    %108 = vector.load %arg7[%c0_34, %c0_35, %c0_36] : memref<2x4x32xbf16, #tpu.memory_space<vmem>>, vector<2x4x32xbf16>
    tpu.vector_store %arg7[%c0_34, %c0_35, %c0_36], %107 {strides = array<i32>} : memref<2x4x32xbf16, #tpu.memory_space<vmem>>, vector<2x4x32xbf16>,
    return
  }
  func.func @transform_0(%arg0: i32) -> (i32, i32, i32) {
    %c0_i32 = arith.constant 0 : i32
    %c0_i32_0 = arith.constant 0 : i32
    %c0_i32_1 = arith.constant 0 : i32
    return %arg0, %c0_i32, %c0_i32_0 : i32, i32, i32
  }
  func.func @transform_1(%arg0: i32) -> (i32, i32) {
    %c0_i32 = arith.constant 0 : i32
    %c0_i32_0 = arith.constant 0 : i32
    %c0_i32_1 = arith.constant 0 : i32
    return %c0_i32, %c0_i32_0 : i32, i32
  }
  func.func @transform_2(%arg0: i32) -> (i32, i32) {
    %c0_i32 = arith.constant 0 : i32
    %c0_i32_0 = arith.constant 0 : i32
    %c0_i32_1 = arith.constant 0 : i32
    return %c0_i32, %c0_i32_0 : i32, i32
  }
  func.func @transform_3(%arg0: i32) -> (i32, i32) {
    %c0_i32 = arith.constant 0 : i32
    %c0_i32_0 = arith.constant 0 : i32
    %c0_i32_1 = arith.constant 0 : i32
    return %c0_i32, %c0_i32_0 : i32, i32
  }
  func.func @transform_4(%arg0: i32) -> (i32, i32) {
    %c0_i32 = arith.constant 0 : i32
    %c0_i32_0 = arith.constant 0 : i32
    %c0_i32_1 = arith.constant 0 : i32
    return %c0_i32, %c0_i32_0 : i32, i32
  }
  func.func @transform_5(%arg0: i32) -> (i32, i32) {
    %c0_i32 = arith.constant 0 : i32
    %c0_i32_0 = arith.constant 0 : i32
    %c0_i32_1 = arith.constant 0 : i32
    return %c0_i32, %c0_i32_0 : i32, i32
  }
  func.func @transform_6(%arg0: i32) -> (i32, i32, i32) {
    %c0_i32 = arith.constant 0 : i32
    %c0_i32_0 = arith.constant 0 : i32
    %c0_i32_1 = arith.constant 0 : i32
    return %arg0, %c0_i32, %c0_i32_0 : i32, i32, i32
  }
}

module attributes {stable_mosaic.version = 11 : i64} {
  func.func @_temporal_attn_ff_kernel(%arg0: i32, %arg1: memref<4x2x32xbf16, #tpu.memory_space<vmem>>, %arg2: memref<1x32xf32, #tpu.memory_space<vmem>>, %arg3: memref<1x32xf32, #tpu.memory_space<vmem>>, %arg4: memref<32x96xbf16, #tpu.memory_space<vmem>>, %arg5: memref<32x32xbf16, #tpu.memory_space<vmem>>, %arg6: memref<1x32xf32, #tpu.memory_space<vmem>>, %arg7: memref<1x32xf32, #tpu.memory_space<vmem>>, %arg8: memref<1x32xf32, #tpu.memory_space<vmem>>, %arg9: memref<32x64xbf16, #tpu.memory_space<vmem>>, %arg10: memref<1x64xf32, #tpu.memory_space<vmem>>, %arg11: memref<64x32xbf16, #tpu.memory_space<vmem>>, %arg12: memref<1x32xf32, #tpu.memory_space<vmem>>, %arg13: memref<4x2x32xbf16, #tpu.memory_space<vmem>>) attributes {dimension_semantics = [#tpu.dimension_semantics<parallel>], iteration_bounds = array<i64: 2>, scalar_prefetch = 0 : i64, scratch_operands = 0 : i64, tpu.core_type = #tpu.core_type<tc>, window_params = [{transform_indices = @transform_0, window_bounds = array<i64: 4, 2, 32>}, {pipeline_mode = #tpu.pipeline_mode<synchronous>, transform_indices = @transform_1, window_bounds = array<i64: 1, 32>}, {pipeline_mode = #tpu.pipeline_mode<synchronous>, transform_indices = @transform_2, window_bounds = array<i64: 1, 32>}, {pipeline_mode = #tpu.pipeline_mode<synchronous>, transform_indices = @transform_3, window_bounds = array<i64: 32, 96>}, {pipeline_mode = #tpu.pipeline_mode<synchronous>, transform_indices = @transform_4, window_bounds = array<i64: 32, 32>}, {pipeline_mode = #tpu.pipeline_mode<synchronous>, transform_indices = @transform_5, window_bounds = array<i64: 1, 32>}, {pipeline_mode = #tpu.pipeline_mode<synchronous>, transform_indices = @transform_6, window_bounds = array<i64: 1, 32>}, {pipeline_mode = #tpu.pipeline_mode<synchronous>, transform_indices = @transform_7, window_bounds = array<i64: 1, 32>}, {pipeline_mode = #tpu.pipeline_mode<synchronous>, transform_indices = @transform_8, window_bounds = array<i64: 32, 64>}, {pipeline_mode = #tpu.pipeline_mode<synchronous>, transform_indices = @transform_9, window_bounds = array<i64: 1, 64>}, {pipeline_mode = #tpu.pipeline_mode<synchronous>, transform_indices = @transform_10, window_bounds = array<i64: 64, 32>}, {pipeline_mode = #tpu.pipeline_mode<synchronous>, transform_indices = @transform_11, window_bounds = array<i64: 1, 32>}, {transform_indices = @transform_12, window_bounds = array<i64: 4, 2, 32>}]} {
    %c0 = arith.constant 0 : index
    %c0_0 = arith.constant 0 : index
    %c0_1 = arith.constant 0 : index
    %0 = vector.load %arg1[%c0, %c0_0, %c0_1] : memref<4x2x32xbf16, #tpu.memory_space<vmem>>, vector<4x2x32xbf16>
    %1 = arith.extf %0 : vector<4x2x32xbf16> to vector<4x2x32xf32>
    %c0_2 = arith.constant 0 : index
    %c0_3 = arith.constant 0 : index
    %2 = vector.load %arg2[%c0_2, %c0_3] : memref<1x32xf32, #tpu.memory_space<vmem>>, vector<1x32xf32>
    %c0_4 = arith.constant 0 : index
    %c0_5 = arith.constant 0 : index
    %3 = vector.load %arg3[%c0_4, %c0_5] : memref<1x32xf32, #tpu.memory_space<vmem>>, vector<1x32xf32>
    %c0_6 = arith.constant 0 : index
    %c0_7 = arith.constant 0 : index
    %4 = vector.load %arg4[%c0_6, %c0_7] : memref<32x96xbf16, #tpu.memory_space<vmem>>, vector<32x96xbf16>
    %c0_8 = arith.constant 0 : index
    %c0_9 = arith.constant 0 : index
    %5 = vector.load %arg5[%c0_8, %c0_9] : memref<32x32xbf16, #tpu.memory_space<vmem>>, vector<32x32xbf16>
    %c0_10 = arith.constant 0 : index
    %c0_11 = arith.constant 0 : index
    %6 = vector.load %arg6[%c0_10, %c0_11] : memref<1x32xf32, #tpu.memory_space<vmem>>, vector<1x32xf32>
    %cst = arith.constant dense<0.000000e+00> : vector<4x2xf32>
    %7 = vector.multi_reduction <add>, %1, %cst [2] : vector<4x2x32xf32> to vector<4x2xf32>
    %8 = vector.shape_cast %7 : vector<4x2xf32> to vector<4x2x1xf32>
    %cst_12 = arith.constant 3.200000e+01 : f32
    %9 = vector.broadcast %cst_12 : f32 to vector<4x2x1xf32>
    %10 = arith.divf %8, %9 : vector<4x2x1xf32>
    %11 = vector.broadcast %10 : vector<4x2x1xf32> to vector<4x2x32xf32>
    %12 = arith.subf %1, %11 : vector<4x2x32xf32>
    %13 = arith.mulf %12, %12 : vector<4x2x32xf32>
    %cst_13 = arith.constant dense<0.000000e+00> : vector<4x2xf32>
    %14 = vector.multi_reduction <add>, %13, %cst_13 [2] : vector<4x2x32xf32> to vector<4x2xf32>
    %15 = vector.shape_cast %14 : vector<4x2xf32> to vector<4x2x1xf32>
    %cst_14 = arith.constant 3.200000e+01 : f32
    %16 = vector.broadcast %cst_14 : f32 to vector<4x2x1xf32>
    %17 = arith.divf %15, %16 : vector<4x2x1xf32>
    %18 = vector.broadcast %10 : vector<4x2x1xf32> to vector<4x2x32xf32>
    %19 = arith.subf %1, %18 : vector<4x2x32xf32>
    %cst_15 = arith.constant 9.99999974E-6 : f32
    %20 = vector.broadcast %cst_15 : f32 to vector<4x2x1xf32>
    %21 = arith.addf %17, %20 : vector<4x2x1xf32>
    %22 = math.rsqrt %21 : vector<4x2x1xf32>
    %23 = vector.broadcast %22 : vector<4x2x1xf32> to vector<4x2x32xf32>
    %24 = arith.mulf %19, %23 : vector<4x2x32xf32>
    %25 = vector.shape_cast %2 : vector<1x32xf32> to vector<1x1x32xf32>
    %26 = vector.broadcast %25 : vector<1x1x32xf32> to vector<4x2x32xf32>
    %27 = arith.mulf %24, %26 : vector<4x2x32xf32>
    %28 = vector.shape_cast %3 : vector<1x32xf32> to vector<1x1x32xf32>
    %29 = vector.broadcast %28 : vector<1x1x32xf32> to vector<4x2x32xf32>
    %30 = arith.addf %27, %29 : vector<4x2x32xf32>
    %31 = vector.shape_cast %30 : vector<4x2x32xf32> to vector<8x32xf32>
    %32 = arith.truncf %31 : vector<8x32xf32> to vector<8x32xbf16>
    %cst_16 = arith.constant dense<0.000000e+00> : vector<8x96xf32>
    %33 = tpu.matmul %32, %4, %cst_16 {dimension_numbers = #tpu.dot_dimension_numbers<[1], [0], [0], [1], [0, 0, 1, 1], [], []>} : vector<8x32xbf16>, vector<32x96xbf16>, vector<8x96xf32> -> vector<8x96xf32>
    %34 = vector.shape_cast %33 : vector<8x96xf32> to vector<4x2x96xf32>
    %35 = vector.extract_strided_slice %34 {offsets = [0, 0, 0], sizes = [4, 2, 32], strides = [1, 1, 1]} : vector<4x2x96xf32> to vector<4x2x32xf32>
    %36 = vector.extract_strided_slice %34 {offsets = [0, 0, 32], sizes = [4, 2, 32], strides = [1, 1, 1]} : vector<4x2x96xf32> to vector<4x2x32xf32>
    %37 = vector.extract_strided_slice %34 {offsets = [0, 0, 64], sizes = [4, 2, 32], strides = [1, 1, 1]} : vector<4x2x96xf32> to vector<4x2x32xf32>
    %38 = vector.extract_strided_slice %35 {offsets = [0, 0, 0], sizes = [4, 2, 8], strides = [1, 1, 1]} : vector<4x2x32xf32> to vector<4x2x8xf32>
    %39 = vector.extract_strided_slice %36 {offsets = [0, 0, 0], sizes = [4, 2, 8], strides = [1, 1, 1]} : vector<4x2x32xf32> to vector<4x2x8xf32>
    "tpu.trace_start"() <{level = 10 : i32, message = "gid,gjd->gij"}> : () -> ()
    %cst_17 = arith.constant dense<0.000000e+00> : vector<4x2x2xf32>
    %40 = tpu.matmul %38, %39, %cst_17 {dimension_numbers = #tpu.dot_dimension_numbers<[2], [2], [1], [1], [0, 0, 0, 1, 1, 1], [0], [0]>} : vector<4x2x8xf32>, vector<4x2x8xf32>, vector<4x2x2xf32> -> vector<4x2x2xf32>
    "tpu.trace_stop"() : () -> ()
    %cst_18 = arith.constant dense<0xFF800000> : vector<4x2xf32>
    %41 = vector.multi_reduction <maximumf>, %40, %cst_18 [2] : vector<4x2x2xf32> to vector<4x2xf32>
    %42 = vector.shape_cast %41 : vector<4x2xf32> to vector<4x2x1xf32>
    %43 = vector.broadcast %42 : vector<4x2x1xf32> to vector<4x2x2xf32>
    %44 = arith.subf %40, %43 : vector<4x2x2xf32>
    %45 = math.exp %44 : vector<4x2x2xf32>
    %cst_19 = arith.constant dense<0.000000e+00> : vector<4x2xf32>
    %46 = vector.multi_reduction <add>, %45, %cst_19 [2] : vector<4x2x2xf32> to vector<4x2xf32>
    %47 = vector.shape_cast %46 : vector<4x2xf32> to vector<4x2x1xf32>
    %48 = tpu.reciprocal %47 {approx = true} : vector<4x2x1xf32> -> vector<4x2x1xf32>
    %49 = vector.broadcast %48 : vector<4x2x1xf32> to vector<4x2x2xf32>
    %50 = arith.mulf %45, %49 : vector<4x2x2xf32>
    %51 = vector.extract_strided_slice %37 {offsets = [0, 0, 0], sizes = [4, 2, 8], strides = [1, 1, 1]} : vector<4x2x32xf32> to vector<4x2x8xf32>
    "tpu.trace_start"() <{level = 10 : i32, message = "gij,gjd->gid"}> : () -> ()
    %cst_20 = arith.constant dense<0.000000e+00> : vector<4x2x8xf32>
    %52 = tpu.matmul %50, %51, %cst_20 {dimension_numbers = #tpu.dot_dimension_numbers<[2], [1], [1], [2], [0, 0, 0, 1, 1, 2], [0], [0]>} : vector<4x2x2xf32>, vector<4x2x8xf32>, vector<4x2x8xf32> -> vector<4x2x8xf32>
    "tpu.trace_stop"() : () -> ()
    %53 = vector.extract_strided_slice %35 {offsets = [0, 0, 8], sizes = [4, 2, 8], strides = [1, 1, 1]} : vector<4x2x32xf32> to vector<4x2x8xf32>
    %54 = vector.extract_strided_slice %36 {offsets = [0, 0, 8], sizes = [4, 2, 8], strides = [1, 1, 1]} : vector<4x2x32xf32> to vector<4x2x8xf32>
    "tpu.trace_start"() <{level = 10 : i32, message = "gid,gjd->gij"}> : () -> ()
    %cst_21 = arith.constant dense<0.000000e+00> : vector<4x2x2xf32>
    %55 = tpu.matmul %53, %54, %cst_21 {dimension_numbers = #tpu.dot_dimension_numbers<[2], [2], [1], [1], [0, 0, 0, 1, 1, 1], [0], [0]>} : vector<4x2x8xf32>, vector<4x2x8xf32>, vector<4x2x2xf32> -> vector<4x2x2xf32>
    "tpu.trace_stop"() : () -> ()
    %cst_22 = arith.constant dense<0xFF800000> : vector<4x2xf32>
    %56 = vector.multi_reduction <maximumf>, %55, %cst_22 [2] : vector<4x2x2xf32> to vector<4x2xf32>
    %57 = vector.shape_cast %56 : vector<4x2xf32> to vector<4x2x1xf32>
    %58 = vector.broadcast %57 : vector<4x2x1xf32> to vector<4x2x2xf32>
    %59 = arith.subf %55, %58 : vector<4x2x2xf32>
    %60 = math.exp %59 : vector<4x2x2xf32>
    %cst_23 = arith.constant dense<0.000000e+00> : vector<4x2xf32>
    %61 = vector.multi_reduction <add>, %60, %cst_23 [2] : vector<4x2x2xf32> to vector<4x2xf32>
    %62 = vector.shape_cast %61 : vector<4x2xf32> to vector<4x2x1xf32>
    %63 = tpu.reciprocal %62 {approx = true} : vector<4x2x1xf32> -> vector<4x2x1xf32>
    %64 = vector.broadcast %63 : vector<4x2x1xf32> to vector<4x2x2xf32>
    %65 = arith.mulf %60, %64 : vector<4x2x2xf32>
    %66 = vector.extract_strided_slice %37 {offsets = [0, 0, 8], sizes = [4, 2, 8], strides = [1, 1, 1]} : vector<4x2x32xf32> to vector<4x2x8xf32>
    "tpu.trace_start"() <{level = 10 : i32, message = "gij,gjd->gid"}> : () -> ()
    %cst_24 = arith.constant dense<0.000000e+00> : vector<4x2x8xf32>
    %67 = tpu.matmul %65, %66, %cst_24 {dimension_numbers = #tpu.dot_dimension_numbers<[2], [1], [1], [2], [0, 0, 0, 1, 1, 2], [0], [0]>} : vector<4x2x2xf32>, vector<4x2x8xf32>, vector<4x2x8xf32> -> vector<4x2x8xf32>
    "tpu.trace_stop"() : () -> ()
    %68 = vector.extract_strided_slice %35 {offsets = [0, 0, 16], sizes = [4, 2, 8], strides = [1, 1, 1]} : vector<4x2x32xf32> to vector<4x2x8xf32>
    %69 = vector.extract_strided_slice %36 {offsets = [0, 0, 16], sizes = [4, 2, 8], strides = [1, 1, 1]} : vector<4x2x32xf32> to vector<4x2x8xf32>
    "tpu.trace_start"() <{level = 10 : i32, message = "gid,gjd->gij"}> : () -> ()
    %cst_25 = arith.constant dense<0.000000e+00> : vector<4x2x2xf32>
    %70 = tpu.matmul %68, %69, %cst_25 {dimension_numbers = #tpu.dot_dimension_numbers<[2], [2], [1], [1], [0, 0, 0, 1, 1, 1], [0], [0]>} : vector<4x2x8xf32>, vector<4x2x8xf32>, vector<4x2x2xf32> -> vector<4x2x2xf32>
    "tpu.trace_stop"() : () -> ()
    %cst_26 = arith.constant dense<0xFF800000> : vector<4x2xf32>
    %71 = vector.multi_reduction <maximumf>, %70, %cst_26 [2] : vector<4x2x2xf32> to vector<4x2xf32>
    %72 = vector.shape_cast %71 : vector<4x2xf32> to vector<4x2x1xf32>
    %73 = vector.broadcast %72 : vector<4x2x1xf32> to vector<4x2x2xf32>
    %74 = arith.subf %70, %73 : vector<4x2x2xf32>
    %75 = math.exp %74 : vector<4x2x2xf32>
    %cst_27 = arith.constant dense<0.000000e+00> : vector<4x2xf32>
    %76 = vector.multi_reduction <add>, %75, %cst_27 [2] : vector<4x2x2xf32> to vector<4x2xf32>
    %77 = vector.shape_cast %76 : vector<4x2xf32> to vector<4x2x1xf32>
    %78 = tpu.reciprocal %77 {approx = true} : vector<4x2x1xf32> -> vector<4x2x1xf32>
    %79 = vector.broadcast %78 : vector<4x2x1xf32> to vector<4x2x2xf32>
    %80 = arith.mulf %75, %79 : vector<4x2x2xf32>
    %81 = vector.extract_strided_slice %37 {offsets = [0, 0, 16], sizes = [4, 2, 8], strides = [1, 1, 1]} : vector<4x2x32xf32> to vector<4x2x8xf32>
    "tpu.trace_start"() <{level = 10 : i32, message = "gij,gjd->gid"}> : () -> ()
    %cst_28 = arith.constant dense<0.000000e+00> : vector<4x2x8xf32>
    %82 = tpu.matmul %80, %81, %cst_28 {dimension_numbers = #tpu.dot_dimension_numbers<[2], [1], [1], [2], [0, 0, 0, 1, 1, 2], [0], [0]>} : vector<4x2x2xf32>, vector<4x2x8xf32>, vector<4x2x8xf32> -> vector<4x2x8xf32>
    "tpu.trace_stop"() : () -> ()
    %83 = vector.extract_strided_slice %35 {offsets = [0, 0, 24], sizes = [4, 2, 8], strides = [1, 1, 1]} : vector<4x2x32xf32> to vector<4x2x8xf32>
    %84 = vector.extract_strided_slice %36 {offsets = [0, 0, 24], sizes = [4, 2, 8], strides = [1, 1, 1]} : vector<4x2x32xf32> to vector<4x2x8xf32>
    "tpu.trace_start"() <{level = 10 : i32, message = "gid,gjd->gij"}> : () -> ()
    %cst_29 = arith.constant dense<0.000000e+00> : vector<4x2x2xf32>
    %85 = tpu.matmul %83, %84, %cst_29 {dimension_numbers = #tpu.dot_dimension_numbers<[2], [2], [1], [1], [0, 0, 0, 1, 1, 1], [0], [0]>} : vector<4x2x8xf32>, vector<4x2x8xf32>, vector<4x2x2xf32> -> vector<4x2x2xf32>
    "tpu.trace_stop"() : () -> ()
    %cst_30 = arith.constant dense<0xFF800000> : vector<4x2xf32>
    %86 = vector.multi_reduction <maximumf>, %85, %cst_30 [2] : vector<4x2x2xf32> to vector<4x2xf32>
    %87 = vector.shape_cast %86 : vector<4x2xf32> to vector<4x2x1xf32>
    %88 = vector.broadcast %87 : vector<4x2x1xf32> to vector<4x2x2xf32>
    %89 = arith.subf %85, %88 : vector<4x2x2xf32>
    %90 = math.exp %89 : vector<4x2x2xf32>
    %cst_31 = arith.constant dense<0.000000e+00> : vector<4x2xf32>
    %91 = vector.multi_reduction <add>, %90, %cst_31 [2] : vector<4x2x2xf32> to vector<4x2xf32>
    %92 = vector.shape_cast %91 : vector<4x2xf32> to vector<4x2x1xf32>
    %93 = tpu.reciprocal %92 {approx = true} : vector<4x2x1xf32> -> vector<4x2x1xf32>
    %94 = vector.broadcast %93 : vector<4x2x1xf32> to vector<4x2x2xf32>
    %95 = arith.mulf %90, %94 : vector<4x2x2xf32>
    %96 = vector.extract_strided_slice %37 {offsets = [0, 0, 24], sizes = [4, 2, 8], strides = [1, 1, 1]} : vector<4x2x32xf32> to vector<4x2x8xf32>
    "tpu.trace_start"() <{level = 10 : i32, message = "gij,gjd->gid"}> : () -> ()
    %cst_32 = arith.constant dense<0.000000e+00> : vector<4x2x8xf32>
    %97 = tpu.matmul %95, %96, %cst_32 {dimension_numbers = #tpu.dot_dimension_numbers<[2], [1], [1], [2], [0, 0, 0, 1, 1, 2], [0], [0]>} : vector<4x2x2xf32>, vector<4x2x8xf32>, vector<4x2x8xf32> -> vector<4x2x8xf32>
    "tpu.trace_stop"() : () -> ()
    %98 = tpu.concatenate %52, %67, %82, %97 in 2 : vector<4x2x8xf32>, vector<4x2x8xf32>, vector<4x2x8xf32>, vector<4x2x8xf32> -> vector<4x2x32xf32>
    %99 = vector.shape_cast %98 : vector<4x2x32xf32> to vector<8x32xf32>
    %100 = arith.truncf %99 : vector<8x32xf32> to vector<8x32xbf16>
    %cst_33 = arith.constant dense<0.000000e+00> : vector<8x32xf32>
    %101 = tpu.matmul %100, %5, %cst_33 {dimension_numbers = #tpu.dot_dimension_numbers<[1], [0], [0], [1], [0, 0, 1, 1], [], []>} : vector<8x32xbf16>, vector<32x32xbf16>, vector<8x32xf32> -> vector<8x32xf32>
    %102 = vector.shape_cast %101 : vector<8x32xf32> to vector<4x2x32xf32>
    %103 = vector.shape_cast %6 : vector<1x32xf32> to vector<1x1x32xf32>
    %104 = vector.broadcast %103 : vector<1x1x32xf32> to vector<4x2x32xf32>
    %105 = arith.addf %102, %104 : vector<4x2x32xf32>
    %106 = arith.addf %105, %1 : vector<4x2x32xf32>
    %c0_34 = arith.constant 0 : index
    %c0_35 = arith.constant 0 : index
    %107 = vector.load %arg7[%c0_34, %c0_35] : memref<1x32xf32, #tpu.memory_space<vmem>>, vector<1x32xf32>
    %c0_36 = arith.constant 0 : index
    %c0_37 = arith.constant 0 : index
    %108 = vector.load %arg8[%c0_36, %c0_37] : memref<1x32xf32, #tpu.memory_space<vmem>>, vector<1x32xf32>
    %c0_38 = arith.constant 0 : index
    %c0_39 = arith.constant 0 : index
    %109 = vector.load %arg9[%c0_38, %c0_39] : memref<32x64xbf16, #tpu.memory_space<vmem>>, vector<32x64xbf16>
    %c0_40 = arith.constant 0 : index
    %c0_41 = arith.constant 0 : index
    %110 = vector.load %arg10[%c0_40, %c0_41] : memref<1x64xf32, #tpu.memory_space<vmem>>, vector<1x64xf32>
    %c0_42 = arith.constant 0 : index
    %c0_43 = arith.constant 0 : index
    %111 = vector.load %arg11[%c0_42, %c0_43] : memref<64x32xbf16, #tpu.memory_space<vmem>>, vector<64x32xbf16>
    %c0_44 = arith.constant 0 : index
    %c0_45 = arith.constant 0 : index
    %112 = vector.load %arg12[%c0_44, %c0_45] : memref<1x32xf32, #tpu.memory_space<vmem>>, vector<1x32xf32>
    %cst_46 = arith.constant dense<0.000000e+00> : vector<4x2xf32>
    %113 = vector.multi_reduction <add>, %106, %cst_46 [2] : vector<4x2x32xf32> to vector<4x2xf32>
    %114 = vector.shape_cast %113 : vector<4x2xf32> to vector<4x2x1xf32>
    %cst_47 = arith.constant 3.200000e+01 : f32
    %115 = vector.broadcast %cst_47 : f32 to vector<4x2x1xf32>
    %116 = arith.divf %114, %115 : vector<4x2x1xf32>
    %117 = vector.broadcast %116 : vector<4x2x1xf32> to vector<4x2x32xf32>
    %118 = arith.subf %106, %117 : vector<4x2x32xf32>
    %119 = arith.mulf %118, %118 : vector<4x2x32xf32>
    %cst_48 = arith.constant dense<0.000000e+00> : vector<4x2xf32>
    %120 = vector.multi_reduction <add>, %119, %cst_48 [2] : vector<4x2x32xf32> to vector<4x2xf32>
    %121 = vector.shape_cast %120 : vector<4x2xf32> to vector<4x2x1xf32>
    %cst_49 = arith.constant 3.200000e+01 : f32
    %122 = vector.broadcast %cst_49 : f32 to vector<4x2x1xf32>
    %123 = arith.divf %121, %122 : vector<4x2x1xf32>
    %124 = vector.broadcast %116 : vector<4x2x1xf32> to vector<4x2x32xf32>
    %125 = arith.subf %106, %124 : vector<4x2x32xf32>
    %cst_50 = arith.constant 9.99999974E-6 : f32
    %126 = vector.broadcast %cst_50 : f32 to vector<4x2x1xf32>
    %127 = arith.addf %123, %126 : vector<4x2x1xf32>
    %128 = math.rsqrt %127 : vector<4x2x1xf32>
    %129 = vector.broadcast %128 : vector<4x2x1xf32> to vector<4x2x32xf32>
    %130 = arith.mulf %125, %129 : vector<4x2x32xf32>
    %131 = vector.shape_cast %107 : vector<1x32xf32> to vector<1x1x32xf32>
    %132 = vector.broadcast %131 : vector<1x1x32xf32> to vector<4x2x32xf32>
    %133 = arith.mulf %130, %132 : vector<4x2x32xf32>
    %134 = vector.shape_cast %108 : vector<1x32xf32> to vector<1x1x32xf32>
    %135 = vector.broadcast %134 : vector<1x1x32xf32> to vector<4x2x32xf32>
    %136 = arith.addf %133, %135 : vector<4x2x32xf32>
    %137 = vector.shape_cast %136 : vector<4x2x32xf32> to vector<8x32xf32>
    %138 = arith.truncf %137 : vector<8x32xf32> to vector<8x32xbf16>
    %cst_51 = arith.constant dense<0.000000e+00> : vector<8x64xf32>
    %139 = tpu.matmul %138, %109, %cst_51 {dimension_numbers = #tpu.dot_dimension_numbers<[1], [0], [0], [1], [0, 0, 1, 1], [], []>} : vector<8x32xbf16>, vector<32x64xbf16>, vector<8x64xf32> -> vector<8x64xf32>
    %140 = vector.broadcast %110 : vector<1x64xf32> to vector<8x64xf32>
    %141 = arith.addf %139, %140 : vector<8x64xf32>
    %cst_52 = arith.constant 5.000000e-01 : f32
    %142 = vector.broadcast %cst_52 : f32 to vector<8x64xf32>
    %143 = arith.mulf %142, %141 : vector<8x64xf32>
    %cst_53 = arith.constant 4.471500e-02 : f32
    %144 = vector.broadcast %cst_53 : f32 to vector<8x64xf32>
    %145 = arith.mulf %144, %141 : vector<8x64xf32>
    %146 = arith.mulf %145, %141 : vector<8x64xf32>
    %147 = arith.mulf %146, %141 : vector<8x64xf32>
    %148 = arith.addf %141, %147 : vector<8x64xf32>
    %cst_54 = arith.constant 0.797884583 : f32
    %149 = vector.broadcast %cst_54 : f32 to vector<8x64xf32>
    %150 = arith.mulf %149, %148 : vector<8x64xf32>
    %151 = math.tanh %150 : vector<8x64xf32>
    %cst_55 = arith.constant 1.000000e+00 : f32
    %152 = vector.broadcast %cst_55 : f32 to vector<8x64xf32>
    %153 = arith.addf %152, %151 : vector<8x64xf32>
    %154 = arith.mulf %143, %153 : vector<8x64xf32>
    %155 = arith.truncf %154 : vector<8x64xf32> to vector<8x64xbf16>
    %cst_56 = arith.constant dense<0.000000e+00> : vector<8x32xf32>
    %156 = tpu.matmul %155, %111, %cst_56 {dimension_numbers = #tpu.dot_dimension_numbers<[1], [0], [0], [1], [0, 0, 1, 1], [], []>} : vector<8x64xbf16>, vector<64x32xbf16>, vector<8x32xf32> -> vector<8x32xf32>
    %157 = vector.broadcast %112 : vector<1x32xf32> to vector<8x32xf32>
    %158 = arith.addf %156, %157 : vector<8x32xf32>
    %159 = vector.shape_cast %158 : vector<8x32xf32> to vector<4x2x32xf32>
    %160 = arith.addf %159, %106 : vector<4x2x32xf32>
    %161 = arith.truncf %160 : vector<4x2x32xf32> to vector<4x2x32xbf16>
    %c0_57 = arith.constant 0 : index
    %c0_58 = arith.constant 0 : index
    %c0_59 = arith.constant 0 : index
    %162 = vector.load %arg13[%c0_57, %c0_58, %c0_59] : memref<4x2x32xbf16, #tpu.memory_space<vmem>>, vector<4x2x32xbf16>
    tpu.vector_store %arg13[%c0_57, %c0_58, %c0_59], %161 {strides = array<i32>} : memref<4x2x32xbf16, #tpu.memory_space<vmem>>, vector<4x2x32xbf16>,
    return
  }
  func.func @transform_0(%arg0: i32) -> (i32, i32, i32) {
    %c0_i32 = arith.constant 0 : i32
    %c0_i32_0 = arith.constant 0 : i32
    %c0_i32_1 = arith.constant 0 : i32
    return %arg0, %c0_i32, %c0_i32_0 : i32, i32, i32
  }
  func.func @transform_1(%arg0: i32) -> (i32, i32) {
    %c0_i32 = arith.constant 0 : i32
    %c0_i32_0 = arith.constant 0 : i32
    %c0_i32_1 = arith.constant 0 : i32
    return %c0_i32, %c0_i32_0 : i32, i32
  }
  func.func @transform_2(%arg0: i32) -> (i32, i32) {
    %c0_i32 = arith.constant 0 : i32
    %c0_i32_0 = arith.constant 0 : i32
    %c0_i32_1 = arith.constant 0 : i32
    return %c0_i32, %c0_i32_0 : i32, i32
  }
  func.func @transform_3(%arg0: i32) -> (i32, i32) {
    %c0_i32 = arith.constant 0 : i32
    %c0_i32_0 = arith.constant 0 : i32
    %c0_i32_1 = arith.constant 0 : i32
    return %c0_i32, %c0_i32_0 : i32, i32
  }
  func.func @transform_4(%arg0: i32) -> (i32, i32) {
    %c0_i32 = arith.constant 0 : i32
    %c0_i32_0 = arith.constant 0 : i32
    %c0_i32_1 = arith.constant 0 : i32
    return %c0_i32, %c0_i32_0 : i32, i32
  }
  func.func @transform_5(%arg0: i32) -> (i32, i32) {
    %c0_i32 = arith.constant 0 : i32
    %c0_i32_0 = arith.constant 0 : i32
    %c0_i32_1 = arith.constant 0 : i32
    return %c0_i32, %c0_i32_0 : i32, i32
  }
  func.func @transform_6(%arg0: i32) -> (i32, i32) {
    %c0_i32 = arith.constant 0 : i32
    %c0_i32_0 = arith.constant 0 : i32
    %c0_i32_1 = arith.constant 0 : i32
    return %c0_i32, %c0_i32_0 : i32, i32
  }
  func.func @transform_7(%arg0: i32) -> (i32, i32) {
    %c0_i32 = arith.constant 0 : i32
    %c0_i32_0 = arith.constant 0 : i32
    %c0_i32_1 = arith.constant 0 : i32
    return %c0_i32, %c0_i32_0 : i32, i32
  }
  func.func @transform_8(%arg0: i32) -> (i32, i32) {
    %c0_i32 = arith.constant 0 : i32
    %c0_i32_0 = arith.constant 0 : i32
    %c0_i32_1 = arith.constant 0 : i32
    return %c0_i32, %c0_i32_0 : i32, i32
  }
  func.func @transform_9(%arg0: i32) -> (i32, i32) {
    %c0_i32 = arith.constant 0 : i32
    %c0_i32_0 = arith.constant 0 : i32
    %c0_i32_1 = arith.constant 0 : i32
    return %c0_i32, %c0_i32_0 : i32, i32
  }
  func.func @transform_10(%arg0: i32) -> (i32, i32) {
    %c0_i32 = arith.constant 0 : i32
    %c0_i32_0 = arith.constant 0 : i32
    %c0_i32_1 = arith.constant 0 : i32
    return %c0_i32, %c0_i32_0 : i32, i32
  }
  func.func @transform_11(%arg0: i32) -> (i32, i32) {
    %c0_i32 = arith.constant 0 : i32
    %c0_i32_0 = arith.constant 0 : i32
    %c0_i32_1 = arith.constant 0 : i32
    return %c0_i32, %c0_i32_0 : i32, i32
  }
  func.func @transform_12(%arg0: i32) -> (i32, i32, i32) {
    %c0_i32 = arith.constant 0 : i32
    %c0_i32_0 = arith.constant 0 : i32
    %c0_i32_1 = arith.constant 0 : i32
    return %arg0, %c0_i32, %c0_i32_0 : i32, i32, i32
  }
}

module attributes {stable_mosaic.version = 11 : i64} {
  func.func @_head_kernel(%arg0: i32, %arg1: memref<2x8x32xbf16, #tpu.memory_space<vmem>>, %arg2: memref<1x32xf32, #tpu.memory_space<vmem>>, %arg3: memref<1x32xf32, #tpu.memory_space<vmem>>, %arg4: memref<32x10xf32, #tpu.memory_space<vmem>>, %arg5: memref<1x10xf32, #tpu.memory_space<vmem>>, %arg6: memref<2x10xf32, #tpu.memory_space<vmem>>) attributes {dimension_semantics = [#tpu.dimension_semantics<arbitrary>], iteration_bounds = array<i64: 1>, scalar_prefetch = 0 : i64, scratch_operands = 0 : i64, tpu.core_type = #tpu.core_type<tc>, window_params = [{pipeline_mode = #tpu.pipeline_mode<synchronous>, transform_indices = @transform_0, window_bounds = array<i64: 2, 8, 32>}, {pipeline_mode = #tpu.pipeline_mode<synchronous>, transform_indices = @transform_1, window_bounds = array<i64: 1, 32>}, {pipeline_mode = #tpu.pipeline_mode<synchronous>, transform_indices = @transform_2, window_bounds = array<i64: 1, 32>}, {pipeline_mode = #tpu.pipeline_mode<synchronous>, transform_indices = @transform_3, window_bounds = array<i64: 32, 10>}, {pipeline_mode = #tpu.pipeline_mode<synchronous>, transform_indices = @transform_4, window_bounds = array<i64: 1, 10>}, {pipeline_mode = #tpu.pipeline_mode<synchronous>, transform_indices = @transform_5, window_bounds = array<i64: 2, 10>}]} {
    %c0 = arith.constant 0 : index
    %c0_0 = arith.constant 0 : index
    %c0_1 = arith.constant 0 : index
    %0 = vector.load %arg1[%c0, %c0_0, %c0_1] : memref<2x8x32xbf16, #tpu.memory_space<vmem>>, vector<2x8x32xbf16>
    %1 = arith.extf %0 : vector<2x8x32xbf16> to vector<2x8x32xf32>
    %cst = arith.constant dense<0.000000e+00> : vector<2x32xf32>
    %2 = vector.multi_reduction <add>, %1, %cst [1] : vector<2x8x32xf32> to vector<2x32xf32>
    %cst_2 = arith.constant 8.000000e+00 : f32
    %3 = vector.broadcast %cst_2 : f32 to vector<2x32xf32>
    %4 = arith.divf %2, %3 : vector<2x32xf32>
    %c0_3 = arith.constant 0 : index
    %c0_4 = arith.constant 0 : index
    %5 = vector.load %arg2[%c0_3, %c0_4] : memref<1x32xf32, #tpu.memory_space<vmem>>, vector<1x32xf32>
    %c0_5 = arith.constant 0 : index
    %c0_6 = arith.constant 0 : index
    %6 = vector.load %arg3[%c0_5, %c0_6] : memref<1x32xf32, #tpu.memory_space<vmem>>, vector<1x32xf32>
    %cst_7 = arith.constant dense<0.000000e+00> : vector<2xf32>
    %7 = vector.multi_reduction <add>, %4, %cst_7 [1] : vector<2x32xf32> to vector<2xf32>
    %8 = vector.shape_cast %7 : vector<2xf32> to vector<2x1xf32>
    %cst_8 = arith.constant 3.200000e+01 : f32
    %9 = vector.broadcast %cst_8 : f32 to vector<2x1xf32>
    %10 = arith.divf %8, %9 : vector<2x1xf32>
    %11 = vector.broadcast %10 : vector<2x1xf32> to vector<2x32xf32>
    %12 = arith.subf %4, %11 : vector<2x32xf32>
    %13 = arith.mulf %12, %12 : vector<2x32xf32>
    %cst_9 = arith.constant dense<0.000000e+00> : vector<2xf32>
    %14 = vector.multi_reduction <add>, %13, %cst_9 [1] : vector<2x32xf32> to vector<2xf32>
    %15 = vector.shape_cast %14 : vector<2xf32> to vector<2x1xf32>
    %cst_10 = arith.constant 3.200000e+01 : f32
    %16 = vector.broadcast %cst_10 : f32 to vector<2x1xf32>
    %17 = arith.divf %15, %16 : vector<2x1xf32>
    %18 = vector.broadcast %10 : vector<2x1xf32> to vector<2x32xf32>
    %19 = arith.subf %4, %18 : vector<2x32xf32>
    %cst_11 = arith.constant 9.99999974E-6 : f32
    %20 = vector.broadcast %cst_11 : f32 to vector<2x1xf32>
    %21 = arith.addf %17, %20 : vector<2x1xf32>
    %22 = math.rsqrt %21 : vector<2x1xf32>
    %23 = vector.broadcast %22 : vector<2x1xf32> to vector<2x32xf32>
    %24 = arith.mulf %19, %23 : vector<2x32xf32>
    %25 = vector.broadcast %5 : vector<1x32xf32> to vector<2x32xf32>
    %26 = arith.mulf %24, %25 : vector<2x32xf32>
    %27 = vector.broadcast %6 : vector<1x32xf32> to vector<2x32xf32>
    %28 = arith.addf %26, %27 : vector<2x32xf32>
    %c0_12 = arith.constant 0 : index
    %c0_13 = arith.constant 0 : index
    %29 = vector.load %arg4[%c0_12, %c0_13] : memref<32x10xf32, #tpu.memory_space<vmem>>, vector<32x10xf32>
    %cst_14 = arith.constant dense<0.000000e+00> : vector<2x10xf32>
    %30 = tpu.matmul %28, %29, %cst_14 {dimension_numbers = #tpu.dot_dimension_numbers<[1], [0], [0], [1], [0, 0, 1, 1], [], []>} : vector<2x32xf32>, vector<32x10xf32>, vector<2x10xf32> -> vector<2x10xf32>
    %c0_15 = arith.constant 0 : index
    %c0_16 = arith.constant 0 : index
    %31 = vector.load %arg5[%c0_15, %c0_16] : memref<1x10xf32, #tpu.memory_space<vmem>>, vector<1x10xf32>
    %32 = vector.broadcast %31 : vector<1x10xf32> to vector<2x10xf32>
    %33 = arith.addf %30, %32 : vector<2x10xf32>
    %c0_17 = arith.constant 0 : index
    %c0_18 = arith.constant 0 : index
    %34 = vector.load %arg6[%c0_17, %c0_18] : memref<2x10xf32, #tpu.memory_space<vmem>>, vector<2x10xf32>
    tpu.vector_store %arg6[%c0_17, %c0_18], %33 {strides = array<i32>} : memref<2x10xf32, #tpu.memory_space<vmem>>, vector<2x10xf32>,
    return
  }
  func.func @transform_0(%arg0: i32) -> (i32, i32, i32) {
    %c0_i32 = arith.constant 0 : i32
    %c0_i32_0 = arith.constant 0 : i32
    %c0_i32_1 = arith.constant 0 : i32
    %c0_i32_2 = arith.constant 0 : i32
    return %c0_i32, %c0_i32_0, %c0_i32_1 : i32, i32, i32
  }
  func.func @transform_1(%arg0: i32) -> (i32, i32) {
    %c0_i32 = arith.constant 0 : i32
    %c0_i32_0 = arith.constant 0 : i32
    %c0_i32_1 = arith.constant 0 : i32
    return %c0_i32, %c0_i32_0 : i32, i32
  }
  func.func @transform_2(%arg0: i32) -> (i32, i32) {
    %c0_i32 = arith.constant 0 : i32
    %c0_i32_0 = arith.constant 0 : i32
    %c0_i32_1 = arith.constant 0 : i32
    return %c0_i32, %c0_i32_0 : i32, i32
  }
  func.func @transform_3(%arg0: i32) -> (i32, i32) {
    %c0_i32 = arith.constant 0 : i32
    %c0_i32_0 = arith.constant 0 : i32
    %c0_i32_1 = arith.constant 0 : i32
    return %c0_i32, %c0_i32_0 : i32, i32
  }
  func.func @transform_4(%arg0: i32) -> (i32, i32) {
    %c0_i32 = arith.constant 0 : i32
    %c0_i32_0 = arith.constant 0 : i32
    %c0_i32_1 = arith.constant 0 : i32
    return %c0_i32, %c0_i32_0 : i32, i32
  }
  func.func @transform_5(%arg0: i32) -> (i32, i32) {
    %c0_i32 = arith.constant 0 : i32
    %c0_i32_0 = arith.constant 0 : i32
    %c0_i32_1 = arith.constant 0 : i32
    return %c0_i32, %c0_i32_0 : i32, i32
  }
}

</mosaic_0001>

<bundles_post_ra>
// kernel: vivit_forward.6
= control target key start
LH: loop header
LB: loop body
LE: loop exit
PB: predicated region body
PF: predicated region fallthrough
CT: control target
= control target key end

     0   :  { %9 = vsyncpa [#allocation3], 0  ;;  %s1137_s0 = inlined_call_operand.hbm [shape: bf16[4,4,96], index: 0, kind: input, shape index: {}]   ;;  %s1138_s1 = inlined_call_operand.hbm [shape: bf16[96,32], index: 1, kind: input, shape index: {}]   ;;  %s1139_s2 = inlined_call_operand.hbm [shape: f32[1,32], index: 2, kind: input, shape index: {}]   ;;  %s1140_s3 = inlined_call_operand.hbm [shape: f32[4,32], index: 3, kind: input, shape index: {}]   ;;  %s1141_s4 = inlined_call_operand.hbm [shape: bf16[4,4,32], index: 4, kind: output, shape index: {}]  }
   0x1   :  { %11 = vsyncpa [#allocation3 + $0x1], 0 }
   0x2   :  { %12 = vsyncpa [#allocation6], 0 }
   0x3   :  { %13 = vsyncpa [#allocation9], 0 }
   0x4   :  { %14 = vsyncpa [#allocation4], 0 }
   0x5   :  { %16 = vsyncpa [#allocation4 + $0x1], 0  ;;  %s873_s15 = smov 0   ;;  %s875_s16 = smov 0  }
   0x6   :  { %s877_s17 = smov 0   ;;  %s879_s18 = smov 0  }
   0x7 LB: > { %s894_s19 = sadd.s32 4294967295, %s832_s18   ;;  %s499_s20 = sadd.s32 4294967294, %s832_s18   ;;  %s832_s18 = sphi %s879_s18, %s1164_s18   ;;  %s828_s17 = sphi %s877_s17, %s1163_s17   ;;  %s824_s16 = sphi %s875_s16, %s1162_s16   ;;  %s820_s15 = sphi %s873_s15, %s1161_s15  }
   0x8   : > { %p42_p0 = scmp.ne.s32.totalorder %s824_s16, %s820_s15  ;;  %p1142_p1 = scmp.eq.s32.totalorder %s894_s19, 0 }
   0x9   : > { %p135_p3 = scmp.eq.s32.totalorder %s499_s20, 1  ;;  %p500_p5 = scmp.ge.s32.totalorder %s832_s18, 1 }
   0xa   : > { %p903_p4 = por %p1142_p1, %p42_p0  ;;  %p142_p7 = scmp.lt.s32.totalorder %s832_s18, 3 }
   0xb   : > { %p908_p6 = por %p135_p3, %p42_p0  ;;  %s834_s24 = smov [#allocation5]  }
   0xc   : > { %s1145_s21 = scalar_select %p903_p4, 1, 0 }
   0xd   : > { %s1146_s22 = scalar_select %p908_p6, 1, 0 }
   0xe   : > { %p913_p8 = pnand %p500_p5, %p142_p7  ;;  %s154_s25 = sshll.u32 %s834_s24, 4  ;;  %s917_s25 = int_to_ptr.vmem [resolvable:$true] %s154_s25 }
   0xf   : > { %s835_s27 = smov [#allocation7]   ;;  %s836_s29 = smov [#allocation8]  }
  0x10   : > { %s1147_s23 = scalar_select %p913_p8, 1, 0 }
  0x11   : > { %p568_p9 = pneg %p913_p8  ;;  %s168_s28 = sshll.u32 %s835_s27, 4  ;;  %s928_s28 = int_to_ptr.vmem [resolvable:$true] %s168_s28 }
  0x12   : > { %s930_s30 = sshll.u32 %s836_s29, 4  ;;  %s644_s7 = scalar_lea.hbm %s1138_s1, 768  ;;  %s180_s30 = int_to_ptr.vmem [resolvable:$true] %s930_s30 }
  0x13   : > { %p924_p11 = pnand %p568_p9, %p1142_p1  ;;  %p645_p12 = scmp.ne.s32.totalorder %s1138_s1, %s644_s7 }
  0x14   : > { %p651_p5 = scmp.lt.u32.totalorder %s644_s7, %s1138_s1 }
  0x15   : > { %p940_p13 = pneg %p924_p11 }
  0x17   : > { %p647_p0 = pnand %p940_p13, %p645_p12 }
  0x19   : > { %p648_p3 = pneg %p647_p0 }
  0x1b   : > { %p653_p7 = pnand %p651_p5, %p648_p3 }
  0x1d   : > { %656 = shalt.err (!%p653_p7)
}
  0x1e   : > { %s657_s13 = scalar_lea.vmem %s917_s25, 768  ;;  %p665_p2 = scmp.lt.s32.totalorder %s917_s25, %s917_s25 }
  0x1f   : > { %p658_p9 = scmp.ne.s32.totalorder %s917_s25, %s657_s13  ;;  %p666_p6 = scmp.lt.s32.totalorder %s657_s13, %s657_s13 }
  0x21   : > { %p660_p10 = pnand %p658_p9, %p940_p13  ;;  %p667_p12 = por %p666_p6, %p665_p2 }
  0x23   : > { %p661_p1 = pneg %p660_p10 }
  0x25   : > { %p668_p0 = pnand %p667_p12, %p661_p1 }
  0x27   : > { %671 = shalt.err (!%p668_p0)
}
  0x28   : > { %s837_s14 = smov 64   ;;  %s838_s20 = smov 4  }
  0x29   : > { %571 = dma.hbm_to_vmem [thread:$0]  (!%p924_p11), %s1138_s1, 768, %s917_s25, [#allocation6], %s837_s14, %s837_s14, %s838_s20  }
  0x2a   : > { %s672_s6 = scalar_lea.hbm %s1139_s2, 16 }
  0x2b   : > { %p673_p2 = scmp.ne.s32.totalorder %s1139_s2, %s672_s6  ;;  %p679_p10 = scmp.lt.u32.totalorder %s672_s6, %s1139_s2 }
  0x2d   : > { %p675_p1 = pnand %p673_p2, %p940_p13 }
  0x2f   : > { %p676_p6 = pneg %p675_p1 }
  0x31   : > { %p681_p3 = pnand %p679_p10, %p676_p6 }
  0x33   : > { %684 = shalt.err (!%p681_p3)
}
  0x34   : > { %s685_s25 = scalar_lea.vmem %s928_s28, 16  ;;  %s692_s12 = scalar_lea.vmem %s928_s28, 32 }
  0x35   : > { %p686_p5 = scmp.ne.s32.totalorder %s928_s28, %s685_s25  ;;  %p693_p12 = scmp.lt.s32.totalorder %s928_s28, %s928_s28 }
  0x36   : > { %p694_p0 = scmp.lt.s32.totalorder %s692_s12, %s685_s25 }
  0x37   : > { %p688_p7 = pnand %p686_p5, %p940_p13 }
  0x38   : > { %p695_p2 = por %p694_p0, %p693_p12 }
  0x39   : > { %p689_p9 = pneg %p688_p7 }
  0x3b   : > { %p696_p1 = pnand %p695_p2, %p689_p9 }
  0x3d   : > { %699 = shalt.err (!%p696_p1)
}
  0x3e   : > { %574 = dma.hbm_to_vmem [thread:$0]  (!%p924_p11), %s1139_s2, 16, %s928_s28, [#allocation6]  }
  0x3f   : > { %s700_s27 = scalar_lea.hbm %s1140_s3, 64 }
  0x40   : > { %p701_p6 = scmp.ne.s32.totalorder %s1140_s3, %s700_s27  ;;  %p707_p5 = scmp.lt.u32.totalorder %s700_s27, %s1140_s3 }
  0x42   : > { %p703_p10 = pnand %p701_p6, %p940_p13 }
  0x44   : > { %p704_p3 = pneg %p703_p10 }
  0x46   : > { %p709_p7 = pnand %p707_p5, %p704_p3 }
  0x48   : > { %712 = shalt.err (!%p709_p7)
}
  0x49   : > { %s713_s8 = scalar_lea.vmem %s180_s30, 64  ;;  %p721_p2 = scmp.lt.s32.totalorder %s180_s30, %s180_s30 }
  0x4a   : > { %p714_p9 = scmp.ne.s32.totalorder %s180_s30, %s713_s8  ;;  %p722_p1 = scmp.lt.s32.totalorder %s713_s8, %s713_s8 }
  0x4c   : > { %p716_p12 = pnand %p714_p9, %p940_p13  ;;  %p723_p4 = por %p722_p1, %p721_p2 }
  0x4e   : > { %p717_p0 = pneg %p716_p12 }
  0x50   : > { %p724_p8 = pnand %p723_p4, %p717_p0 }
  0x52   : > { %727 = shalt.err (!%p724_p8)
}
  0x53   : > { %577 = dma.hbm_to_vmem [thread:$0]  (!%p924_p11), %s1140_s3, 64, %s180_s30, [#allocation9]  }
  0x54   : > { %s1005_s10 = sadd.s32 1, %s832_s18   ;;  %s29_s26 = sadd.s32 1, %s828_s17 }
  0x55   : > { %s26_s11 = ssub.s32 %s832_s18, %s1005_s10  ;;  %p36_p8 = scmp.ne.s32.totalorder %s828_s17, %s824_s16 }
  0x56   : > { %p27_p4 = scmp.eq.s32.totalorder %s26_s11, 0  ;;  %p37_p13 = scmp.eq.s32.totalorder %s832_s18, 0 }
  0x57   : > { %p589_p6 = scmp.lt.s32.totalorder %s832_s18, 2  ;;  %p1150_p3 = scmp.eq.s32.totalorder %s894_s19, 1 }
  0x58   : > { %s1015_s25 = scalar_select %p27_p4, %s828_s17, %s29_s26  }
  0x59   : > { %p38_p10 = por %p37_p13, %p36_p8  ;;  %p1019_p5 = por %p1150_p3, %p36_p8 }
  0x5a   : > { %s190_s13 = sand.u32 1, %s828_s17   ;;  %s527_s14 = sshll.u32 %s832_s18, 6 }
  0x5b   : > { %s505_s30 = sshll.u32 %s190_s13, 2  ;;  %s1028_s27 = scalar_lea.hbm %s1137_s0, %s527_s14 }
  0x5c   : > { %s194_s29 = scalar_lea.vmem [#allocation2], %s505_s30  ;;  %p1030_p11 = pnand %p589_p6, %p38_p10 }
  0x5d   : > { %s201_s5 = sshll.u32 %s194_s29, 4  ;;  %s1036_s7 = scalar_lea.sflag [#allocation3], %s190_s13  ;;  %s1034_s5 = int_to_ptr.vmem [resolvable:$true] %s201_s5 }
  0x5e   : > { %s728_s8 = scalar_lea.hbm %s1028_s27, 64  ;;  %p730_p9 = pneg %p1030_p11 }
  0x5f   : > { %p729_p7 = scmp.ne.s32.totalorder %s1028_s27, %s728_s8  ;;  %s733_s11 = scalar_lea.hbm %s1137_s0, 128 }
  0x60   : > { %p734_p2 = scmp.lt.u32.totalorder %s1028_s27, %s1137_s0  ;;  %p735_p1 = scmp.lt.u32.totalorder %s733_s11, %s728_s8 }
  0x61   : > { %p731_p12 = pnand %p730_p9, %p729_p7  ;;  %p737_p8 = scmp.lt.u32.totalorder %s728_s8, %s1028_s27 }
  0x62   : > { %p736_p4 = por %p735_p1, %p734_p2 }
  0x63   : > { %p732_p0 = pneg %p731_p12 }
  0x64   : > { %p738_p13 = por %p737_p8, %p736_p4 }
  0x66   : > { %p739_p6 = pnand %p738_p13, %p732_p0 }
  0x68   : > { %742 = shalt.err (!%p739_p6)
}
  0x69   : > { %s743_s13 = scalar_lea.vmem %s1034_s5, 64  ;;  %s839_s30 = smov [#allocation2]  }
  0x6a   : > { %p744_p10 = scmp.ne.s32.totalorder %s1034_s5, %s743_s13  ;;  %s748_s20 = sshll.u32 %s839_s30, 4  ;;  %s749_s20 = int_to_ptr.vmem [resolvable:$false] %s748_s20 }
  0x6b   : > { %s750_s24 = scalar_lea.vmem %s749_s20, 128  ;;  %p751_p12 = scmp.lt.s32.totalorder %s1034_s5, %s749_s20 }
  0x6c   : > { %p746_p3 = pnand %p744_p10, %p730_p9  ;;  %p752_p2 = scmp.lt.s32.totalorder %s750_s24, %s743_s13 }
  0x6e   : > { %p747_p7 = pneg %p746_p3  ;;  %p753_p1 = por %p752_p2, %p751_p12 }
  0x70   : > { %p754_p4 = pnand %p753_p1, %p747_p7 }
  0x72   : > { %757 = shalt.err (!%p754_p4)
}
  0x73   : > { %s840_s29 = smov 32   ;;  %s841_s8 = smov 2  }
  0x74   : > { %581 = dma.hbm_to_vmem [thread:$0]  (!%p1030_p11), %s1028_s27, 64, %s1034_s5, %s1036_s7, %s840_s29, %s840_s29, %s841_s8  }
  0x75   : > { %p1153_p9 = scmp.ne.s32.totalorder %s1147_s23, 0 }
  0x76   : > { %s1067_s28 = sand.u32 (!%p1153_p9), 1, %s824_s16   ;;  %p1154_p0 = scmp.ne.s32.totalorder (!%p1153_p9), %s1145_s21, 0 }
  0x77   : > { %213 = sbr.rel (%p1153_p9) target bundleno = 394 (0x18a), region = 36  ;;  %s509_s9 = sshll.u32 (!%p1153_p9), %s1067_s28, 2 }
  0x78   : > { %s216_s11 = scalar_lea.sflag (!%p1153_p9), [#allocation3], %s1067_s28  ;;  %s219_s26 = scalar_lea.vmem (!%p1153_p9), [#allocation2], %s509_s9 }
  0x7e   : > { %803 = dma.done.wait (%p1154_p0), %s216_s11, 64  }
  0x7f   : > { %805 = vsyncadd (%p1154_p0), %s216_s11, 4294967232  ;;  %p1155_p11 = scmp.eq.s32.totalorder %s894_s19, 0 }
  0x81   : > { %807 = dma.done.wait (%p1155_p11), [#allocation6], 784   ;;  %p1156_p8 = pmov %p1155_p11 }
  0x83   : > { %809 = vsyncadd (%p1156_p8), [#allocation6], 4294966512  ;;  %p1157_p13 = pmov %p1156_p8 }
  0x84   : > { %p1158_p6 = pmov %p1156_p8 }
  0x85   : > { %811 = dma.done.wait (%p1157_p13), [#allocation9], 64  }
  0x86   : > { %813 = vsyncadd (%p1158_p6), [#allocation9], 4294967232  ;;  %v842_v0 = vmov 0.0   ;;  %vm843_vm0 = vmmov 0   ;;  %v638_v1 = vld [vmem:[#allocation5] sm:$0xff]   ;;  %v639_v2 = vld [vmem:[#allocation5 + $0x8] sm:$0xff]   ;;  %v279_v6 = vlaneseq }
  0x87   : > { %536 = vmatprep.subr.bf16.mxu0 %v842_v0  ;;  %548 = vmatprep.mubr.msk.bf16.mxu0 %vm843_vm0, %v842_v0  ;;  %v640_v3 = vld [vmem:[#allocation5 + $0x10] sm:$0xff]   ;;  %v844_v4 = vmov 1983009808   ;;  %v641_v7 = vld [vmem:[#allocation5 + $0x18] sm:$0xff]   ;;  %v642_v10 = vld [vmem:[#allocation5 + $0x20] sm:$0xff]   ;;  %vm319_vm1 = vcmask 785408  }
  0x88   : > { %537 = vmatpush3.bf16.msra.mxu0 %v638_v1  ;;  %v277_v5 = vunpack.c.l.s4 %v844_v4  ;;  %v280_v9 = vshrl.u32 %v279_v6, 7  ;;  %v259_v11 = vld [vmem:[%s219_s26] sm:$0x3]  ;;  %v260_v12 = vld [vmem:[%s219_s26 + $0x2] sm:$0x3]  ;;  %v643_v15 = vld [vmem:[#allocation5 + $0x28] sm:$0xff]  }
  0x89   : > { %538 = vmatprep.subr.bf16.mxu0 %v842_v0  ;;  %v275_v13 = vcombine.low %v259_v11, %v260_v12  ;;  %v521_v17 = vld [vmem:[#allocation7] ss:$0 sm:$0xff]  ;;  %v375_v19 = vld [vmem:[#allocation8] sm:$0xf]  ;;  %s528_s21 = sshll.u32 %s894_s19, 6  ;;  %s255_s23 = scalar_lea.vmem [#allocation10], %s509_s9 }
  0x8a   : > { %v278_v8 = vunpack.c.0.s8 %v277_v5  ;;  %s397_s27 = sshll.u32 %s255_s23, 4  ;;  %vm380_vm2 = vcmask 254976   ;;  %s1091_s7 = scalar_lea.hbm %s1141_s4, %s528_s21  ;;  %s1093_s27 = int_to_ptr.vmem [resolvable:$true] %s397_s27 }
  0x8b   : > { %s384_s19 = scalar_lea.sflag [#allocation4], %s1067_s28  ;;  %s758_s14 = scalar_lea.vmem %s1093_s27, 64 }
  0x8c   : > { %539 = vmatpush3.bf16.msra.mxu0 %v639_v2  ;;  %v281_v14 = vsub.s32 %v278_v8, %v280_v9  ;;  %p759_p10 = scmp.ne.s32.totalorder %s1093_s27, %s758_s14  ;;  %s845_s13 = smov [#allocation10]  }
  0x8d   : > { %540 = vmatprep.subr.bf16.mxu0 %v842_v0  ;;  %s762_s30 = sshll.u32 %s845_s13, 4  ;;  %s763_s30 = int_to_ptr.vmem [resolvable:$false] %s762_s30 }
  0x8e   : > { %v282_v16 = vrot.slane %v275_v13, %v281_v14  ;;  %p760_p3 = pnand %p759_p10, %p1019_p5  ;;  %s764_s20 = scalar_lea.vmem %s763_s30, 128 }
  0x8f   : > { %p765_p12 = scmp.lt.s32.totalorder %s1093_s27, %s763_s30  ;;  %p766_p2 = scmp.lt.s32.totalorder %s764_s20, %s758_s14 }
  0x90   : > { %541 = vmatpush3.bf16.msra.mxu0 %v640_v3  ;;  %p761_p7 = pneg %p760_p3 }
  0x91   : > { %542 = vmatprep.subr.bf16.mxu0 %v842_v0  ;;  %p767_p1 = por %p766_p2, %p765_p12 }
  0x93   : > { %p768_p4 = pnand %p767_p1, %p761_p7 }
  0x94   : > { %543 = vmatpush3.bf16.msra.mxu0 %v641_v7 }
  0x95   : > { %544 = vmatprep.subr.bf16.mxu0 %v842_v0 }
  0x98   : > { %545 = vmatpush3.bf16.msra.mxu0 %v642_v10 }
  0x99   : > { %546 = vmatprep.subr.bf16.mxu0 %v842_v0 }
  0x9c   : > { %547 = vmatpush3.bf16.msra.mxu0 %v643_v15 }
  0x9f   : > { %549 = vmatmul.mubr.msk.bf16.vlgmr.msra.gmra.mrb[0].mxu0 %vm319_vm1, %v282_v16 }
 0x172   : > { %v357_v18 = vpop.f32.mrb[0].mxu0 }
 0x173   : > { %v364_v20 = vcombine.high %v357_v18, %v357_v18  ;;  %v373_v21 = vadd.f32 %v521_v17, %v357_v18  ;;  %v550_v22 = vpop.f32.mrb[1].mxu0 }
 0x174   : > { %v360_v23 = vpop.f32.mrb[2].mxu0 }
 0x175   : > { %v374_v24 = vadd.f32 %v521_v17, %v364_v20  ;;  %v376_v25 = vadd.f32 %v375_v19, %v373_v21  ;;  %v551_v26 = vpop.f32.mrb[3].mxu0 }
 0x177   : > { %v377_v27 = vadd.f32 %v375_v19, %v374_v24  ;;  %v378_v28 = vpack.c.bf16 %v376_v25, %v376_v25 }
 0x179   : > { %v379_v29 = vpack.c.bf16 %v377_v27, %v377_v27  ;;  %381 = vst.msk [vmem:[%s255_s23] sm:$0x3] %vm380_vm2, %v378_v28 }
 0x17b   : > { %382 = vst.msk [vmem:[%s255_s23 + $0x2] sm:$0x3] %vm380_vm2, %v379_v29 }
 0x17c   : > { %771 = shalt.err (!%p768_p4)
}
 0x17d   : > { %s772_s24 = scalar_lea.hbm %s1091_s7, 64  ;;  %s776_s9 = scalar_lea.hbm %s1141_s4, 128 }
 0x17e   : > { %p773_p9 = scmp.ne.s32.totalorder %s1091_s7, %s772_s24  ;;  %p777_p8 = scmp.lt.u32.totalorder %s1091_s7, %s1141_s4 }
 0x17f   : > { %p778_p13 = scmp.lt.u32.totalorder %s776_s9, %s772_s24  ;;  %p780_p10 = scmp.lt.u32.totalorder %s772_s24, %s1091_s7 }
 0x180   : > { %p774_p0 = pnand %p773_p9, %p1019_p5 }
 0x181   : > { %p779_p6 = por %p778_p13, %p777_p8 }
 0x182   : > { %p775_p11 = pneg %p774_p0 }
 0x183   : > { %p781_p3 = por %p780_p10, %p779_p6 }
 0x185   : > { %p782_p7 = pnand %p781_p3, %p775_p11 }
 0x187   : > { %785 = shalt.err (!%p782_p7)
}
 0x188   : > { %s846_s21 = smov 32   ;;  %s847_s23 = smov 2  }
 0x189   : > { %566 = dma.vmem_to_hbm [thread:$0]  (%p1019_p5), %s1093_s27, 64, %s1091_s7, %s384_s19, %s846_s21, %s846_s21, %s847_s23  }
 0x18a PF: > { %s412_s5 = sand.u32 1, %s820_s15   ;;  %p1159_p12 = scmp.ne.s32.totalorder %s1146_s22, 0 }
 0x18b   : > { %p1160_p2 = scmp.ge.s32.totalorder %s832_s18, 2  ;;  %s413_s6 = scalar_lea.sflag [#allocation4], %s412_s5 }
 0x18d   : > { %p583_p1 = pnand %p1160_p2, %p1159_p12 }
 0x18f   : > { %815 = dma.done.wait (!%p583_p1), %s413_s6, 64  }
 0x190   : > { %817 = vsyncadd (!%p583_p1), %s413_s6, 4294967232  ;;  %p19_p4 = scmp.ge.s32.totalorder %s1005_s10, 4   ;;  %s1161_s15 = smov %s824_s16 }
 0x191   : > { %s1162_s16 = smov %s828_s17  ;;  %s1163_s17 = smov %s1015_s25 }
 0x192   : > { %s1164_s18 = smov %s1005_s10  ;;  %21 = sbr.rel (!%p19_p4) target bundleno = 7 (0x7), region = 93 }
 0x199   :  { %418 = vsyncpa [#allocation3], 1 }
 0x19a   :  { %420 = vsyncpa [#allocation3 + $0x1], 1 }
 0x19b   :  { %421 = vsyncpa [#allocation6], 1 }
 0x19c   :  { %422 = vsyncpa [#allocation9], 1 }
 0x19d   :  { %423 = vsyncpa [#allocation4], 1 }
 0x19e   :  { %425 = vsyncpa [#allocation4 + $0x1], 1 }

// kernel: vivit_forward.7
= control target key start
LH: loop header
LB: loop body
LE: loop exit
PB: predicated region body
PF: predicated region fallthrough
CT: control target
= control target key end

     0   :  { %11 = vsyncpa [#allocation3], 0  ;;  %s3186_s0 = inlined_call_operand.hbm [shape: bf16[4,4,32], index: 0, kind: input, shape index: {}]   ;;  %s3187_s1 = inlined_call_operand.hbm [shape: f32[1,32], index: 1, kind: input, shape index: {}]   ;;  %s3188_s2 = inlined_call_operand.hbm [shape: f32[1,32], index: 2, kind: input, shape index: {}]   ;;  %s3189_s3 = inlined_call_operand.hbm [shape: bf16[32,96], index: 3, kind: input, shape index: {}]   ;;  %s3190_s4 = inlined_call_operand.hbm [shape: bf16[32,32], index: 4, kind: input, shape index: {}]   ;;  %s3191_s5 = inlined_call_operand.hbm [shape: f32[1,32], index: 5, kind: input, shape index: {}]   ;;  %s3192_s6 = inlined_call_operand.hbm [shape: bf16[4,4,32], index: 6, kind: output, shape index: {}]  }
   0x1   :  { %13 = vsyncpa [#allocation3 + $0x1], 0 }
   0x2   :  { %14 = vsyncpa [#allocation6], 0 }
   0x3   :  { %15 = vsyncpa [#allocation9], 0 }
   0x4   :  { %16 = vsyncpa [#allocation12], 0 }
   0x5   :  { %17 = vsyncpa [#allocation4], 0 }
   0x6   :  { %19 = vsyncpa [#allocation4 + $0x1], 0  ;;  %s2709_s21 = smov 0   ;;  %s2711_s22 = smov 0  }
   0x7   :  { %s2713_s23 = smov 0   ;;  %s2715_s24 = smov 0  }
   0x8 LB: > { %s2645_s25 = smov [#allocation5]   ;;  %s2730_s27 = sadd.s32 4294967295, %s2643_s24   ;;  %s2643_s24 = sphi %s2715_s24, %s3217_s24   ;;  %s2639_s23 = sphi %s2713_s23, %s3216_s23   ;;  %s2635_s22 = sphi %s2711_s22, %s3215_s22   ;;  %s2631_s21 = sphi %s2709_s21, %s3214_s21  }
   0x9   : > { %s200_s26 = sshll.u32 %s2645_s25, 4  ;;  %p2036_p0 = scmp.ge.s32.totalorder %s2643_s24, 1  ;;  %s2735_s26 = int_to_ptr.vmem [resolvable:$true] %s200_s26 }
   0xa   : > { %p3193_p1 = scmp.eq.s32.totalorder %s2730_s27, 0  ;;  %p187_p2 = scmp.lt.s32.totalorder %s2643_s24, 3 }
   0xb   : > { %s2646_s29 = smov [#allocation8]   ;;  %s2647_s8 = smov [#allocation7]  }
   0xc   : > { %p2737_p3 = pnand %p2036_p0, %p187_p2  ;;  %s221_s30 = sshll.u32 %s2646_s29, 4  ;;  %s2744_s30 = int_to_ptr.vmem [resolvable:$true] %s221_s30 }
   0xd   : > { %s211_s9 = sshll.u32 %s2647_s8, 4  ;;  %s2395_s12 = scalar_lea.hbm %s3187_s1, 16  ;;  %s2752_s9 = int_to_ptr.vmem [resolvable:$true] %s211_s9 }
   0xe   : > { %s3196_s28 = scalar_select %p2737_p3, 1, 0 }
   0xf   : > { %p2260_p5 = pneg %p2737_p3  ;;  %p2396_p7 = scmp.ne.s32.totalorder %s3187_s1, %s2395_s12 }
  0x10   : > { %p2402_p11 = scmp.lt.u32.totalorder %s2395_s12, %s3187_s1 }
  0x11   : > { %p2748_p6 = pnand %p2260_p5, %p3193_p1 }
  0x13   : > { %p2762_p8 = pneg %p2748_p6 }
  0x15   : > { %p2398_p9 = pnand %p2762_p8, %p2396_p7 }
  0x17   : > { %p2399_p10 = pneg %p2398_p9 }
  0x19   : > { %p2404_p12 = pnand %p2402_p11, %p2399_p10 }
  0x1b   : > { %2407 = shalt.err (!%p2404_p12)
}
  0x1c   : > { %s2408_s18 = scalar_lea.vmem %s2735_s26, 16  ;;  %s2415_s19 = scalar_lea.vmem %s2735_s26, 32 }
  0x1d   : > { %p2409_p13 = scmp.ne.s32.totalorder %s2735_s26, %s2408_s18  ;;  %p2416_p5 = scmp.lt.s32.totalorder %s2735_s26, %s2735_s26 }
  0x1e   : > { %p2417_p7 = scmp.lt.s32.totalorder %s2415_s19, %s2408_s18 }
  0x1f   : > { %p2411_p0 = pnand %p2409_p13, %p2762_p8 }
  0x20   : > { %p2418_p9 = por %p2417_p7, %p2416_p5 }
  0x21   : > { %p2412_p2 = pneg %p2411_p0 }
  0x23   : > { %p2419_p4 = pnand %p2418_p9, %p2412_p2 }
  0x25   : > { %2422 = shalt.err (!%p2419_p4)
}
  0x26   : > { %2263 = dma.hbm_to_vmem [thread:$0]  (!%p2748_p6), %s3187_s1, 16, %s2735_s26, [#allocation6]  }
  0x27   : > { %s2423_s10 = scalar_lea.hbm %s3189_s3, 256 }
  0x28   : > { %p2424_p10 = scmp.ne.s32.totalorder %s3189_s3, %s2423_s10  ;;  %p2430_p4 = scmp.lt.u32.totalorder %s2423_s10, %s3189_s3 }
  0x2a   : > { %p2426_p11 = pnand %p2424_p10, %p2762_p8 }
  0x2c   : > { %p2427_p12 = pneg %p2426_p11 }
  0x2e   : > { %p2432_p13 = pnand %p2430_p4, %p2427_p12 }
  0x30   : > { %2435 = shalt.err (!%p2432_p13)
}
  0x31   : > { %s2436_s26 = scalar_lea.vmem %s2744_s30, 256  ;;  %p2444_p7 = scmp.lt.s32.totalorder %s2744_s30, %s2744_s30 }
  0x32   : > { %p2437_p0 = scmp.ne.s32.totalorder %s2744_s30, %s2436_s26  ;;  %p2445_p9 = scmp.lt.s32.totalorder %s2436_s26, %s2436_s26 }
  0x34   : > { %p2439_p2 = pnand %p2437_p0, %p2762_p8  ;;  %p2446_p10 = por %p2445_p9, %p2444_p7 }
  0x36   : > { %p2440_p5 = pneg %p2439_p2 }
  0x38   : > { %p2447_p11 = pnand %p2446_p10, %p2440_p5 }
  0x3a   : > { %2450 = shalt.err (!%p2447_p11)
}
  0x3b   : > { %s2648_s16 = smov 64   ;;  %s2649_s17 = smov 4  }
  0x3c   : > { %2269 = dma.hbm_to_vmem [thread:$0]  (!%p2748_p6), %s3189_s3, 256, %s2744_s30, [#allocation9], %s2648_s16, %s2648_s16, %s2649_s17  }
  0x3d   : > { %s2451_s29 = scalar_lea.hbm %s3188_s2, 16 }
  0x3e   : > { %p2452_p12 = scmp.ne.s32.totalorder %s3188_s2, %s2451_s29  ;;  %p2458_p0 = scmp.lt.u32.totalorder %s2451_s29, %s3188_s2 }
  0x40   : > { %p2454_p4 = pnand %p2452_p12, %p2762_p8 }
  0x42   : > { %p2455_p13 = pneg %p2454_p4 }
  0x44   : > { %p2460_p2 = pnand %p2458_p0, %p2455_p13 }
  0x46   : > { %2463 = shalt.err (!%p2460_p2)
}
  0x47   : > { %s2464_s30 = scalar_lea.vmem %s2752_s9, 16  ;;  %s2471_s13 = scalar_lea.vmem %s2752_s9, 32 }
  0x48   : > { %p2465_p5 = scmp.ne.s32.totalorder %s2752_s9, %s2464_s30  ;;  %p2472_p10 = scmp.lt.s32.totalorder %s2752_s9, %s2752_s9 }
  0x49   : > { %p2473_p11 = scmp.lt.s32.totalorder %s2471_s13, %s2464_s30 }
  0x4a   : > { %p2467_p7 = pnand %p2465_p5, %p2762_p8 }
  0x4b   : > { %p2474_p12 = por %p2473_p11, %p2472_p10 }
  0x4c   : > { %p2468_p9 = pneg %p2467_p7 }
  0x4e   : > { %p2475_p4 = pnand %p2474_p12, %p2468_p9 }
  0x50   : > { %2478 = shalt.err (!%p2475_p4)
}
  0x51   : > { %2266 = dma.hbm_to_vmem [thread:$0]  (!%p2748_p6), %s3188_s2, 16, %s2752_s9, [#allocation6]  }
  0x52   : > { %s2650_s18 = smov [#allocation10]   ;;  %s2651_s20 = smov [#allocation11]  }
  0x53   : > { %s234_s19 = sshll.u32 %s2650_s18, 4  ;;  %s248_s25 = sshll.u32 %s2651_s20, 4  ;;  %s235_s19 = int_to_ptr.vmem [resolvable:$true] %s234_s19  ;;  %s249_s25 = int_to_ptr.vmem [resolvable:$true] %s248_s25 }
  0x54   : > { %s2479_s10 = scalar_lea.hbm %s3190_s4, 256 }
  0x55   : > { %p2480_p13 = scmp.ne.s32.totalorder %s3190_s4, %s2479_s10  ;;  %p2486_p5 = scmp.lt.u32.totalorder %s2479_s10, %s3190_s4 }
  0x57   : > { %p2482_p0 = pnand %p2480_p13, %p2762_p8 }
  0x59   : > { %p2483_p2 = pneg %p2482_p0 }
  0x5b   : > { %p2488_p7 = pnand %p2486_p5, %p2483_p2 }
  0x5d   : > { %2491 = shalt.err (!%p2488_p7)
}
  0x5e   : > { %s2492_s9 = scalar_lea.vmem %s235_s19, 256  ;;  %p2500_p12 = scmp.lt.s32.totalorder %s235_s19, %s235_s19 }
  0x5f   : > { %p2493_p9 = scmp.ne.s32.totalorder %s235_s19, %s2492_s9  ;;  %p2501_p4 = scmp.lt.s32.totalorder %s2492_s9, %s2492_s9 }
  0x61   : > { %p2495_p10 = pnand %p2493_p9, %p2762_p8  ;;  %p2502_p1 = por %p2501_p4, %p2500_p12 }
  0x63   : > { %p2496_p11 = pneg %p2495_p10 }
  0x65   : > { %p2503_p3 = pnand %p2502_p1, %p2496_p11 }
  0x67   : > { %2506 = shalt.err (!%p2503_p3)
}
  0x68   : > { %2272 = dma.hbm_to_vmem [thread:$0]  (!%p2748_p6), %s3190_s4, 256, %s235_s19, [#allocation9], %s2648_s16, %s2648_s16, %s2649_s17  }
  0x69   : > { %s2507_s29 = scalar_lea.hbm %s3191_s5, 16 }
  0x6a   : > { %p2508_p1 = scmp.ne.s32.totalorder %s3191_s5, %s2507_s29  ;;  %p2514_p0 = scmp.lt.u32.totalorder %s2507_s29, %s3191_s5 }
  0x6c   : > { %p2510_p3 = pnand %p2508_p1, %p2762_p8 }
  0x6e   : > { %p2511_p13 = pneg %p2510_p3 }
  0x70   : > { %p2516_p2 = pnand %p2514_p0, %p2511_p13 }
  0x72   : > { %2519 = shalt.err (!%p2516_p2)
}
  0x73   : > { %s2520_s30 = scalar_lea.vmem %s249_s25, 16  ;;  %s2527_s16 = scalar_lea.vmem %s249_s25, 32 }
  0x74   : > { %p2521_p5 = scmp.ne.s32.totalorder %s249_s25, %s2520_s30  ;;  %p2528_p10 = scmp.lt.s32.totalorder %s249_s25, %s249_s25 }
  0x75   : > { %p2529_p11 = scmp.lt.s32.totalorder %s2527_s16, %s2520_s30 }
  0x76   : > { %p2523_p7 = pnand %p2521_p5, %p2762_p8 }
  0x77   : > { %p2530_p12 = por %p2529_p11, %p2528_p10 }
  0x78   : > { %p2524_p9 = pneg %p2523_p7 }
  0x7a   : > { %p2531_p4 = pnand %p2530_p12, %p2524_p9 }
  0x7c   : > { %2534 = shalt.err (!%p2531_p4)
}
  0x7d   : > { %2275 = dma.hbm_to_vmem [thread:$0]  (!%p2748_p6), %s3191_s5, 16, %s249_s25, [#allocation12]  }
  0x7e   : > { %s2035_s15 = sadd.s32 4294967294, %s2643_s24   ;;  %s2875_s7 = sadd.s32 1, %s2643_s24  }
  0x7f   : > { %s32_s13 = sadd.s32 1, %s2639_s23  ;;  %s29_s9 = ssub.s32 %s2643_s24, %s2875_s7 }
  0x80   : > { %p39_p8 = scmp.ne.s32.totalorder %s2639_s23, %s2635_s22  ;;  %p30_p1 = scmp.eq.s32.totalorder %s29_s9, 0 }
  0x81   : > { %p40_p3 = scmp.eq.s32.totalorder %s2643_s24, 0  ;;  %p45_p13 = scmp.ne.s32.totalorder %s2635_s22, %s2631_s21 }
  0x82   : > { %p174_p0 = scmp.eq.s32.totalorder %s2730_s27, 1  ;;  %p3199_p5 = scmp.eq.s32.totalorder %s2730_s27, 0 }
  0x83   : > { %s2887_s14 = scalar_select %p30_p1, %s2639_s23, %s32_s13  }
  0x84   : > { %p41_p2 = por %p40_p3, %p39_p8  ;;  %p2891_p7 = por %p3199_p5, %p45_p13 }
  0x85   : > { %p2895_p6 = por %p174_p0, %p39_p8  ;;  %p180_p9 = scmp.eq.s32.totalorder %s2035_s15, 1 }
  0x86   : > { %p2289_p10 = scmp.lt.s32.totalorder %s2643_s24, 2  ;;  %s259_s18 = sand.u32 1, %s2639_s23  }
  0x87   : > { %s3201_s25 = scalar_select %p2895_p6, 1, 0 }
  0x88   : > { %p2901_p11 = por %p180_p9, %p45_p13  ;;  %s2043_s29 = sshll.u32 %s259_s18, 2 }
  0x89   : > { %s2100_s8 = sshll.u32 %s2643_s24, 6  ;;  %s263_s30 = scalar_lea.vmem [#allocation2], %s2043_s29 }
  0x8a   : > { %s3202_s20 = scalar_select %p2901_p11, 1, 0 }
  0x8b   : > { %s2909_s12 = scalar_lea.hbm %s3186_s0, %s2100_s8  ;;  %s270_s16 = sshll.u32 %s263_s30, 4  ;;  %s2915_s16 = int_to_ptr.vmem [resolvable:$true] %s270_s16 }
  0x8c   : > { %p2911_p12 = pnand %p2289_p10, %p41_p2  ;;  %s2917_s19 = scalar_lea.sflag [#allocation3], %s259_s18 }
  0x8d   : > { %s2535_s15 = scalar_lea.hbm %s2909_s12, 64  ;;  %s2540_s29 = scalar_lea.hbm %s3186_s0, 128 }
  0x8e   : > { %p2536_p4 = scmp.ne.s32.totalorder %s2909_s12, %s2535_s15  ;;  %p2537_p8 = pneg %p2911_p12 }
  0x8f   : > { %p2541_p13 = scmp.lt.u32.totalorder %s2909_s12, %s3186_s0  ;;  %p2542_p0 = scmp.lt.u32.totalorder %s2540_s29, %s2535_s15 }
  0x90   : > { %p2538_p1 = pnand %p2537_p8, %p2536_p4  ;;  %p2544_p5 = scmp.lt.u32.totalorder %s2535_s15, %s2909_s12 }
  0x91   : > { %p2543_p2 = por %p2542_p0, %p2541_p13 }
  0x92   : > { %p2539_p3 = pneg %p2538_p1 }
  0x93   : > { %p2545_p9 = por %p2544_p5, %p2543_p2 }
  0x95   : > { %p2546_p10 = pnand %p2545_p9, %p2539_p3 }
  0x97   : > { %2549 = shalt.err (!%p2546_p10)
}
  0x98   : > { %s2550_s18 = scalar_lea.vmem %s2915_s16, 64  ;;  %s2652_s11 = smov [#allocation2]  }
  0x99   : > { %p2551_p4 = scmp.ne.s32.totalorder %s2915_s16, %s2550_s18  ;;  %s2555_s30 = sshll.u32 %s2652_s11, 4  ;;  %s2556_s30 = int_to_ptr.vmem [resolvable:$false] %s2555_s30 }
  0x9a   : > { %s2557_s13 = scalar_lea.vmem %s2556_s30, 128  ;;  %p2558_p6 = scmp.lt.s32.totalorder %s2915_s16, %s2556_s30 }
  0x9b   : > { %p2553_p1 = pnand %p2551_p4, %p2537_p8  ;;  %p2559_p13 = scmp.lt.s32.totalorder %s2557_s13, %s2550_s18 }
  0x9d   : > { %p2554_p11 = pneg %p2553_p1  ;;  %p2560_p0 = por %p2559_p13, %p2558_p6 }
  0x9f   : > { %p2561_p2 = pnand %p2560_p0, %p2554_p11 }
  0xa1   : > { %2564 = shalt.err (!%p2561_p2)
}
  0xa2   : > { %s2653_s15 = smov 32   ;;  %s2654_s9 = smov 2  }
  0xa3   : > { %2279 = dma.hbm_to_vmem [thread:$0]  (!%p2911_p12), %s2909_s12, 64, %s2915_s16, %s2917_s19, %s2653_s15, %s2653_s15, %s2654_s9  }
  0xa4   : > { %p3204_p8 = scmp.ne.s32.totalorder %s3196_s28, 0 }
  0xa5   : > { %s2948_s29 = sand.u32 (!%p3204_p8), 1, %s2635_s22  }
  0xa6   : > { %282 = sbr.rel (%p3204_p8) target bundleno = 3525 (0xdc5), region = 44  ;;  %s2047_s8 = sshll.u32 (!%p3204_p8), %s2948_s29, 2 }
  0xa7   : > { %s285_s10 = scalar_lea.sflag (!%p3204_p8), [#allocation3], %s2948_s29  ;;  %s288_s18 = scalar_lea.vmem (!%p3204_p8), [#allocation2], %s2047_s8 }
  0xad   : > { %2610 = dma.done.wait (%p2891_p7), %s285_s10, 64  }
  0xae   : > { %2612 = vsyncadd (%p2891_p7), %s285_s10, 4294967232  ;;  %p3205_p6 = scmp.eq.s32.totalorder %s2730_s27, 0 }
  0xb0   : > { %2614 = dma.done.wait (%p3205_p6), [#allocation6], 32   ;;  %p3206_p11 = pmov %p3205_p6 }
  0xb1   : > { %p3207_p12 = pmov %p3205_p6 }
  0xb2   : > { %2616 = vsyncadd (%p3206_p11), [#allocation6], 4294967264 }
  0xb3   : > { %2618 = dma.done.wait (%p3207_p12), [#allocation9], 512   ;;  %p3208_p3 = pmov %p3205_p6 }
  0xb5   : > { %2620 = vsyncadd (%p3208_p3), [#allocation9], 4294966784  ;;  %p3209_p5 = pmov %p3208_p3 }
  0xb6   : > { %p3210_p9 = pmov %p3208_p3 }
  0xb7   : > { %2622 = dma.done.wait (%p3209_p5), [#allocation12], 16  }
  0xb8   : > { %2624 = vsyncadd (%p3210_p9), [#allocation12], 4294967280  ;;  %vm355_vm0 = vcmask 257024   ;;  %v340_v0 = vld [vmem:[%s288_s18] sm:$0x3]  ;;  %v2355_v16 = vld [vmem:[#allocation8] sm:$0xff]  }
  0xb9   : > { %v341_v1 = vld [vmem:[%s288_s18 + $0x2] sm:$0x3]  ;;  %v2970_v2 = vunpack.c.l.bf16 %v340_v0  ;;  %v2655_v17 = vmov 0.0   ;;  %vm2656_vm1 = vmmov 0   ;;  %v2356_v18 = vld [vmem:[#allocation8 + $0x8] sm:$0xff]   ;;  %vm416_vm2 = vcmask 261120  }
  0xba   : > { %v2972_v3 = vunpack.c.l.bf16 %v341_v1  ;;  %2140 = vmatprep.subr.bf16.mxu0 %v2655_v17  ;;  %2144 = vmatprep.mubr.msk.bf16.mxu0 %vm2656_vm1, %v2655_v17  ;;  %v2054_v27 = vld [vmem:[#allocation5] ss:$0 sm:$0xff]  ;;  %v2055_v31 = vld [vmem:[#allocation7] ss:$0 sm:$0xff]  ;;  %s2657_s28 = smov 96   ;;  %vm464_vm3 = vcmask 64512  }
  0xbb   : > { %v356_v4 = vsel %vm355_vm0, %v2970_v2, 0.0  ;;  %2141 = vmatpush3.bf16.msra.mxu0 %v2355_v16  ;;  %2153 = vmatprep.subr.mxu1 %v2655_v17  ;;  %vm615_vm4 = vcmask 27648   ;;  %s2658_s26 = smov 64   ;;  %s2659_s12 = smov 88   ;;  %vm644_vm5 = vcmask 1043456   ;;  %vm640_vm6 = vcmask 31744  }
  0xbc   : > { %357 = vadd.xlane.f32.xlu0 %v356_v4  ;;  %v359_v5 = vsel %vm355_vm0, %v2972_v3, 0.0  ;;  %2142 = vmatprep.subr.bf16.mxu0 %v2655_v17  ;;  %s2660_s16 = smov 120   ;;  %s2661_s17 = smov 56   ;;  %vm1816_vm7 = vcmask 130048   ;;  %vm1819_vm8 = vcmask 195584   ;;  %vm1897_vm9 = vcmask 254976  }
  0xbd   : > { %2155 = vmatprep.mubr.msk.f32.mxu1 %vm2656_vm1, %v2655_v17  ;;  %s2662_s19 = smov 80   ;;  %s2663_s11 = smov 112  }
  0xbe   : > { %s2664_s30 = smov 48   ;;  %s2665_s13 = smov 72  }
  0xbf   : > { %2143 = vmatpush3.bf16.msra.mxu0 %v2356_v18  ;;  %s2666_s15 = smov 104   ;;  %s2667_s9 = smov 40  }
  0xc0   : > { %360 = vadd.xlane.f32.xlu0 %v359_v5  ;;  %2148 = vmatprep.subr.mxu0 %v2655_v17  ;;  %s2668_s10 = smov 8   ;;  %s2669_s18 = smov 16  }
  0xc1   : > { %p3211_p10 = scmp.ne.s32.totalorder %s3201_s25, 0 }
 0x149   : > { %v358_v6 = vpop.xlane.xlu0 %357 }
 0x14a   : > { %v363_v7 = vmul.f32 0.03125, %v358_v6 }
 0x14c   : > { %v365_v8 = vsub.f32 %v2970_v2, %v363_v7 }
 0x14d   : > { %v361_v9 = vpop.xlane.xlu0 %360 }
 0x14e   : > { %v364_v10 = vmul.f32 0.03125, %v361_v9  ;;  %v367_v11 = vmul.f32 %v365_v8, %v365_v8 }
 0x150   : > { %v366_v12 = vsub.f32 %v2972_v3, %v364_v10  ;;  %v369_v13 = vsel %vm355_vm0, %v367_v11, 0.0 }
 0x151   : > { %370 = vadd.xlane.f32.xlu1 %v369_v13 }
 0x152   : > { %v368_v14 = vmul.f32 %v366_v12, %v366_v12 }
 0x154   : > { %v372_v15 = vsel %vm355_vm0, %v368_v14, 0.0 }
 0x155   : > { %373 = vadd.xlane.f32.xlu1 %v372_v15 }
 0x1de   : > { %v371_v19 = vpop.xlane.xlu1 %370 }
 0x1df   : > { %v375_v20 = vmul.f32 0.03125, %v371_v19 }
 0x1e1   : > { %v377_v21 = vadd.f32 1e-05, %v375_v20 }
 0x1e2   : > { %v374_v22 = vpop.xlane.xlu1 %373 }
 0x1e3   : > { %2359 = vrsqrt.f32 %v377_v21  ;;  %v376_v23 = vmul.f32 0.03125, %v374_v22 }
 0x1e5   : > { %v378_v24 = vadd.f32 1e-05, %v376_v23 }
 0x1e7   : > { %2361 = vrsqrt.f32 %v378_v24 }
 0x1ed   : > { %v2360_v25 = vpop.eup %2359 }
 0x1ee   : > { %v381_v26 = vmul.f32 %v2360_v25, %v365_v8 }
 0x1f0   : > { %v389_v30 = vmul.f32 %v2054_v27, %v381_v26 }
 0x1f1   : > { %v2362_v28 = vpop.eup %2361 }
 0x1f2   : > { %v382_v29 = vmul.f32 %v2362_v28, %v366_v12  ;;  %v397_v33 = vadd.f32 %v2055_v31, %v389_v30 }
 0x1f4   : > { %v390_v32 = vmul.f32 %v2054_v27, %v382_v29 }
 0x1f6   : > { %v398_v34 = vadd.f32 %v2055_v31, %v390_v32 }
 0x1f8   : > { %v401_v35 = vcombine.low %v397_v33, %v398_v34 }
 0x1fa   : > { %v403_v36 = vpack.c.bf16 %v401_v35, %v401_v35 }
 0x1fc   : > { %2145 = vmatmul.mubr.msk.bf16.vlgmr.msra.gmra.mrb[0].mxu0 %vm416_vm2, %v403_v36 }
 0x1fd   : > { %2150 = vmatprep.mubr.msk.f32.mxu0 %vm2656_vm1, %v2655_v17 }
 0x2cf   : > { %v2993_v37 = vpop.f32.mrb[0].mxu0 }
 0x2d0   : > { %v2997_v38 = vcombine.high %v2993_v37, %v2993_v37  ;;  %462 = vrot.lane.b32.xlu0 %v2993_v37, %s2657_s28  ;;  %v2146_v39 = vpop.f32.mrb[1].mxu0 }
 0x2d1   : > { %v457_v40 = vpop.f32.mrb[2].mxu0 }
 0x2d2   : > { %539 = vrot.lane.b32.xlu1 %v2997_v38, %s2657_s28  ;;  %v2147_v41 = vpop.f32.mrb[3].mxu0  ;;  %s2670_s28 = smov 24  }
 0x342   : > { %v463_v42 = vpop.permute.xlu0 %462 }
 0x343   : > { %2149 = vmatpush3.xpose.msk.msra.mxu0 %vm464_vm3, %v463_v42 }
 0x344   : > { %v540_v43 = vpop.permute.xlu1 %539  ;;  %2163 = vmatprep.subr.mxu0 %v2655_v17 }
 0x345   : > { %2154 = vmatpush3.xpose.msk.msra.mxu1 %vm464_vm3, %v540_v43 }
 0x346   : > { %2151 = vmatmul.mubr.msk.f32.vlgmr.msra.gmra.mrb[4].mxu0 %vm464_vm3, %v2993_v37  ;;  %2158 = vmatprep.subr.mxu1 %v2655_v17 }
 0x347   : > { %2165 = vmatprep.mubr.msk.f32.mxu0 %vm2656_vm1, %v2655_v17 }
 0x348   : > { %2156 = vmatmul.mubr.msk.f32.vlgmr.msra.gmra.mrb[0].mxu1 %vm464_vm3, %v2997_v38 }
 0x349   : > { %2160 = vmatprep.mubr.msk.f32.mxu1 %vm2656_vm1, %v2655_v17 }
 0x419   : > { %v535_v44 = vpop.f32.mrb[4].mxu0 }
 0x41a   : > { %v2152_v45 = vpop.f32.mrb[5].mxu0  ;;  %v616_v46 = vsel %vm615_vm4, %v535_v44, -inf }
 0x41b   : > { %v611_v47 = vpop.f32.mrb[0].mxu1  ;;  %617 = vmax.xlane.f32.xlu1 %v616_v46 }
 0x41c   : > { %v2157_v48 = vpop.f32.mrb[1].mxu1  ;;  %v619_v49 = vsel %vm615_vm4, %v611_v47, -inf }
 0x41d   : > { %620 = vmax.xlane.f32.xlu0 %v619_v49 }
 0x42c   : > { %717 = vrot.lane.b32.xlu1 %v2997_v38, %s2658_s26 }
 0x430   : > { %796 = vrot.lane.b32.xlu1 %v2993_v37, %s2659_s12 }
 0x433   : > { %638 = vrot.lane.b32.xlu0 %v2993_v37, %s2658_s26  ;;  %s2101_s26 = sshll.u32 %s2730_s27, 6  ;;  %s1901_s27 = scalar_lea.sflag [#allocation4], %s2948_s29 }
 0x434   : > { %874 = vrot.lane.b32.xlu1 %v2997_v38, %s2659_s12  ;;  %s336_s12 = scalar_lea.vmem [#allocation13], %s2047_s8 }
 0x4a8   : > { %v618_v50 = vpop.xlane.xlu1 %617 }
 0x4a9   : > { %v622_v51 = vsub.f32 %v535_v44, %v618_v50 }
 0x4aa   : > { %v621_v52 = vpop.xlane.xlu0 %620 }
 0x4ab   : > { %v624_v53 = vmul.f32 1.442695, %v622_v51  ;;  %v623_v54 = vsub.f32 %v611_v47, %v621_v52 }
 0x4ac   : > { %v718_v55 = vpop.permute.xlu1 %717 }
 0x4ad   : > { %2363 = vpow2.f32 %v624_v53  ;;  %v626_v56 = vmul.f32 1.442695, %v623_v54  ;;  %2164 = vmatpush3.msk.msra.mxu0 %vm644_vm5, %v718_v55 }
 0x4ae   : > { %v639_v57 = vpop.permute.xlu0 %638  ;;  %2173 = vmatprep.subr.mxu0 %v2655_v17 }
 0x4af   : > { %2365 = vpow2.f32 %v626_v56  ;;  %2159 = vmatpush3.msk.msra.mxu1 %vm644_vm5, %v639_v57 }
 0x4b0   : > { %2168 = vmatprep.subr.mxu1 %v2655_v17  ;;  %v797_v62 = vpop.permute.xlu1 %796 }
 0x4b4   : > { %v875_v63 = vpop.permute.xlu1 %874 }
 0x4b7   : > { %v2364_v58 = vpop.eup %2363 }
 0x4b8   : > { %v628_v59 = vsel %vm615_vm4, %v2364_v58, 0.0 }
 0x4b9   : > { %v2366_v60 = vpop.eup %2365  ;;  %629 = vadd.xlane.f32.xlu0 %v628_v59 }
 0x4ba   : > { %v631_v61 = vsel %vm615_vm4, %v2366_v60, 0.0 }
 0x4bb   : > { %632 = vadd.xlane.f32.xlu1 %v631_v61 }
 0x4cc   : > { %872 = vrot.lane.b32.xlu1 %v2997_v38, %s2660_s16 }
 0x4cf   : > { %794 = vrot.lane.b32.xlu0 %v2993_v37, %s2660_s16  ;;  %s1914_s16 = sshll.u32 %s336_s12, 4  ;;  %s3142_s16 = int_to_ptr.vmem [resolvable:$true] %s1914_s16 }
 0x4d0   : > { %s2565_s8 = scalar_lea.vmem %s3142_s16, 64 }
 0x4d1   : > { %p2566_p7 = scmp.ne.s32.totalorder %s3142_s16, %s2565_s8 }
 0x4d3   : > { %p2567_p4 = pnand %p2566_p7, %p3211_p10 }
 0x4d5   : > { %p2568_p1 = pneg %p2567_p4 }
 0x546   : > { %v630_v0 = vpop.xlane.xlu0 %629 }
 0x547   : > { %2367 = vrcp.f32 %v630_v0 }
 0x548   : > { %v633_v1 = vpop.xlane.xlu1 %632 }
 0x549   : > { %2369 = vrcp.f32 %v633_v1 }
 0x54a   : > { %v795_v8 = vpop.permute.xlu0 %794 }
 0x54c   : > { %v873_v9 = vpop.permute.xlu1 %872 }
 0x551   : > { %v2368_v4 = vpop.eup %2367 }
 0x552   : > { %v636_v5 = vmul.f32 %v2368_v4, %v2364_v58 }
 0x553   : > { %v2370_v6 = vpop.eup %2369 }
 0x554   : > { %v637_v7 = vmul.f32 %v2370_v6, %v2366_v60  ;;  %2161 = vmatmul.mubr.msk.f32.vlgmr.msra.gmra.mrb[2].mxu1 %vm640_vm6, %v636_v5 }
 0x555   : > { %2169 = vmatpush3.xpose.msk.msra.mxu1 %vm464_vm3, %v797_v62  ;;  %2170 = vmatprep.mubr.msk.f32.mxu1 %vm2656_vm1, %v2655_v17 }
 0x556   : > { %2166 = vmatmul.mubr.msk.f32.vlgmr.msra.gmra.mrb[6].mxu0 %vm640_vm6, %v637_v7  ;;  %2178 = vmatprep.subr.mxu1 %v2655_v17 }
 0x557   : > { %2174 = vmatpush3.xpose.msk.msra.mxu0 %vm464_vm3, %v875_v63  ;;  %2175 = vmatprep.mubr.msk.f32.mxu0 %vm2656_vm1, %v2655_v17 }
 0x558   : > { %2171 = vmatmul.mubr.msk.f32.vlgmr.msra.gmra.mrb[4].mxu1 %vm464_vm3, %v795_v8  ;;  %2183 = vmatprep.subr.mxu0 %v2655_v17 }
 0x559   : > { %2180 = vmatprep.mubr.msk.f32.mxu1 %vm2656_vm1, %v2655_v17 }
 0x55a   : > { %2176 = vmatmul.mubr.msk.f32.vlgmr.msra.gmra.mrb[8].mxu0 %vm464_vm3, %v873_v9 }
 0x55b   : > { %2185 = vmatprep.mubr.msk.f32.mxu0 %vm2656_vm1, %v2655_v17 }
 0x627   : > { %v3043_v10 = vpop.f32.mrb[2].mxu1 }
 0x628   : > { %v2162_v11 = vpop.f32.mrb[3].mxu1 }
 0x629   : > { %v3045_v12 = vpop.f32.mrb[6].mxu0 }
 0x62a   : > { %v2167_v13 = vpop.f32.mrb[7].mxu0 }
 0x62b   : > { %v868_v14 = vpop.f32.mrb[4].mxu1 }
 0x62c   : > { %v2172_v15 = vpop.f32.mrb[5].mxu1  ;;  %v950_v16 = vsel %vm615_vm4, %v868_v14, -inf }
 0x62d   : > { %951 = vmax.xlane.f32.xlu0 %v950_v16  ;;  %v946_v18 = vpop.f32.mrb[8].mxu0 }
 0x62e   : > { %v2177_v19 = vpop.f32.mrb[9].mxu0  ;;  %v953_v20 = vsel %vm615_vm4, %v946_v18, -inf }
 0x62f   : > { %954 = vmax.xlane.f32.xlu1 %v953_v20 }
 0x640   : > { %1049 = vrot.lane.b32.xlu1 %v2997_v38, %s2661_s17 }
 0x643   : > { %972 = vrot.lane.b32.xlu0 %v2993_v37, %s2661_s17 }
 0x644   : > { %1128 = vrot.lane.b32.xlu1 %v2993_v37, %s2662_s19 }
 0x648   : > { %1206 = vrot.lane.b32.xlu1 %v2997_v38, %s2662_s19 }
 0x64c   : > { %1204 = vrot.lane.b32.xlu1 %v2997_v38, %s2663_s11 }
 0x6ba   : > { %v952_v21 = vpop.xlane.xlu0 %951 }
 0x6bb   : > { %v956_v22 = vsub.f32 %v868_v14, %v952_v21 }
 0x6bc   : > { %v955_v23 = vpop.xlane.xlu1 %954 }
 0x6bd   : > { %v958_v24 = vmul.f32 1.442695, %v956_v22  ;;  %v957_v25 = vsub.f32 %v946_v18, %v955_v23 }
 0x6be   : > { %v973_v26 = vpop.permute.xlu0 %972 }
 0x6bf   : > { %2371 = vpow2.f32 %v958_v24  ;;  %v960_v27 = vmul.f32 1.442695, %v957_v25  ;;  %2179 = vmatpush3.msk.msra.mxu1 %vm644_vm5, %v973_v26 }
 0x6c0   : > { %v1050_v28 = vpop.permute.xlu1 %1049  ;;  %2188 = vmatprep.subr.mxu1 %v2655_v17 }
 0x6c1   : > { %2373 = vpow2.f32 %v960_v27  ;;  %2184 = vmatpush3.msk.msra.mxu0 %vm644_vm5, %v1050_v28 }
 0x6c2   : > { %2193 = vmatprep.subr.mxu0 %v2655_v17 }
 0x6c4   : > { %v1129_v35 = vpop.permute.xlu1 %1128 }
 0x6c8   : > { %v1207_v41 = vpop.permute.xlu1 %1206 }
 0x6c9   : > { %v2372_v29 = vpop.eup %2371 }
 0x6ca   : > { %v962_v30 = vsel %vm615_vm4, %v2372_v29, 0.0 }
 0x6cb   : > { %v2374_v31 = vpop.eup %2373  ;;  %963 = vadd.xlane.f32.xlu0 %v962_v30 }
 0x6cc   : > { %v965_v32 = vsel %vm615_vm4, %v2374_v31, 0.0  ;;  %v1205_v44 = vpop.permute.xlu1 %1204 }
 0x6cf   : > { %966 = vadd.xlane.f32.xlu0 %v965_v32 }
 0x6e5   : > { %1126 = vrot.lane.b32.xlu0 %v2993_v37, %s2663_s11  ;;  %s3140_s11 = scalar_lea.hbm %s3192_s6, %s2101_s26 }
 0x758   : > { %v964_v33 = vpop.xlane.xlu0 %963 }
 0x759   : > { %2375 = vrcp.f32 %v964_v33 }
 0x75c   : > { %v967_v34 = vpop.xlane.xlu0 %966 }
 0x75d   : > { %2377 = vrcp.f32 %v967_v34 }
 0x760   : > { %v1127_v43 = vpop.permute.xlu0 %1126 }
 0x763   : > { %v2376_v36 = vpop.eup %2375 }
 0x764   : > { %v970_v39 = vmul.f32 %v2376_v36, %v2372_v29 }
 0x766   : > { %2181 = vmatmul.mubr.msk.f32.vlgmr.msra.gmra.mrb[6].mxu1 %vm640_vm6, %v970_v39 }
 0x767   : > { %v2378_v40 = vpop.eup %2377  ;;  %2189 = vmatpush3.xpose.msk.msra.mxu1 %vm464_vm3, %v1129_v35  ;;  %2190 = vmatprep.mubr.msk.f32.mxu1 %vm2656_vm1, %v2655_v17 }
 0x768   : > { %v971_v42 = vmul.f32 %v2378_v40, %v2374_v31  ;;  %2198 = vmatprep.subr.mxu1 %v2655_v17 }
 0x76a   : > { %2186 = vmatmul.mubr.msk.f32.vlgmr.msra.gmra.mrb[10].mxu0 %vm640_vm6, %v971_v42  ;;  %2191 = vmatmul.mubr.msk.f32.vlgmr.msra.gmra.mrb[8].mxu1 %vm464_vm3, %v1127_v43 }
 0x76b   : > { %2194 = vmatpush3.xpose.msk.msra.mxu0 %vm464_vm3, %v1207_v41  ;;  %2195 = vmatprep.mubr.msk.f32.mxu0 %vm2656_vm1, %v2655_v17 }
 0x76c   : > { %2203 = vmatprep.subr.mxu0 %v2655_v17  ;;  %2200 = vmatprep.mubr.msk.f32.mxu1 %vm2656_vm1, %v2655_v17 }
 0x76e   : > { %2196 = vmatmul.mubr.msk.f32.vlgmr.msra.gmra.mrb[12].mxu0 %vm464_vm3, %v1205_v44 }
 0x76f   : > { %2205 = vmatprep.mubr.msk.f32.mxu0 %vm2656_vm1, %v2655_v17 }
 0x839   : > { %v3077_v45 = vpop.f32.mrb[6].mxu1 }
 0x83a   : > { %v2182_v46 = vpop.f32.mrb[7].mxu1 }
 0x83d   : > { %v3079_v47 = vpop.f32.mrb[10].mxu0  ;;  %v1200_v48 = vpop.f32.mrb[8].mxu1 }
 0x83e   : > { %v2187_v49 = vpop.f32.mrb[11].mxu0  ;;  %v2192_v50 = vpop.f32.mrb[9].mxu1  ;;  %v1282_v51 = vsel %vm615_vm4, %v1200_v48, -inf }
 0x83f   : > { %1283 = vmax.xlane.f32.xlu0 %v1282_v51 }
 0x841   : > { %v1278_v52 = vpop.f32.mrb[12].mxu0 }
 0x842   : > { %v2197_v53 = vpop.f32.mrb[13].mxu0  ;;  %v1285_v54 = vsel %vm615_vm4, %v1278_v52, -inf }
 0x843   : > { %1286 = vmax.xlane.f32.xlu1 %v1285_v54 }
 0x854   : > { %1381 = vrot.lane.b32.xlu1 %v2997_v38, %s2664_s30 }
 0x855   : > { %1304 = vrot.lane.b32.xlu0 %v2993_v37, %s2664_s30  ;;  %s2671_s30 = smov [#allocation13]  }
 0x858   : > { %1460 = vrot.lane.b32.xlu1 %v2993_v37, %s2665_s13 }
 0x85c   : > { %1538 = vrot.lane.b32.xlu1 %v2997_v38, %s2665_s13  ;;  %s2569_s13 = sshll.u32 %s2671_s30, 4  ;;  %s2570_s13 = int_to_ptr.vmem [resolvable:$false] %s2569_s13 }
 0x85d   : > { %p2572_p13 = scmp.lt.s32.totalorder %s3142_s16, %s2570_s13 }
 0x860   : > { %1536 = vrot.lane.b32.xlu1 %v2997_v38, %s2666_s15 }
 0x8cc   : > { %v1284_v55 = vpop.xlane.xlu0 %1283 }
 0x8cd   : > { %v1288_v56 = vsub.f32 %v1200_v48, %v1284_v55 }
 0x8cf   : > { %v1290_v57 = vmul.f32 1.442695, %v1288_v56 }
 0x8d0   : > { %v1305_v58 = vpop.permute.xlu0 %1304  ;;  %v1287_v59 = vpop.xlane.xlu1 %1286 }
 0x8d1   : > { %2379 = vpow2.f32 %v1290_v57  ;;  %v1289_v60 = vsub.f32 %v1278_v52, %v1287_v59  ;;  %2199 = vmatpush3.msk.msra.mxu1 %vm644_vm5, %v1305_v58 }
 0x8d2   : > { %2208 = vmatprep.subr.mxu1 %v2655_v17 }
 0x8d3   : > { %v1292_v61 = vmul.f32 1.442695, %v1289_v60 }
 0x8d4   : > { %v1382_v62 = vpop.permute.xlu1 %1381 }
 0x8d5   : > { %2381 = vpow2.f32 %v1292_v61  ;;  %2204 = vmatpush3.msk.msra.mxu0 %vm644_vm5, %v1382_v62 }
 0x8d6   : > { %2213 = vmatprep.subr.mxu0 %v2655_v17 }
 0x8d8   : > { %v1461_v7 = vpop.permute.xlu1 %1460 }
 0x8db   : > { %v2380_v63 = vpop.eup %2379 }
 0x8dc   : > { %v1294_v0 = vsel %vm615_vm4, %v2380_v63, 0.0  ;;  %v1539_v13 = vpop.permute.xlu1 %1538 }
 0x8dd   : > { %1295 = vadd.xlane.f32.xlu0 %v1294_v0 }
 0x8df   : > { %v2382_v1 = vpop.eup %2381 }
 0x8e0   : > { %v1297_v4 = vsel %vm615_vm4, %v2382_v1, 0.0  ;;  %v1537_v16 = vpop.permute.xlu1 %1536 }
 0x8e1   : > { %1298 = vadd.xlane.f32.xlu0 %v1297_v4 }
 0x8f7   : > { %1458 = vrot.lane.b32.xlu0 %v2993_v37, %s2666_s15  ;;  %s2571_s15 = scalar_lea.vmem %s2570_s13, 128 }
 0x8f8   : > { %p2573_p0 = scmp.lt.s32.totalorder %s2571_s15, %s2565_s8 }
 0x8fa   : > { %p2574_p2 = por %p2573_p0, %p2572_p13 }
 0x8fc   : > { %p2575_p8 = pnand %p2574_p2, %p2568_p1 }
 0x96a   : > { %v1296_v5 = vpop.xlane.xlu0 %1295 }
 0x96b   : > { %2383 = vrcp.f32 %v1296_v5 }
 0x96e   : > { %v1299_v6 = vpop.xlane.xlu0 %1298 }
 0x96f   : > { %2385 = vrcp.f32 %v1299_v6 }
 0x972   : > { %v1459_v15 = vpop.permute.xlu0 %1458 }
 0x975   : > { %v2384_v8 = vpop.eup %2383 }
 0x976   : > { %v1302_v9 = vmul.f32 %v2384_v8, %v2380_v63 }
 0x978   : > { %2201 = vmatmul.mubr.msk.f32.vlgmr.msra.gmra.mrb[10].mxu1 %vm640_vm6, %v1302_v9 }
 0x979   : > { %v2386_v11 = vpop.eup %2385  ;;  %2209 = vmatpush3.xpose.msk.msra.mxu1 %vm464_vm3, %v1461_v7  ;;  %2210 = vmatprep.mubr.msk.f32.mxu1 %vm2656_vm1, %v2655_v17 }
 0x97a   : > { %v1303_v14 = vmul.f32 %v2386_v11, %v2382_v1  ;;  %2218 = vmatprep.subr.mxu1 %v2655_v17  ;;  %v2094_v1 = vld [vmem:[#allocation11] ss:$0 sm:$0xff] }
 0x97c   : > { %2206 = vmatmul.mubr.msk.f32.vlgmr.msra.gmra.mrb[14].mxu0 %vm640_vm6, %v1303_v14  ;;  %2211 = vmatmul.mubr.msk.f32.vlgmr.msra.gmra.mrb[12].mxu1 %vm464_vm3, %v1459_v15 }
 0x97d   : > { %2214 = vmatpush3.xpose.msk.msra.mxu0 %vm464_vm3, %v1539_v13  ;;  %2215 = vmatprep.mubr.msk.f32.mxu0 %vm2656_vm1, %v2655_v17 }
 0x97e   : > { %2223 = vmatprep.subr.mxu0 %v2655_v17  ;;  %2220 = vmatprep.mubr.msk.f32.mxu1 %vm2656_vm1, %v2655_v17 }
 0x980   : > { %2216 = vmatmul.mubr.msk.f32.vlgmr.msra.gmra.mrb[16].mxu0 %vm464_vm3, %v1537_v16 }
 0x981   : > { %2225 = vmatprep.mubr.msk.f32.mxu0 %vm2656_vm1, %v2655_v17 }
 0xa4b   : > { %v1377_v18 = vpop.f32.mrb[10].mxu1 }
 0xa4c   : > { %v2202_v19 = vpop.f32.mrb[11].mxu1 }
 0xa4f   : > { %v1454_v20 = vpop.f32.mrb[14].mxu0  ;;  %v1532_v21 = vpop.f32.mrb[12].mxu1 }
 0xa50   : > { %v2207_v22 = vpop.f32.mrb[15].mxu0  ;;  %v2212_v23 = vpop.f32.mrb[13].mxu1  ;;  %v1614_v24 = vsel %vm615_vm4, %v1532_v21, -inf }
 0xa51   : > { %1615 = vmax.xlane.f32.xlu0 %v1614_v24 }
 0xa53   : > { %v1610_v25 = vpop.f32.mrb[16].mxu0 }
 0xa54   : > { %v2217_v26 = vpop.f32.mrb[17].mxu0  ;;  %v1617_v27 = vsel %vm615_vm4, %v1610_v25, -inf }
 0xa55   : > { %1618 = vmax.xlane.f32.xlu1 %v1617_v27 }
 0xa66   : > { %1713 = vrot.lane.b32.xlu1 %v2997_v38, %s2667_s9 }
 0xa6a   : > { %1792 = vrot.lane.b32.xlu1 %v3077_v45, %s2668_s10 }
 0xa6e   : > { %1794 = vrot.lane.b32.xlu1 %v3079_v47, %s2668_s10  ;;  %v2358_v47 = vld [vmem:[#allocation10 + $0x8] sm:$0xff]  }
 0xa72   : > { %1802 = vrot.lane.b32.xlu1 %v1454_v20, %s2669_s18 }
 0xade   : > { %v1616_v28 = vpop.xlane.xlu0 %1615 }
 0xadf   : > { %v1620_v29 = vsub.f32 %v1532_v21, %v1616_v28 }
 0xae1   : > { %v1622_v30 = vmul.f32 1.442695, %v1620_v29 }
 0xae2   : > { %v1619_v31 = vpop.xlane.xlu1 %1618 }
 0xae3   : > { %2387 = vpow2.f32 %v1622_v30  ;;  %v1621_v32 = vsub.f32 %v1610_v25, %v1619_v31 }
 0xae5   : > { %v1624_v33 = vmul.f32 1.442695, %v1621_v32 }
 0xae6   : > { %v1714_v34 = vpop.permute.xlu1 %1713 }
 0xae7   : > { %2389 = vpow2.f32 %v1624_v33  ;;  %2224 = vmatpush3.msk.msra.mxu0 %vm644_vm5, %v1714_v34 }
 0xaea   : > { %v1793_v52 = vpop.permute.xlu1 %1792 }
 0xaeb   : > { %v1814_v57 = vsel %vm464_vm3, %v3043_v10, %v1793_v52 }
 0xaed   : > { %v2388_v35 = vpop.eup %2387 }
 0xaee   : > { %v1626_v38 = vsel %vm615_vm4, %v2388_v35, 0.0  ;;  %v1795_v53 = vpop.permute.xlu1 %1794 }
 0xaef   : > { %1627 = vadd.xlane.f32.xlu0 %v1626_v38 }
 0xaf1   : > { %v2390_v36 = vpop.eup %2389 }
 0xaf2   : > { %v1629_v39 = vsel %vm615_vm4, %v2390_v36, 0.0  ;;  %v1803_v55 = vpop.permute.xlu1 %1802 }
 0xaf3   : > { %1630 = vadd.xlane.f32.xlu0 %v1629_v39 }
 0xb09   : > { %1636 = vrot.lane.b32.xlu0 %v2993_v37, %s2667_s9  ;;  %v2357_v37 = vld [vmem:[#allocation10] sm:$0xff]  }
 0xb0d   : > { %1800 = vrot.lane.b32.xlu0 %v1377_v18, %s2669_s18 }
 0xb7c   : > { %v1628_v40 = vpop.xlane.xlu0 %1627 }
 0xb7d   : > { %2391 = vrcp.f32 %v1628_v40 }
 0xb80   : > { %v1631_v41 = vpop.xlane.xlu0 %1630 }
 0xb81   : > { %2393 = vrcp.f32 %v1631_v41 }
 0xb84   : > { %v1637_v42 = vpop.permute.xlu0 %1636 }
 0xb85   : > { %2219 = vmatpush3.msk.msra.mxu1 %vm644_vm5, %v1637_v42 }
 0xb86   : > { %2228 = vmatprep.subr.bf16.mxu1 %v2655_v17 }
 0xb87   : > { %v2392_v43 = vpop.eup %2391 }
 0xb88   : > { %v1634_v44 = vmul.f32 %v2392_v43, %v2388_v35  ;;  %v1801_v54 = vpop.permute.xlu0 %1800 }
 0xb89   : > { %v1817_v59 = vsel %vm1816_vm7, %v1814_v57, %v1801_v54 }
 0xb8a   : > { %2221 = vmatmul.mubr.msk.f32.vlgmr.msra.gmra.mrb[14].mxu1 %vm640_vm6, %v1634_v44 }
 0xb8b   : > { %v2394_v45 = vpop.eup %2393  ;;  %2232 = vmatprep.mubr.msk.bf16.mxu1 %vm2656_vm1, %v2655_v17  ;;  %2229 = vmatpush3.bf16.msra.mxu1 %v2357_v37 }
 0xb8c   : > { %v1635_v46 = vmul.f32 %v2394_v45, %v2390_v36  ;;  %2230 = vmatprep.subr.bf16.mxu1 %v2655_v17  ;;  %v1815_v17 = vsel %vm464_vm3, %v3045_v12, %v1795_v53 }
 0xb8d   : > { %v1818_v58 = vsel %vm1816_vm7, %v1815_v17, %v1803_v55 }
 0xb8e   : > { %2226 = vmatmul.mubr.msk.f32.vlgmr.msra.gmra.mrb[18].mxu0 %vm640_vm6, %v1635_v46 }
 0xb8f   : > { %2231 = vmatpush3.bf16.msra.mxu1 %v2358_v47 }
 0xc5d   : > { %v1709_v48 = vpop.f32.mrb[14].mxu1 }
 0xc5e   : > { %1808 = vrot.lane.b32.xlu0 %v1709_v48, %s2670_s28  ;;  %v2222_v49 = vpop.f32.mrb[15].mxu1 }
 0xc61   : > { %v1786_v50 = vpop.f32.mrb[18].mxu0 }
 0xc62   : > { %1810 = vrot.lane.b32.xlu1 %v1786_v50, %s2670_s28  ;;  %v2227_v51 = vpop.f32.mrb[19].mxu0 }
 0xcd0   : > { %v1809_v56 = vpop.permute.xlu0 %1808 }
 0xcd1   : > { %v1820_v61 = vsel %vm1819_vm8, %v1817_v59, %v1809_v56 }
 0xcd4   : > { %v1811_v60 = vpop.permute.xlu1 %1810 }
 0xcd5   : > { %v1821_v62 = vsel %vm1819_vm8, %v1818_v58, %v1811_v60 }
 0xcd6   : > { %v1824_v63 = vcombine.low %v1820_v61, %v1821_v62 }
 0xcd8   : > { %v1826_v0 = vpack.c.bf16 %v1824_v63, %v1824_v63 }
 0xcda   : > { %2233 = vmatmul.mubr.msk.bf16.vlgmr.msra.gmra.mrb[16].mxu1 %vm416_vm2, %v1826_v0 }
 0xdad   : > { %v1876_v4 = vpop.f32.mrb[16].mxu1 }
 0xdae   : > { %v1883_v5 = vcombine.high %v1876_v4, %v1876_v4  ;;  %v1891_v6 = vadd.f32 %v2094_v1, %v1876_v4  ;;  %v2234_v7 = vpop.f32.mrb[17].mxu1 }
 0xdaf   : > { %v1879_v10 = vpop.f32.mrb[18].mxu1 }
 0xdb0   : > { %v1892_v8 = vadd.f32 %v2094_v1, %v1883_v5  ;;  %v1893_v12 = vadd.f32 %v1891_v6, %v2970_v2  ;;  %v2235_v9 = vpop.f32.mrb[19].mxu1 }
 0xdb2   : > { %v1894_v11 = vadd.f32 %v1892_v8, %v2972_v3  ;;  %v1895_v13 = vpack.c.bf16 %v1893_v12, %v1893_v12 }
 0xdb4   : > { %v1896_v2 = vpack.c.bf16 %v1894_v11, %v1894_v11  ;;  %1898 = vst.msk [vmem:[%s336_s12] sm:$0x3] %vm1897_vm9, %v1895_v13 }
 0xdb6   : > { %1899 = vst.msk [vmem:[%s336_s12 + $0x2] sm:$0x3] %vm1897_vm9, %v1896_v2 }
 0xdb7   : > { %2578 = shalt.err (!%p2575_p8)
}
 0xdb8   : > { %s2579_s9 = scalar_lea.hbm %s3140_s11, 64  ;;  %s2583_s28 = scalar_lea.hbm %s3192_s6, 128 }
 0xdb9   : > { %p2580_p6 = scmp.ne.s32.totalorder %s3140_s11, %s2579_s9  ;;  %p2584_p3 = scmp.lt.u32.totalorder %s3140_s11, %s3192_s6 }
 0xdba   : > { %p2585_p5 = scmp.lt.u32.totalorder %s2583_s28, %s2579_s9  ;;  %p2587_p7 = scmp.lt.u32.totalorder %s2579_s9, %s3140_s11 }
 0xdbb   : > { %p2581_p11 = pnand %p2580_p6, %p3211_p10 }
 0xdbc   : > { %p2586_p9 = por %p2585_p5, %p2584_p3 }
 0xdbd   : > { %p2582_p12 = pneg %p2581_p11 }
 0xdbe   : > { %p2588_p4 = por %p2587_p7, %p2586_p9 }
 0xdc0   : > { %p2589_p1 = pnand %p2588_p4, %p2582_p12 }
 0xdc2   : > { %2592 = shalt.err (!%p2589_p1)
}
 0xdc3   : > { %s2672_s17 = smov 32   ;;  %s2673_s19 = smov 2  }
 0xdc4   : > { %2258 = dma.vmem_to_hbm [thread:$0]  (%p3211_p10), %s3142_s16, 64, %s3140_s11, %s1901_s27, %s2672_s17, %s2672_s17, %s2673_s19  }
 0xdc5 PF: > { %s1929_s8 = sand.u32 1, %s2631_s21   ;;  %p3212_p13 = scmp.ne.s32.totalorder %s3202_s20, 0 }
 0xdc6   : > { %p3213_p0 = scmp.ge.s32.totalorder %s2643_s24, 2  ;;  %s1930_s30 = scalar_lea.sflag [#allocation4], %s1929_s8 }
 0xdc8   : > { %p2281_p2 = pnand %p3213_p0, %p3212_p13 }
 0xdca   : > { %2626 = dma.done.wait (!%p2281_p2), %s1930_s30, 64  }
 0xdcb   : > { %2628 = vsyncadd (!%p2281_p2), %s1930_s30, 4294967232  ;;  %p22_p8 = scmp.ge.s32.totalorder %s2875_s7, 4   ;;  %s3214_s21 = smov %s2635_s22 }
 0xdcc   : > { %s3215_s22 = smov %s2639_s23  ;;  %s3216_s23 = smov %s2887_s14 }
 0xdcd   : > { %s3217_s24 = smov %s2875_s7  ;;  %24 = sbr.rel (!%p22_p8) target bundleno = 8 (0x8), region = 109 }
 0xdd4   :  { %1935 = vsyncpa [#allocation3], 1 }
 0xdd5   :  { %1937 = vsyncpa [#allocation3 + $0x1], 1 }
 0xdd6   :  { %1938 = vsyncpa [#allocation6], 1 }
 0xdd7   :  { %1939 = vsyncpa [#allocation9], 1 }
 0xdd8   :  { %1940 = vsyncpa [#allocation12], 1 }
 0xdd9   :  { %1941 = vsyncpa [#allocation4], 1 }
 0xdda   :  { %1943 = vsyncpa [#allocation4 + $0x1], 1 }

// kernel: vivit_forward.11
= control target key start
LH: loop header
LB: loop body
LE: loop exit
PB: predicated region body
PF: predicated region fallthrough
CT: control target
= control target key end

     0   :  { %10 = vsyncpa [#allocation3], 0  ;;  %s578_s0 = inlined_call_operand.hbm [shape: bf16[2,8,32], index: 0, kind: input, shape index: {}]   ;;  %s579_s1 = inlined_call_operand.hbm [shape: f32[1,32], index: 1, kind: input, shape index: {}]   ;;  %s580_s2 = inlined_call_operand.hbm [shape: f32[1,32], index: 2, kind: input, shape index: {}]   ;;  %s581_s3 = inlined_call_operand.hbm [shape: f32[32,10], index: 3, kind: input, shape index: {}]   ;;  %s582_s4 = inlined_call_operand.hbm [shape: f32[1,10], index: 4, kind: input, shape index: {}]   ;;  %s583_s5 = inlined_call_operand.hbm [shape: f32[2,10], index: 5, kind: output, shape index: {}]  }
   0x1   :  { %11 = vsyncpa [#allocation6], 0 }
   0x2   :  { %12 = vsyncpa [#allocation9], 0 }
   0x3   :  { %13 = vsyncpa [#allocation4], 0  ;;  %s450_s18 = smov [#allocation5]   ;;  %s451_s20 = smov [#allocation8]  }
   0x4   :  { %s32_s19 = sshll.u32 %s450_s18, 4  ;;  %s51_s21 = sshll.u32 %s451_s20, 4  ;;  %s33_s19 = int_to_ptr.vmem [resolvable:$true] %s32_s19  ;;  %s493_s21 = int_to_ptr.vmem [resolvable:$true] %s51_s21 }
   0x5   :  { %s310_s24 = scalar_lea.hbm %s579_s1, 16 }
   0x6   :  { %p311_p0 = scmp.ne.s32.totalorder %s579_s1, %s310_s24  ;;  %p314_p1 = scmp.lt.u32.totalorder %s310_s24, %s579_s1 }
   0x8   :  { %p316_p2 = pnand %p314_p1, %p311_p0 }
   0xa   :  { %319 = shalt.err (!%p316_p2)
}
   0xb   :  { %s320_s29 = scalar_lea.vmem %s33_s19, 16  ;;  %s324_s30 = scalar_lea.vmem %s33_s19, 32 }
   0xc   :  { %p321_p3 = scmp.ne.s32.totalorder %s33_s19, %s320_s29  ;;  %p325_p4 = scmp.lt.s32.totalorder %s33_s19, %s33_s19 }
   0xd   :  { %p326_p5 = scmp.lt.s32.totalorder %s324_s30, %s320_s29 }
   0xf   :  { %p327_p6 = por %p326_p5, %p325_p4 }
  0x11   :  { %p328_p7 = pnand %p327_p6, %p321_p3 }
  0x13   :  { %331 = shalt.err (!%p328_p7)
}
  0x14   :  { %35 = dma.hbm_to_vmem [thread:$0]  %s579_s1, 16, %s33_s19, [#allocation6]  }
  0x15   :  { %s332_s10 = scalar_lea.hbm %s581_s3, 512 }
  0x16   :  { %p333_p8 = scmp.ne.s32.totalorder %s581_s3, %s332_s10  ;;  %p336_p9 = scmp.lt.u32.totalorder %s332_s10, %s581_s3 }
  0x18   :  { %p338_p10 = pnand %p336_p9, %p333_p8 }
  0x1a   :  { %341 = shalt.err (!%p338_p10)
}
  0x1b   :  { %s342_s15 = scalar_lea.vmem %s493_s21, 512  ;;  %p347_p12 = scmp.lt.s32.totalorder %s493_s21, %s493_s21 }
  0x1c   :  { %p343_p11 = scmp.ne.s32.totalorder %s493_s21, %s342_s15  ;;  %p348_p13 = scmp.lt.s32.totalorder %s342_s15, %s342_s15 }
  0x1e   :  { %p349_p0 = por %p348_p13, %p347_p12 }
  0x20   :  { %p350_p1 = pnand %p349_p0, %p343_p11 }
  0x22   :  { %353 = shalt.err (!%p350_p1)
}
  0x23   :  { %s452_s1 = smov 128   ;;  %s453_s16 = smov 8  }
  0x24   :  { %57 = dma.hbm_to_vmem [thread:$0]  %s581_s3, 512, %s493_s21, [#allocation9], %s452_s1, %s452_s1, %s453_s16  }
  0x25   :  { %s454_s19 = smov [#allocation2]   ;;  %s354_s24 = scalar_lea.hbm %s578_s0, 128 }
  0x26   :  { %s19_s20 = sshll.u32 %s454_s19, 4  ;;  %p355_p2 = scmp.ne.s32.totalorder %s578_s0, %s354_s24  ;;  %s20_s20 = int_to_ptr.vmem [resolvable:$true] %s19_s20 }
  0x27   :  { %p358_p3 = scmp.lt.u32.totalorder %s354_s24, %s578_s0 }
  0x29   :  { %p360_p4 = pnand %p358_p3, %p355_p2 }
  0x2b   :  { %363 = shalt.err (!%p360_p4)
}
  0x2c   :  { %s364_s29 = scalar_lea.vmem %s20_s20, 128  ;;  %p369_p6 = scmp.lt.s32.totalorder %s20_s20, %s20_s20 }
  0x2d   :  { %p365_p5 = scmp.ne.s32.totalorder %s20_s20, %s364_s29  ;;  %p370_p7 = scmp.lt.s32.totalorder %s364_s29, %s364_s29 }
  0x2f   :  { %p371_p8 = por %p370_p7, %p369_p6 }
  0x31   :  { %p372_p9 = pnand %p371_p8, %p365_p5 }
  0x33   :  { %375 = shalt.err (!%p372_p9)
}
  0x34   :  { %s455_s3 = smov 64   ;;  %s456_s21 = smov 4  }
  0x35   :  { %25 = dma.hbm_to_vmem [thread:$0]  %s578_s0, 128, %s20_s20, [#allocation3], %s455_s3, %s455_s3, %s456_s21  }
  0x36   :  { %s457_s7 = smov [#allocation7]   ;;  %s458_s9 = smov [#allocation10]  }
  0x37   :  { %s42_s8 = sshll.u32 %s457_s7, 4  ;;  %s64_s10 = sshll.u32 %s458_s9, 4  ;;  %s43_s8 = int_to_ptr.vmem [resolvable:$true] %s42_s8  ;;  %s65_s10 = int_to_ptr.vmem [resolvable:$true] %s64_s10 }
  0x38   :  { %s376_s13 = scalar_lea.hbm %s580_s2, 16 }
  0x39   :  { %p377_p10 = scmp.ne.s32.totalorder %s580_s2, %s376_s13  ;;  %p380_p11 = scmp.lt.u32.totalorder %s376_s13, %s580_s2 }
  0x3b   :  { %p382_p12 = pnand %p380_p11, %p377_p10 }
  0x3d   :  { %385 = shalt.err (!%p382_p12)
}
  0x3e   :  { %s386_s0 = scalar_lea.vmem %s43_s8, 16  ;;  %s390_s17 = scalar_lea.vmem %s43_s8, 32 }
  0x3f   :  { %p387_p13 = scmp.ne.s32.totalorder %s43_s8, %s386_s0  ;;  %p391_p0 = scmp.lt.s32.totalorder %s43_s8, %s43_s8 }
  0x40   :  { %p392_p1 = scmp.lt.s32.totalorder %s390_s17, %s386_s0 }
  0x42   :  { %p393_p2 = por %p392_p1, %p391_p0 }
  0x44   :  { %p394_p3 = pnand %p393_p2, %p387_p13 }
  0x46   :  { %397 = shalt.err (!%p394_p3)
}
  0x47   :  { %45 = dma.hbm_to_vmem [thread:$0]  %s580_s2, 16, %s43_s8, [#allocation6]  }
  0x48   :  { %s398_s23 = scalar_lea.hbm %s582_s4, 16 }
  0x49   :  { %p399_p4 = scmp.ne.s32.totalorder %s582_s4, %s398_s23  ;;  %p402_p5 = scmp.lt.u32.totalorder %s398_s23, %s582_s4 }
  0x4b   :  { %p404_p6 = pnand %p402_p5, %p399_p4 }
  0x4d   :  { %407 = shalt.err (!%p404_p6)
}
  0x4e   :  { %s408_s28 = scalar_lea.vmem %s65_s10, 16  ;;  %s412_s29 = scalar_lea.vmem %s65_s10, 32 }
  0x4f   :  { %p409_p7 = scmp.ne.s32.totalorder %s65_s10, %s408_s28  ;;  %p413_p8 = scmp.lt.s32.totalorder %s65_s10, %s65_s10 }
  0x50   :  { %p414_p9 = scmp.lt.s32.totalorder %s412_s29, %s408_s28 }
  0x52   :  { %p415_p10 = por %p414_p9, %p413_p8 }
  0x54   :  { %p416_p11 = pnand %p415_p10, %p409_p7 }
  0x56   :  { %419 = shalt.err (!%p416_p11)
}
  0x57   :  { %67 = dma.hbm_to_vmem [thread:$0]  %s582_s4, 16, %s65_s10, [#allocation9]  }
  0x58   :  { %442 = dma.done.wait [#allocation3], 128  }
  0x59   :  { %443 = vsyncadd [#allocation3], 4294967168 }
  0x5a   :  { %444 = dma.done.wait [#allocation6], 32  }
  0x5b   :  { %445 = vsyncadd [#allocation6], 4294967264 }
  0x5c   :  { %446 = dma.done.wait [#allocation9], 528  }
  0x5d   :  { %447 = vsyncadd [#allocation9], 4294966768  ;;  %v270_v0 = vld [vmem:[#allocation2] sm:$0xff]   ;;  %vm87_vm0 = vcmask 261120   ;;  %vm109_vm1 = vcmask 1041409   ;;  %vm112_vm2 = vcmask 254976  }
  0x5e   :  { %v271_v1 = vunpack.c.l.bf16 %v270_v0  ;;  %v272_v2 = vunpack.c.h.bf16 %v270_v0  ;;  %v159_v31 = vld [vmem:[#allocation8] sm:$0xff]  ;;  %v160_v32 = vld [vmem:[#allocation8 + $0x8] sm:$0xff]  ;;  %v161_v33 = vld [vmem:[#allocation8 + $0x10] sm:$0xff]  ;;  %v459_v34 = vmov 0.0|0.0   ;;  %vm460_vm3 = vmmov 0   ;;  %s462_s4 = smov [#allocation11]  }
  0x5f   :  { %289 = vmatprep.subr.bf16.mxu0 %v459_v34  ;;  %v290_v35 = vpack.c.bf16 %v160_v32, %v159_v31  ;;  %v162_v36 = vld [vmem:[#allocation8 + $0x18] sm:$0xff]  ;;  %v461_v37 = vmov 0.0   ;;  %v267_v54 = vld [vmem:[#allocation10] ss:$0 sm:$0xff]  ;;  %s254_s21 = sshll.u32 %s462_s4, 4  ;;  %vm246_vm4 = vcmask 74752   ;;  %s255_s21 = int_to_ptr.vmem [resolvable:$true] %s254_s21 }
  0x60   :  { %v88_v3 = vsel %vm87_vm0, %v271_v1, 0.0  ;;  %v95_v4 = vsel %vm87_vm0, %v272_v2, 0.0  ;;  %286 = vmatprep.mubr.msk.f32.mxu0 %vm460_vm3, %v461_v37  ;;  %v293_v38 = vpack.c.bf16 %v162_v36, %v161_v33  ;;  %v265_v45 = vld [vmem:[#allocation5] ss:$0 sm:$0xff]  ;;  %v266_v49 = vld [vmem:[#allocation7] ss:$0 sm:$0xff]  ;;  %p425_p13 = scmp.lt.s32.totalorder %s255_s21, %s255_s21 }
  0x61   :  { %v89_v5 = vrot.slane %v88_v3, 4  ;;  %v96_v6 = vrot.slane %v95_v4, 4  ;;  %291 = vmatpush3.bf16.msra.mxu0 %v290_v35  ;;  %s420_s30 = scalar_lea.vmem %s255_s21, 32 }
  0x62   :  { %292 = vmatprep.subr.bf16.mxu0 %v459_v34  ;;  %p421_p12 = scmp.ne.s32.totalorder %s255_s21, %s420_s30  ;;  %p426_p0 = scmp.lt.s32.totalorder %s420_s30, %s420_s30 }
  0x63   :  { %v90_v7 = vadd.f32 %v89_v5, %v88_v3  ;;  %v97_v8 = vadd.f32 %v96_v6, %v95_v4 }
  0x64   :  { %p427_p1 = por %p426_p0, %p425_p13 }
  0x65   :  { %v91_v9 = vrot.slane %v90_v7, 2  ;;  %v98_v10 = vrot.slane %v97_v8, 2  ;;  %294 = vmatpush3.bf16.msra.mxu0 %v293_v38 }
  0x66   :  { %p428_p2 = pnand %p427_p1, %p421_p12 }
  0x67   :  { %v92_v11 = vadd.f32 %v91_v9, %v90_v7  ;;  %v99_v12 = vadd.f32 %v98_v10, %v97_v8 }
  0x69   :  { %v93_v13 = vrot.slane %v92_v11, 1  ;;  %v100_v14 = vrot.slane %v99_v12, 1 }
  0x6b   :  { %v94_v15 = vadd.f32 %v93_v13, %v92_v11  ;;  %v101_v16 = vadd.f32 %v100_v14, %v99_v12 }
  0x6d   :  { %v103_v17 = vmul.f32 0.125, %v94_v15  ;;  %v104_v18 = vmul.f32 0.125, %v101_v16 }
  0x6f   :  { %v110_v19 = vsel %vm109_vm1, %v104_v18, %v103_v17 }
  0x70   :  { %v113_v20 = vsel %vm112_vm2, %v110_v19, 0.0 }
  0x71   :  { %114 = vadd.xlane.f32.xlu0 %v113_v20 }
  0xfe   :  { %v115_v21 = vpop.xlane.xlu0 %114 }
  0xff   :  { %v117_v22 = vmul.f32 0.03125, %v115_v21 }
 0x101   :  { %v119_v23 = vrot.slane %v117_v22, 1  ;;  %v122_v24 = vsub.f32 %v103_v17, %v117_v22 }
 0x103   :  { %v123_v25 = vsub.f32 %v104_v18, %v119_v23  ;;  %v124_v27 = vmul.f32 %v122_v24, %v122_v24 }
 0x105   :  { %v125_v26 = vmul.f32 %v123_v25, %v123_v25 }
 0x107   :  { %v128_v28 = vrot.slane %v125_v26, 7 }
 0x109   :  { %v129_v29 = vsel %vm109_vm1, %v128_v28, %v124_v27 }
 0x10a   :  { %v131_v30 = vsel %vm112_vm2, %v129_v29, 0.0 }
 0x10b   :  { %132 = vadd.xlane.f32.xlu0 %v131_v30 }
 0x198   :  { %v133_v39 = vpop.xlane.xlu0 %132 }
 0x199   :  { %v134_v40 = vmul.f32 0.03125, %v133_v39 }
 0x19b   :  { %v135_v41 = vadd.f32 1e-05, %v134_v40 }
 0x19d   :  { %308 = vrsqrt.f32 %v135_v41 }
 0x1a7   :  { %v309_v42 = vpop.eup %308 }
 0x1a8   :  { %v138_v43 = vrot.slane %v309_v42, 1  ;;  %v141_v44 = vmul.f32 %v309_v42, %v122_v24 }
 0x1aa   :  { %v142_v46 = vmul.f32 %v138_v43, %v123_v25  ;;  %v149_v47 = vmul.f32 %v265_v45, %v141_v44 }
 0x1ac   :  { %v150_v48 = vmul.f32 %v265_v45, %v142_v46  ;;  %v157_v51 = vadd.f32 %v266_v49, %v149_v47 }
 0x1ae   :  { %v158_v50 = vadd.f32 %v266_v49, %v150_v48 }
 0x1b0   :  { %v172_v52 = vrot.slane %v158_v50, 7 }
 0x1b2   :  { %v173_v53 = vsel %vm109_vm1, %v172_v52, %v157_v51 }
 0x1b3   :  { %287 = vmatmul.mubr.msk.f32.vlgmr.msra.gmra.mrb[0].mxu0 %vm87_vm0, %v173_v53 }
 0x286   :  { %v242_v55 = vpop.f32.mrb[0].mxu0 }
 0x287   :  { %v243_v56 = vadd.f32 %v267_v54, %v242_v55  ;;  %v288_v57 = vpop.f32.mrb[1].mxu0 }
 0x289   :  { %247 = vst.msk [vmem:[#allocation11] sm:$0x3] %vm246_vm4, %v243_v56 }
 0x28a   :  { %431 = shalt.err (!%p428_p2)
}
 0x28b   :  { %s432_s8 = scalar_lea.hbm %s583_s5, 32 }
 0x28c   :  { %p433_p3 = scmp.ne.s32.totalorder %s583_s5, %s432_s8  ;;  %p436_p4 = scmp.lt.u32.totalorder %s432_s8, %s583_s5 }
 0x28e   :  { %p438_p5 = pnand %p436_p4, %p433_p3 }
 0x290   :  { %441 = shalt.err (!%p438_p5)
}
 0x291   :  { %257 = dma.vmem_to_hbm [thread:$0]  %s255_s21, 32, %s583_s5, [#allocation4]  }
 0x292   :  { %448 = dma.done.wait [#allocation4], 32  }
 0x293   :  { %449 = vsyncadd [#allocation4], 4294967264 }
 0x294   :  { %261 = vsyncpa [#allocation3], 1 }
 0x295   :  { %262 = vsyncpa [#allocation6], 1 }
 0x296   :  { %263 = vsyncpa [#allocation9], 1 }
 0x297   :  { %264 = vsyncpa [#allocation4], 1 }

// kernel: vivit_forward.8
= control target key start
LH: loop header
LB: loop body
LE: loop exit
PB: predicated region body
PF: predicated region fallthrough
CT: control target
= control target key end

     0   :  { %s6140_s0 = inlined_call_operand.hbm [shape: bf16[8,2,32], index: 0, kind: input, shape index: {}]   ;;  %s6141_s1 = inlined_call_operand.hbm [shape: f32[1,32], index: 1, kind: input, shape index: {}]   ;;  %s6142_s2 = inlined_call_operand.hbm [shape: f32[1,32], index: 2, kind: input, shape index: {}]   ;;  %s6143_s3 = inlined_call_operand.hbm [shape: bf16[32,96], index: 3, kind: input, shape index: {}]   ;;  %s6144_s4 = inlined_call_operand.hbm [shape: bf16[32,32], index: 4, kind: input, shape index: {}]   ;;  %s6145_s5 = inlined_call_operand.hbm [shape: f32[1,32], index: 5, kind: input, shape index: {}]   ;;  %s6146_s6 = inlined_call_operand.hbm [shape: f32[1,32], index: 6, kind: input, shape index: {}]   ;;  %s6147_s7 = inlined_call_operand.hbm [shape: f32[1,32], index: 7, kind: input, shape index: {}]   ;;  %s6148_s8 = inlined_call_operand.hbm [shape: bf16[32,64], index: 8, kind: input, shape index: {}]   ;;  %s6149_s9 = inlined_call_operand.hbm [shape: f32[1,64], index: 9, kind: input, shape index: {}]   ;;  %s6150_s10 = inlined_call_operand.hbm [shape: bf16[64,32], index: 10, kind: input, shape index: {}]   ;;  %s6151_s11 = inlined_call_operand.hbm [shape: f32[1,32], index: 11, kind: input, shape index: {}]   ;;  %s6152_s12 = inlined_call_operand.hbm [shape: bf16[8,2,32], index: 12, kind: output, shape index: {}]  }
   0x1   :  { %6162 = sst [smem:[#allocation32_spill]] %s6141_s1 }
   0x2   :  { %6163 = sst [smem:[#allocation33_spill]] %s6142_s2 }
   0x3   :  { %6164 = sst [smem:[#allocation34_spill]] %s6143_s3 }
   0x4   :  { %6165 = sst [smem:[#allocation35_spill]] %s6152_s12 }
   0x5   :  { %17 = vsyncpa [#allocation3], 0 }
   0x6   :  { %19 = vsyncpa [#allocation3 + $0x1], 0 }
   0x7   :  { %20 = vsyncpa [#allocation6], 0 }
   0x8   :  { %21 = vsyncpa [#allocation9], 0 }
   0x9   :  { %22 = vsyncpa [#allocation12], 0 }
   0xa   :  { %23 = vsyncpa [#allocation15], 0 }
   0xb   :  { %24 = vsyncpa [#allocation18], 0 }
   0xc   :  { %25 = vsyncpa [#allocation21], 0 }
   0xd   :  { %26 = vsyncpa [#allocation4], 0 }
   0xe   :  { %28 = vsyncpa [#allocation4 + $0x1], 0  ;;  %s5308_s21 = smov 0   ;;  %s5310_s22 = smov 0  }
   0xf   :  { %s5312_s23 = smov 0   ;;  %s5314_s24 = smov 0  }
  0x10 LB: > { %s5208_s25 = smov [#allocation5]   ;;  %s5329_s27 = sadd.s32 4294967295, %s5206_s24   ;;  %s5206_s24 = sphi %s5314_s24, %s6201_s24   ;;  %s5202_s23 = sphi %s5312_s23, %s6200_s23   ;;  %s5198_s22 = sphi %s5310_s22, %s6199_s22   ;;  %s5194_s21 = sphi %s5308_s21, %s6198_s21  }
  0x11   : > { %s335_s26 = sshll.u32 %s5208_s25, 4  ;;  %p4111_p0 = scmp.ge.s32.totalorder %s5206_s24, 1  ;;  %s5334_s26 = int_to_ptr.vmem [resolvable:$true] %s335_s26 }
  0x12   : > { %p6159_p1 = scmp.eq.s32.totalorder %s5329_s27, 0  ;;  %p322_p2 = scmp.lt.s32.totalorder %s5206_s24, 3 }
  0x13   : > { %s5209_s29 = smov [#allocation8]   ;;  %s5210_s14 = smov [#allocation11]  }
  0x14   : > { %p5336_p3 = pnand %p4111_p0, %p322_p2  ;;  %s356_s30 = sshll.u32 %s5209_s29, 4  ;;  %s5343_s30 = int_to_ptr.vmem [resolvable:$true] %s356_s30 }
  0x15   : > { %s383_s15 = sshll.u32 %s5210_s14, 4  ;;  %s6169_s1 = sld [smem:[#allocation32_spill]]  ;;  %s5351_s15 = int_to_ptr.vmem [resolvable:$true] %s383_s15 }
  0x16   : > { %s6166_s28 = scalar_select %p5336_p3, 1, 0 }
  0x17   : > { %p4555_p5 = pneg %p5336_p3 }
  0x18   : > { %6167 = sst [smem:[#allocation31_spill]] %s6166_s28 }
  0x19   : > { %p5347_p6 = pnand %p4555_p5, %p6159_p1 }
  0x1b   : > { %s4778_s18 = scalar_lea.hbm %s6169_s1, 16  ;;  %p5361_p8 = pneg %p5347_p6 }
  0x1c   : > { %p4779_p7 = scmp.ne.s32.totalorder %s6169_s1, %s4778_s18  ;;  %p4785_p11 = scmp.lt.u32.totalorder %s4778_s18, %s6169_s1 }
  0x1e   : > { %p4781_p9 = pnand %p5361_p8, %p4779_p7 }
  0x20   : > { %p4782_p10 = pneg %p4781_p9 }
  0x22   : > { %p4787_p12 = pnand %p4785_p11, %p4782_p10 }
  0x24   : > { %4790 = shalt.err (!%p4787_p12)
}
  0x25   : > { %s4791_s16 = scalar_lea.vmem %s5334_s26, 16  ;;  %s4798_s17 = scalar_lea.vmem %s5334_s26, 32 }
  0x26   : > { %p4792_p13 = scmp.ne.s32.totalorder %s5334_s26, %s4791_s16  ;;  %p4799_p5 = scmp.lt.s32.totalorder %s5334_s26, %s5334_s26 }
  0x27   : > { %p4800_p7 = scmp.lt.s32.totalorder %s4798_s17, %s4791_s16 }
  0x28   : > { %p4794_p0 = pnand %p4792_p13, %p5361_p8 }
  0x29   : > { %p4801_p9 = por %p4800_p7, %p4799_p5 }
  0x2a   : > { %p4795_p2 = pneg %p4794_p0 }
  0x2c   : > { %p4802_p4 = pnand %p4801_p9, %p4795_p2 }
  0x2e   : > { %4805 = shalt.err (!%p4802_p4)
}
  0x2f   : > { %4558 = dma.hbm_to_vmem [thread:$0]  (!%p5347_p6), %s6169_s1, 16, %s5334_s26, [#allocation6]  }
  0x30   : > { %s6171_s3 = sld [smem:[#allocation34_spill]] }
  0x36   : > { %s4806_s14 = scalar_lea.hbm %s6171_s3, 256 }
  0x37   : > { %p4807_p10 = scmp.ne.s32.totalorder %s6171_s3, %s4806_s14  ;;  %p4813_p4 = scmp.lt.u32.totalorder %s4806_s14, %s6171_s3 }
  0x39   : > { %p4809_p11 = pnand %p4807_p10, %p5361_p8 }
  0x3b   : > { %p4810_p12 = pneg %p4809_p11 }
  0x3d   : > { %p4815_p13 = pnand %p4813_p4, %p4810_p12 }
  0x3f   : > { %4818 = shalt.err (!%p4815_p13)
}
  0x40   : > { %s4819_s26 = scalar_lea.vmem %s5343_s30, 256  ;;  %p4827_p7 = scmp.lt.s32.totalorder %s5343_s30, %s5343_s30 }
  0x41   : > { %p4820_p0 = scmp.ne.s32.totalorder %s5343_s30, %s4819_s26  ;;  %p4828_p9 = scmp.lt.s32.totalorder %s4819_s26, %s4819_s26 }
  0x43   : > { %p4822_p2 = pnand %p4820_p0, %p5361_p8  ;;  %p4829_p10 = por %p4828_p9, %p4827_p7 }
  0x45   : > { %p4823_p5 = pneg %p4822_p2 }
  0x47   : > { %p4830_p11 = pnand %p4829_p10, %p4823_p5 }
  0x49   : > { %4833 = shalt.err (!%p4830_p11)
}
  0x4a   : > { %s6155_s12 = smov 64   ;;  %s6157_s28 = smov 4  }
  0x4b   : > { %4564 = dma.hbm_to_vmem [thread:$0]  (!%p5347_p6), %s6171_s3, 256, %s5343_s30, [#allocation9], %s6155_s12, %s6155_s12, %s6157_s28  }
  0x4c   : > { %s4834_s14 = scalar_lea.hbm %s6145_s5, 16 }
  0x4d   : > { %p4835_p12 = scmp.ne.s32.totalorder %s6145_s5, %s4834_s14  ;;  %p4841_p0 = scmp.lt.u32.totalorder %s4834_s14, %s6145_s5 }
  0x4f   : > { %p4837_p4 = pnand %p4835_p12, %p5361_p8 }
  0x51   : > { %p4838_p13 = pneg %p4837_p4 }
  0x53   : > { %p4843_p2 = pnand %p4841_p0, %p4838_p13 }
  0x55   : > { %4846 = shalt.err (!%p4843_p2)
}
  0x56   : > { %s4847_s30 = scalar_lea.vmem %s5351_s15, 16  ;;  %s4854_s18 = scalar_lea.vmem %s5351_s15, 32 }
  0x57   : > { %p4848_p5 = scmp.ne.s32.totalorder %s5351_s15, %s4847_s30  ;;  %p4855_p10 = scmp.lt.s32.totalorder %s5351_s15, %s5351_s15 }
  0x58   : > { %p4856_p11 = scmp.lt.s32.totalorder %s4854_s18, %s4847_s30 }
  0x59   : > { %p4850_p7 = pnand %p4848_p5, %p5361_p8 }
  0x5a   : > { %p4857_p12 = por %p4856_p11, %p4855_p10 }
  0x5b   : > { %p4851_p9 = pneg %p4850_p7 }
  0x5d   : > { %p4858_p4 = pnand %p4857_p12, %p4851_p9 }
  0x5f   : > { %4861 = shalt.err (!%p4858_p4)
}
  0x60   : > { %4570 = dma.hbm_to_vmem [thread:$0]  (!%p5347_p6), %s6145_s5, 16, %s5351_s15, [#allocation12]  }
  0x61   : > { %s5213_s20 = smov [#allocation14]   ;;  %s5214_s14 = smov [#allocation17]  }
  0x62   : > { %s405_s29 = sshll.u32 %s5213_s20, 4  ;;  %s429_s16 = sshll.u32 %s5214_s14, 4  ;;  %s406_s29 = int_to_ptr.vmem [resolvable:$true] %s405_s29  ;;  %s430_s16 = int_to_ptr.vmem [resolvable:$true] %s429_s16 }
  0x63   : > { %s4862_s30 = scalar_lea.hbm %s6147_s7, 16 }
  0x64   : > { %p4863_p13 = scmp.ne.s32.totalorder %s6147_s7, %s4862_s30  ;;  %p4869_p5 = scmp.lt.u32.totalorder %s4862_s30, %s6147_s7 }
  0x66   : > { %p4865_p0 = pnand %p4863_p13, %p5361_p8 }
  0x68   : > { %p4866_p2 = pneg %p4865_p0 }
  0x6a   : > { %p4871_p7 = pnand %p4869_p5, %p4866_p2 }
  0x6c   : > { %4874 = shalt.err (!%p4871_p7)
}
  0x6d   : > { %s4875_s15 = scalar_lea.vmem %s406_s29, 16  ;;  %s4882_s19 = scalar_lea.vmem %s406_s29, 32 }
  0x6e   : > { %p4876_p9 = scmp.ne.s32.totalorder %s406_s29, %s4875_s15  ;;  %p4883_p12 = scmp.lt.s32.totalorder %s406_s29, %s406_s29 }
  0x6f   : > { %p4884_p4 = scmp.lt.s32.totalorder %s4882_s19, %s4875_s15 }
  0x70   : > { %p4878_p10 = pnand %p4876_p9, %p5361_p8 }
  0x71   : > { %p4885_p1 = por %p4884_p4, %p4883_p12 }
  0x72   : > { %p4879_p11 = pneg %p4878_p10 }
  0x74   : > { %p4886_p3 = pnand %p4885_p1, %p4879_p11 }
  0x76   : > { %4889 = shalt.err (!%p4886_p3)
}
  0x77   : > { %4576 = dma.hbm_to_vmem [thread:$0]  (!%p5347_p6), %s6147_s7, 16, %s406_s29, [#allocation15]  }
  0x78   : > { %s4890_s17 = scalar_lea.hbm %s6149_s9, 16 }
  0x79   : > { %p4891_p13 = scmp.ne.s32.totalorder %s6149_s9, %s4890_s17  ;;  %p4897_p3 = scmp.lt.u32.totalorder %s4890_s17, %s6149_s9 }
  0x7b   : > { %p4893_p0 = pnand %p4891_p13, %p5361_p8 }
  0x7d   : > { %p4894_p1 = pneg %p4893_p0 }
  0x7f   : > { %p4899_p2 = pnand %p4897_p3, %p4894_p1 }
  0x81   : > { %4902 = shalt.err (!%p4899_p2)
}
  0x82   : > { %s4903_s15 = scalar_lea.vmem %s430_s16, 16  ;;  %s4910_s29 = scalar_lea.vmem %s430_s16, 32 }
  0x83   : > { %p4904_p5 = scmp.ne.s32.totalorder %s430_s16, %s4903_s15  ;;  %p4911_p10 = scmp.lt.s32.totalorder %s430_s16, %s430_s16 }
  0x84   : > { %p4912_p11 = scmp.lt.s32.totalorder %s4910_s29, %s4903_s15 }
  0x85   : > { %p4906_p7 = pnand %p4904_p5, %p5361_p8 }
  0x86   : > { %p4913_p12 = por %p4912_p11, %p4911_p10 }
  0x87   : > { %p4907_p9 = pneg %p4906_p7 }
  0x89   : > { %p4914_p4 = pnand %p4913_p12, %p4907_p9 }
  0x8b   : > { %4917 = shalt.err (!%p4914_p4)
}
  0x8c   : > { %4582 = dma.hbm_to_vmem [thread:$0]  (!%p5347_p6), %s6149_s9, 16, %s430_s16, [#allocation18]  }
  0x8d   : > { %s5215_s20 = smov [#allocation7]   ;;  %s5216_s14 = smov [#allocation10]  }
  0x8e   : > { %s346_s28 = sshll.u32 %s5215_s20, 4  ;;  %s369_s17 = sshll.u32 %s5216_s14, 4  ;;  %s347_s28 = int_to_ptr.vmem [resolvable:$true] %s346_s28  ;;  %s370_s17 = int_to_ptr.vmem [resolvable:$true] %s369_s17 }
  0x8f   : > { %s6172_s2 = sld [smem:[#allocation33_spill]] }
  0x95   : > { %s4918_s18 = scalar_lea.hbm %s6172_s2, 16 }
  0x96   : > { %p4919_p13 = scmp.ne.s32.totalorder %s6172_s2, %s4918_s18  ;;  %p4925_p3 = scmp.lt.u32.totalorder %s4918_s18, %s6172_s2 }
  0x98   : > { %p4921_p0 = pnand %p4919_p13, %p5361_p8 }
  0x9a   : > { %p4922_p1 = pneg %p4921_p0 }
  0x9c   : > { %p4927_p2 = pnand %p4925_p3, %p4922_p1 }
  0x9e   : > { %4930 = shalt.err (!%p4927_p2)
}
  0x9f   : > { %s4931_s16 = scalar_lea.vmem %s347_s28, 16  ;;  %s4938_s12 = scalar_lea.vmem %s347_s28, 32 }
  0xa0   : > { %p4932_p5 = scmp.ne.s32.totalorder %s347_s28, %s4931_s16  ;;  %p4939_p10 = scmp.lt.s32.totalorder %s347_s28, %s347_s28 }
  0xa1   : > { %p4940_p11 = scmp.lt.s32.totalorder %s4938_s12, %s4931_s16 }
  0xa2   : > { %p4934_p7 = pnand %p4932_p5, %p5361_p8 }
  0xa3   : > { %p4941_p12 = por %p4940_p11, %p4939_p10 }
  0xa4   : > { %p4935_p9 = pneg %p4934_p7 }
  0xa6   : > { %p4942_p4 = pnand %p4941_p12, %p4935_p9 }
  0xa8   : > { %4945 = shalt.err (!%p4942_p4)
}
  0xa9   : > { %4561 = dma.hbm_to_vmem [thread:$0]  (!%p5347_p6), %s6172_s2, 16, %s347_s28, [#allocation6]  }
  0xaa   : > { %s4946_s18 = scalar_lea.hbm %s6144_s4, 256 }
  0xab   : > { %p4947_p13 = scmp.ne.s32.totalorder %s6144_s4, %s4946_s18  ;;  %p4953_p3 = scmp.lt.u32.totalorder %s4946_s18, %s6144_s4 }
  0xad   : > { %p4949_p0 = pnand %p4947_p13, %p5361_p8 }
  0xaf   : > { %p4950_p1 = pneg %p4949_p0 }
  0xb1   : > { %p4955_p2 = pnand %p4953_p3, %p4950_p1 }
  0xb3   : > { %4958 = shalt.err (!%p4955_p2)
}
  0xb4   : > { %s4959_s16 = scalar_lea.vmem %s370_s17, 256  ;;  %p4967_p10 = scmp.lt.s32.totalorder %s370_s17, %s370_s17 }
  0xb5   : > { %p4960_p5 = scmp.ne.s32.totalorder %s370_s17, %s4959_s16  ;;  %p4968_p11 = scmp.lt.s32.totalorder %s4959_s16, %s4959_s16 }
  0xb7   : > { %p4962_p7 = pnand %p4960_p5, %p5361_p8  ;;  %p4969_p12 = por %p4968_p11, %p4967_p10 }
  0xb9   : > { %p4963_p9 = pneg %p4962_p7 }
  0xbb   : > { %p4970_p4 = pnand %p4969_p12, %p4963_p9 }
  0xbd   : > { %4973 = shalt.err (!%p4970_p4)
}
  0xbe   : > { %s6173_s28 = smov 4   ;;  %s6174_s12 = smov 64  }
  0xbf   : > { %4567 = dma.hbm_to_vmem [thread:$0]  (!%p5347_p6), %s6144_s4, 256, %s370_s17, [#allocation9], %s6174_s12, %s6174_s12, %s6173_s28  }
  0xc0   : > { %s5217_s26 = smov [#allocation13]   ;;  %s5218_s18 = smov [#allocation16]  }
  0xc1   : > { %s394_s30 = sshll.u32 %s5217_s26, 4  ;;  %s415_s1 = sshll.u32 %s5218_s18, 4  ;;  %s395_s30 = int_to_ptr.vmem [resolvable:$true] %s394_s30  ;;  %s416_s1 = int_to_ptr.vmem [resolvable:$true] %s415_s1 }
  0xc2   : > { %s4974_s19 = scalar_lea.hbm %s6146_s6, 16 }
  0xc3   : > { %p4975_p13 = scmp.ne.s32.totalorder %s6146_s6, %s4974_s19  ;;  %p4981_p3 = scmp.lt.u32.totalorder %s4974_s19, %s6146_s6 }
  0xc5   : > { %p4977_p0 = pnand %p4975_p13, %p5361_p8 }
  0xc7   : > { %p4978_p1 = pneg %p4977_p0 }
  0xc9   : > { %p4983_p2 = pnand %p4981_p3, %p4978_p1 }
  0xcb   : > { %4986 = shalt.err (!%p4983_p2)
}
  0xcc   : > { %s4987_s17 = scalar_lea.vmem %s395_s30, 16  ;;  %s4994_s14 = scalar_lea.vmem %s395_s30, 32 }
  0xcd   : > { %p4988_p5 = scmp.ne.s32.totalorder %s395_s30, %s4987_s17  ;;  %p4995_p10 = scmp.lt.s32.totalorder %s395_s30, %s395_s30 }
  0xce   : > { %p4996_p11 = scmp.lt.s32.totalorder %s4994_s14, %s4987_s17 }
  0xcf   : > { %p4990_p7 = pnand %p4988_p5, %p5361_p8 }
  0xd0   : > { %p4997_p12 = por %p4996_p11, %p4995_p10 }
  0xd1   : > { %p4991_p9 = pneg %p4990_p7 }
  0xd3   : > { %p4998_p4 = pnand %p4997_p12, %p4991_p9 }
  0xd5   : > { %5001 = shalt.err (!%p4998_p4)
}
  0xd6   : > { %4573 = dma.hbm_to_vmem [thread:$0]  (!%p5347_p6), %s6146_s6, 16, %s395_s30, [#allocation12]  }
  0xd7   : > { %s5002_s15 = scalar_lea.hbm %s6148_s8, 256 }
  0xd8   : > { %p5003_p13 = scmp.ne.s32.totalorder %s6148_s8, %s5002_s15  ;;  %p5009_p3 = scmp.lt.u32.totalorder %s5002_s15, %s6148_s8 }
  0xda   : > { %p5005_p0 = pnand %p5003_p13, %p5361_p8 }
  0xdc   : > { %p5006_p1 = pneg %p5005_p0 }
  0xde   : > { %p5011_p2 = pnand %p5009_p3, %p5006_p1 }
  0xe0   : > { %5014 = shalt.err (!%p5011_p2)
}
  0xe1   : > { %s5015_s17 = scalar_lea.vmem %s416_s1, 256  ;;  %p5023_p10 = scmp.lt.s32.totalorder %s416_s1, %s416_s1 }
  0xe2   : > { %p5016_p5 = scmp.ne.s32.totalorder %s416_s1, %s5015_s17  ;;  %p5024_p11 = scmp.lt.s32.totalorder %s5015_s17, %s5015_s17 }
  0xe4   : > { %p5018_p7 = pnand %p5016_p5, %p5361_p8  ;;  %p5025_p12 = por %p5024_p11, %p5023_p10 }
  0xe6   : > { %p5019_p9 = pneg %p5018_p7 }
  0xe8   : > { %p5026_p4 = pnand %p5025_p12, %p5019_p9 }
  0xea   : > { %5029 = shalt.err (!%p5026_p4)
}
  0xeb   : > { %4579 = dma.hbm_to_vmem [thread:$0]  (!%p5347_p6), %s6148_s8, 256, %s416_s1, [#allocation15], %s6174_s12, %s6174_s12, %s6173_s28  }
  0xec   : > { %s5219_s2 = smov [#allocation19]   ;;  %s5220_s3 = smov [#allocation20]  }
  0xed   : > { %s439_s26 = sshll.u32 %s5219_s2, 4  ;;  %s453_s18 = sshll.u32 %s5220_s3, 4  ;;  %s440_s26 = int_to_ptr.vmem [resolvable:$true] %s439_s26  ;;  %s454_s18 = int_to_ptr.vmem [resolvable:$true] %s453_s18 }
  0xee   : > { %s5030_s19 = scalar_lea.hbm %s6150_s10, 512 }
  0xef   : > { %p5031_p13 = scmp.ne.s32.totalorder %s6150_s10, %s5030_s19  ;;  %p5037_p3 = scmp.lt.u32.totalorder %s5030_s19, %s6150_s10 }
  0xf1   : > { %p5033_p0 = pnand %p5031_p13, %p5361_p8 }
  0xf3   : > { %p5034_p1 = pneg %p5033_p0 }
  0xf5   : > { %p5039_p2 = pnand %p5037_p3, %p5034_p1 }
  0xf7   : > { %5042 = shalt.err (!%p5039_p2)
}
  0xf8   : > { %s5043_s1 = scalar_lea.vmem %s440_s26, 512  ;;  %p5051_p10 = scmp.lt.s32.totalorder %s440_s26, %s440_s26 }
  0xf9   : > { %p5044_p5 = scmp.ne.s32.totalorder %s440_s26, %s5043_s1  ;;  %p5052_p11 = scmp.lt.s32.totalorder %s5043_s1, %s5043_s1 }
  0xfb   : > { %p5046_p7 = pnand %p5044_p5, %p5361_p8  ;;  %p5053_p12 = por %p5052_p11, %p5051_p10 }
  0xfd   : > { %p5047_p9 = pneg %p5046_p7 }
  0xff   : > { %p5054_p4 = pnand %p5053_p12, %p5047_p9 }
 0x101   : > { %5057 = shalt.err (!%p5054_p4)
}
 0x102   : > { %4585 = dma.hbm_to_vmem [thread:$0]  (!%p5347_p6), %s6150_s10, 512, %s440_s26, [#allocation18], %s6174_s12, %s6174_s12, %s6173_s28  }
 0x103   : > { %s5058_s29 = scalar_lea.hbm %s6151_s11, 16 }
 0x104   : > { %p5059_p13 = scmp.ne.s32.totalorder %s6151_s11, %s5058_s29  ;;  %p5065_p3 = scmp.lt.u32.totalorder %s5058_s29, %s6151_s11 }
 0x106   : > { %p5061_p0 = pnand %p5059_p13, %p5361_p8 }
 0x108   : > { %p5062_p1 = pneg %p5061_p0 }
 0x10a   : > { %p5067_p2 = pnand %p5065_p3, %p5062_p1 }
 0x10c   : > { %5070 = shalt.err (!%p5067_p2)
}
 0x10d   : > { %s5071_s30 = scalar_lea.vmem %s454_s18, 16  ;;  %s5078_s28 = scalar_lea.vmem %s454_s18, 32 }
 0x10e   : > { %p5072_p5 = scmp.ne.s32.totalorder %s454_s18, %s5071_s30  ;;  %p5079_p10 = scmp.lt.s32.totalorder %s454_s18, %s454_s18 }
 0x10f   : > { %p5080_p11 = scmp.lt.s32.totalorder %s5078_s28, %s5071_s30 }
 0x110   : > { %p5074_p7 = pnand %p5072_p5, %p5361_p8 }
 0x111   : > { %p5081_p12 = por %p5080_p11, %p5079_p10 }
 0x112   : > { %p5075_p9 = pneg %p5074_p7 }
 0x114   : > { %p5082_p4 = pnand %p5081_p12, %p5075_p9 }
 0x116   : > { %5085 = shalt.err (!%p5082_p4)
}
 0x117   : > { %4588 = dma.hbm_to_vmem [thread:$0]  (!%p5347_p6), %s6151_s11, 16, %s454_s18, [#allocation21]  }
 0x118   : > { %s4110_s25 = sadd.s32 4294967294, %s5206_s24   ;;  %s5588_s13 = sadd.s32 1, %s5206_s24  }
 0x119   : > { %s41_s1 = sadd.s32 1, %s5202_s23  ;;  %s38_s14 = ssub.s32 %s5206_s24, %s5588_s13 }
 0x11a   : > { %p48_p8 = scmp.ne.s32.totalorder %s5202_s23, %s5198_s22  ;;  %p39_p13 = scmp.eq.s32.totalorder %s38_s14, 0 }
 0x11b   : > { %p49_p0 = scmp.eq.s32.totalorder %s5206_s24, 0  ;;  %p54_p1 = scmp.ne.s32.totalorder %s5198_s22, %s5194_s21 }
 0x11c   : > { %p309_p3 = scmp.eq.s32.totalorder %s5329_s27, 1  ;;  %p6175_p5 = scmp.eq.s32.totalorder %s5329_s27, 0 }
 0x11d   : > { %s5600_s2 = scalar_select %p39_p13, %s5202_s23, %s41_s1  }
 0x11e   : > { %p50_p2 = por %p49_p0, %p48_p8  ;;  %p5604_p7 = por %p6175_p5, %p54_p1 }
 0x11f   : > { %p5608_p6 = por %p309_p3, %p48_p8  ;;  %p315_p9 = scmp.eq.s32.totalorder %s4110_s25, 1 }
 0x120   : > { %p4608_p10 = scmp.lt.s32.totalorder %s5206_s24, 2  ;;  %s464_s15 = sand.u32 1, %s5202_s23  }
 0x121   : > { %s6177_s18 = scalar_select %p5608_p6, 1, 0 }
 0x122   : > { %p5614_p11 = por %p315_p9, %p54_p1  ;;  %s4124_s19 = sshll.u32 %s464_s15, 2 }
 0x123   : > { %s4231_s16 = sshll.u32 %s5206_s24, 6  ;;  %s468_s28 = scalar_lea.vmem [#allocation2], %s4124_s19 }
 0x124   : > { %s6178_s29 = scalar_select %p5614_p11, 1, 0 }
 0x125   : > { %s5622_s30 = scalar_lea.hbm %s6140_s0, %s4231_s16  ;;  %s475_s12 = sshll.u32 %s468_s28, 4  ;;  %s5628_s12 = int_to_ptr.vmem [resolvable:$true] %s475_s12 }
 0x126   : > { %p5624_p12 = pnand %p4608_p10, %p50_p2  ;;  %s5630_s25 = scalar_lea.sflag [#allocation3], %s464_s15 }
 0x127   : > { %s5086_s1 = scalar_lea.hbm %s5622_s30, 64  ;;  %s5091_s16 = scalar_lea.hbm %s6140_s0, 128 }
 0x128   : > { %p5087_p4 = scmp.ne.s32.totalorder %s5622_s30, %s5086_s1  ;;  %p5088_p8 = pneg %p5624_p12 }
 0x129   : > { %p5092_p1 = scmp.lt.u32.totalorder %s5622_s30, %s6140_s0  ;;  %p5093_p3 = scmp.lt.u32.totalorder %s5091_s16, %s5086_s1 }
 0x12a   : > { %p5089_p13 = pnand %p5088_p8, %p5087_p4  ;;  %p5095_p5 = scmp.lt.u32.totalorder %s5086_s1, %s5622_s30 }
 0x12b   : > { %p5094_p2 = por %p5093_p3, %p5092_p1 }
 0x12c   : > { %p5090_p0 = pneg %p5089_p13 }
 0x12d   : > { %p5096_p9 = por %p5095_p5, %p5094_p2 }
 0x12f   : > { %p5097_p10 = pnand %p5096_p9, %p5090_p0 }
 0x131   : > { %5100 = shalt.err (!%p5097_p10)
}
 0x132   : > { %s5101_s15 = scalar_lea.vmem %s5628_s12, 64  ;;  %s5221_s28 = smov [#allocation2]  }
 0x133   : > { %p5102_p4 = scmp.ne.s32.totalorder %s5628_s12, %s5101_s15  ;;  %s5106_s14 = sshll.u32 %s5221_s28, 4  ;;  %s5107_s14 = int_to_ptr.vmem [resolvable:$false] %s5106_s14 }
 0x134   : > { %s5108_s19 = scalar_lea.vmem %s5107_s14, 128  ;;  %p5109_p6 = scmp.lt.s32.totalorder %s5628_s12, %s5107_s14 }
 0x135   : > { %p5104_p13 = pnand %p5102_p4, %p5088_p8  ;;  %p5110_p1 = scmp.lt.s32.totalorder %s5108_s19, %s5101_s15 }
 0x137   : > { %p5105_p11 = pneg %p5104_p13  ;;  %p5111_p3 = por %p5110_p1, %p5109_p6 }
 0x139   : > { %p5112_p2 = pnand %p5111_p3, %p5105_p11 }
 0x13b   : > { %5115 = shalt.err (!%p5112_p2)
}
 0x13c   : > { %s5222_s1 = smov 16   ;;  %s5223_s16 = smov 1  }
 0x13d   : > { %4592 = dma.hbm_to_vmem [thread:$0]  (!%p5624_p12), %s5622_s30, 64, %s5628_s12, %s5630_s25, %s5222_s1, %s5222_s1, %s5223_s16  }
 0x13e   : > { %s6180_s20 = sld [smem:[#allocation31_spill]] }
 0x144   : > { %p6181_p8 = scmp.ne.s32.totalorder %s6180_s20, 0 }
 0x145   : > { %s5661_s17 = sand.u32 (!%p6181_p8), 1, %s5198_s22  }
 0x146   : > { %487 = sbr.rel (%p6181_p8) target bundleno = 4671 (0x123f), region = 68  ;;  %s4128_s15 = sshll.u32 (!%p6181_p8), %s5661_s17, 2 }
 0x147   : > { %s490_s28 = scalar_lea.sflag (!%p6181_p8), [#allocation3], %s5661_s17  ;;  %s493_s14 = scalar_lea.vmem (!%p6181_p8), [#allocation2], %s4128_s15 }
 0x14d   : > { %5161 = dma.done.wait (%p5604_p7), %s490_s28, 64  }
 0x14e   : > { %5163 = vsyncadd (%p5604_p7), %s490_s28, 4294967232  ;;  %p6182_p6 = scmp.eq.s32.totalorder %s5329_s27, 0 }
 0x150   : > { %5165 = dma.done.wait (%p6182_p6), [#allocation6], 32   ;;  %p6183_p11 = pmov %p6182_p6 }
 0x151   : > { %p6184_p12 = pmov %p6182_p6 }
 0x152   : > { %5167 = vsyncadd (%p6183_p11), [#allocation6], 4294967264 }
 0x153   : > { %5169 = dma.done.wait (%p6184_p12), [#allocation9], 512   ;;  %p6185_p0 = pmov %p6182_p6 }
 0x155   : > { %5171 = vsyncadd (%p6185_p0), [#allocation9], 4294966784  ;;  %p6186_p5 = pmov %p6185_p0 }
 0x156   : > { %p6187_p9 = pmov %p6185_p0 }
 0x157   : > { %5173 = dma.done.wait (%p6186_p5), [#allocation12], 32  }
 0x158   : > { %5175 = vsyncadd (%p6187_p9), [#allocation12], 4294967264  ;;  %p6188_p7 = pmov %p6185_p0 }
 0x159   : > { %p6189_p10 = pmov %p6185_p0 }
 0x15a   : > { %5177 = dma.done.wait (%p6188_p7), [#allocation15], 272  }
 0x15b   : > { %5179 = vsyncadd (%p6189_p10), [#allocation15], 4294967024  ;;  %p6190_p4 = pmov %p6185_p0 }
 0x15c   : > { %p6191_p13 = pmov %p6185_p0 }
 0x15d   : > { %5181 = dma.done.wait (%p6190_p4), [#allocation18], 528  }
 0x15e   : > { %5183 = vsyncadd (%p6191_p13), [#allocation18], 4294966768  ;;  %p6192_p1 = pmov %p6185_p0 }
 0x15f   : > { %p6193_p3 = pmov %p6185_p0 }
 0x160   : > { %5185 = dma.done.wait (%p6192_p1), [#allocation21], 16  }
 0x161   : > { %5187 = vsyncadd (%p6193_p3), [#allocation21], 4294967280  ;;  %vm600_vm0 = vcmask 254976   ;;  %v581_v0 = vld [vmem:[%s493_s14] sm:$0x1]  ;;  %v4686_v32 = vld [vmem:[#allocation8] sm:$0xff]   ;;  %v683_v55 = vlaneseq }
 0x162   : > { %v583_v1 = vld [vmem:[%s493_s14 + $0x2] sm:$0x1]  ;;  %v582_v2 = vld [vmem:[%s493_s14 + $0x1] sm:$0x1]  ;;  %v5695_v3 = vunpack.c.l.bf16 %v581_v0  ;;  %v584_v6 = vld [vmem:[%s493_s14 + $0x3] sm:$0x1] }
 0x163   : > { %v5697_v4 = vunpack.c.l.bf16 %v583_v1  ;;  %v5699_v5 = vunpack.c.l.bf16 %v582_v2  ;;  %v5701_v7 = vunpack.c.l.bf16 %v584_v6  ;;  %v5224_v33 = vmov 0.0   ;;  %v4687_v34 = vld [vmem:[#allocation8 + $0x8] sm:$0xff]   ;;  %v4141_v50 = vld [vmem:[#allocation5] ss:$0 sm:$0xff]  ;;  %v4142_v60 = vld [vmem:[#allocation7] ss:$0 sm:$0xff] }
 0x164   : > { %v601_v8 = vsel %vm600_vm0, %v5695_v3, 0.0  ;;  %4311 = vmatprep.subr.bf16.mxu0 %v5224_v33  ;;  %vm5225_vm1 = vmmov 0   ;;  %4324 = vmatprep.subr.mxu1 %v5224_v33  ;;  %v5226_v51 = vmov 1983009808   ;;  %v684_v1 = vshrl.u32 %v683_v55, 7  ;;  %s5227_s3 = smov 96  }
 0x165   : > { %v607_v9 = vsel %vm600_vm0, %v5697_v4, 0.0  ;;  %602 = vadd.xlane.f32.xlu0 %v601_v8  ;;  %v604_v10 = vsel %vm600_vm0, %v5699_v5, 0.0  ;;  %v610_v11 = vsel %vm600_vm0, %v5701_v7, 0.0  ;;  %4315 = vmatprep.mubr.msk.bf16.mxu0 %vm5225_vm1, %v5224_v33  ;;  %v681_v52 = vunpack.c.l.s4 %v5226_v51  ;;  %s5228_s30 = smov 64   ;;  %s5229_s12 = smov 88  }
 0x166   : > { %608 = vadd.xlane.f32.xlu1 %v607_v9  ;;  %4312 = vmatpush3.bf16.msra.mxu0 %v4686_v32  ;;  %vm709_vm2 = vcmask 261120   ;;  %vm780_vm3 = vcmask 64512   ;;  %vm1104_vm4 = vcmask 9216   ;;  %vm1155_vm5 = vcmask 1041408   ;;  %s5230_s26 = smov 120   ;;  %s5231_s25 = smov 56  }
 0x167   : > { %4313 = vmatprep.subr.bf16.mxu0 %v5224_v33  ;;  %4326 = vmatprep.mubr.msk.f32.mxu1 %vm5225_vm1, %v5224_v33  ;;  %v682_v61 = vunpack.c.0.s8 %v681_v52  ;;  %vm1151_vm6 = vcmask 15360   ;;  %s5232_s19 = smov 80   ;;  %s5233_s1 = smov 112   ;;  %vm3503_vm7 = vcmask 130048   ;;  %vm3508_vm8 = vcmask 195584  }
 0x168   : > { %s5234_s16 = smov 48   ;;  %s5235_s20 = smov 72   ;;  %vm3839_vm9 = vcmask 523264   ;;  %vm3913_vm10 = vcmask 253952  }
 0x169   : > { %605 = vadd.xlane.f32.xlu0 %v604_v10  ;;  %s5236_s28 = smov 104   ;;  %s5237_s14 = smov 40  }
 0x16a   : > { %611 = vadd.xlane.f32.xlu1 %v610_v11  ;;  %4314 = vmatpush3.bf16.msra.mxu0 %v4687_v34  ;;  %v5727_v11 = vsub.s32 %v682_v61, %v684_v1  ;;  %p6195_p8 = scmp.ne.s32.totalorder %s6177_s18, 0 }
 0x16b   : > { %4319 = vmatprep.subr.mxu0 %v5224_v33 }
 0x1f2   : > { %v603_v12 = vpop.xlane.xlu0 %602 }
 0x1f3   : > { %v609_v13 = vpop.xlane.xlu1 %608  ;;  %v614_v14 = vmul.f32 0.03125, %v603_v12 }
 0x1f4   : > { %v616_v15 = vmul.f32 0.03125, %v609_v13 }
 0x1f5   : > { %v618_v16 = vsub.f32 %v5695_v3, %v614_v14 }
 0x1f6   : > { %v620_v17 = vsub.f32 %v5697_v4, %v616_v15  ;;  %v606_v18 = vpop.xlane.xlu0 %605 }
 0x1f7   : > { %v612_v19 = vpop.xlane.xlu1 %611  ;;  %v615_v20 = vmul.f32 0.03125, %v606_v18  ;;  %v622_v22 = vmul.f32 %v618_v16, %v618_v16 }
 0x1f8   : > { %v617_v21 = vmul.f32 0.03125, %v612_v19  ;;  %v624_v23 = vmul.f32 %v620_v17, %v620_v17 }
 0x1f9   : > { %v619_v24 = vsub.f32 %v5699_v5, %v615_v20  ;;  %v626_v26 = vsel %vm600_vm0, %v622_v22, 0.0 }
 0x1fa   : > { %v621_v25 = vsub.f32 %v5701_v7, %v617_v21  ;;  %627 = vadd.xlane.f32.xlu0 %v626_v26  ;;  %v632_v27 = vsel %vm600_vm0, %v624_v23, 0.0 }
 0x1fb   : > { %v623_v28 = vmul.f32 %v619_v24, %v619_v24 }
 0x1fc   : > { %v625_v29 = vmul.f32 %v621_v25, %v621_v25 }
 0x1fd   : > { %v629_v30 = vsel %vm600_vm0, %v623_v28, 0.0 }
 0x1fe   : > { %633 = vadd.xlane.f32.xlu0 %v632_v27  ;;  %630 = vadd.xlane.f32.xlu1 %v629_v30  ;;  %v635_v31 = vsel %vm600_vm0, %v625_v29, 0.0 }
 0x202   : > { %636 = vadd.xlane.f32.xlu1 %v635_v31 }
 0x287   : > { %v628_v35 = vpop.xlane.xlu0 %627 }
 0x288   : > { %v638_v36 = vmul.f32 0.03125, %v628_v35 }
 0x28a   : > { %v642_v37 = vadd.f32 1e-05, %v638_v36 }
 0x28b   : > { %v631_v38 = vpop.xlane.xlu1 %630  ;;  %v634_v39 = vpop.xlane.xlu0 %633 }
 0x28c   : > { %4696 = vrsqrt.f32 %v642_v37  ;;  %v639_v40 = vmul.f32 0.03125, %v631_v38  ;;  %v640_v41 = vmul.f32 0.03125, %v634_v39 }
 0x28e   : > { %v643_v42 = vadd.f32 1e-05, %v639_v40  ;;  %v644_v43 = vadd.f32 1e-05, %v640_v41 }
 0x28f   : > { %v637_v44 = vpop.xlane.xlu1 %636 }
 0x290   : > { %4698 = vrsqrt.f32 %v643_v42  ;;  %v641_v45 = vmul.f32 0.03125, %v637_v44 }
 0x291   : > { %4700 = vrsqrt.f32 %v644_v43 }
 0x292   : > { %v645_v46 = vadd.f32 1e-05, %v641_v45 }
 0x294   : > { %4702 = vrsqrt.f32 %v645_v46 }
 0x296   : > { %v4697_v47 = vpop.eup %4696 }
 0x297   : > { %v650_v48 = vmul.f32 %v4697_v47, %v618_v16 }
 0x299   : > { %v660_v57 = vmul.f32 %v4141_v50, %v650_v48 }
 0x29a   : > { %v4699_v49 = vpop.eup %4698 }
 0x29b   : > { %v4701_v53 = vpop.eup %4700  ;;  %v651_v54 = vmul.f32 %v4699_v49, %v619_v24  ;;  %v670_v6 = vadd.f32 %v4142_v60, %v660_v57 }
 0x29c   : > { %v652_v56 = vmul.f32 %v4701_v53, %v620_v17 }
 0x29d   : > { %v661_v58 = vmul.f32 %v4141_v50, %v651_v54 }
 0x29e   : > { %v4703_v59 = vpop.eup %4702  ;;  %v662_v62 = vmul.f32 %v4141_v50, %v652_v56 }
 0x29f   : > { %v653_v63 = vmul.f32 %v4703_v59, %v621_v25  ;;  %v671_v0 = vadd.f32 %v4142_v60, %v661_v58 }
 0x2a0   : > { %v672_v8 = vadd.f32 %v4142_v60, %v662_v62 }
 0x2a1   : > { %v663_v2 = vmul.f32 %v4141_v50, %v653_v63  ;;  %v678_v10 = vcombine.low %v670_v6, %v671_v0 }
 0x2a3   : > { %v673_v9 = vadd.f32 %v4142_v60, %v663_v2  ;;  %v686_v13 = vrot.slane %v678_v10, %v5727_v11 }
 0x2a5   : > { %v679_v12 = vcombine.low %v672_v8, %v673_v9 }
 0x2a7   : > { %v693_v14 = vrot.slane %v679_v12, %v5727_v11 }
 0x2a9   : > { %v694_v15 = vcombine.low %v686_v13, %v693_v14 }
 0x2ab   : > { %v696_v16 = vpack.c.bf16 %v694_v15, %v694_v15 }
 0x2ad   : > { %4316 = vmatmul.mubr.msk.bf16.vlgmr.msra.gmra.mrb[0].mxu0 %vm709_vm2, %v696_v16 }
 0x2ae   : > { %4321 = vmatprep.mubr.msk.f32.mxu0 %vm5225_vm1, %v5224_v33 }
 0x380   : > { %v747_v17 = vpop.f32.mrb[0].mxu0 }
 0x381   : > { %v754_v18 = vcombine.high %v747_v17, %v747_v17  ;;  %v761_v19 = vrot.slane %v747_v17, %v5727_v11  ;;  %v4317_v20 = vpop.f32.mrb[1].mxu0 }
 0x382   : > { %v750_v21 = vpop.f32.mrb[2].mxu0 }
 0x383   : > { %v769_v22 = vcombine.high %v761_v19, %v761_v19  ;;  %v5736_v23 = vrot.slane %v761_v19, %v5727_v11  ;;  %v4318_v24 = vpop.f32.mrb[3].mxu0  ;;  %v768_v25 = vrot.slane %v754_v18, %v5727_v11 }
 0x385   : > { %v5740_v26 = vrot.slane %v769_v22, %v5727_v11  ;;  %778 = vrot.lane.b32.xlu0 %v5736_v23, %s5227_s3  ;;  %v770_v27 = vcombine.high %v768_v25, %v768_v25  ;;  %v5745_v28 = vrot.slane %v768_v25, %v5727_v11 }
 0x387   : > { %862 = vrot.lane.b32.xlu1 %v5740_v26, %s5227_s3  ;;  %v5749_v29 = vrot.slane %v770_v27, %v5727_v11 }
 0x38b   : > { %945 = vrot.lane.b32.xlu1 %v5745_v28, %s5227_s3 }
 0x38f   : > { %1028 = vrot.lane.b32.xlu1 %v5749_v29, %s5227_s3  ;;  %s5238_s3 = smov 8  }
 0x3f7   : > { %v779_v30 = vpop.permute.xlu0 %778 }
 0x3f8   : > { %4320 = vmatpush3.xpose.msk.msra.mxu0 %vm780_vm3, %v779_v30 }
 0x3f9   : > { %v863_v31 = vpop.permute.xlu1 %862  ;;  %4334 = vmatprep.subr.mxu0 %v5224_v33 }
 0x3fa   : > { %4325 = vmatpush3.xpose.msk.msra.mxu1 %vm780_vm3, %v863_v31 }
 0x3fb   : > { %4322 = vmatmul.mubr.msk.f32.vlgmr.msra.gmra.mrb[4].mxu0 %vm780_vm3, %v761_v19  ;;  %4329 = vmatprep.subr.mxu1 %v5224_v33 }
 0x3fc   : > { %4336 = vmatprep.mubr.msk.f32.mxu0 %vm5225_vm1, %v5224_v33 }
 0x3fd   : > { %4327 = vmatmul.mubr.msk.f32.vlgmr.msra.gmra.mrb[0].mxu1 %vm780_vm3, %v769_v22  ;;  %v946_v32 = vpop.permute.xlu1 %945 }
 0x3fe   : > { %4330 = vmatpush3.xpose.msk.msra.mxu1 %vm780_vm3, %v946_v32  ;;  %4331 = vmatprep.mubr.msk.f32.mxu1 %vm5225_vm1, %v5224_v33 }
 0x3ff   : > { %4339 = vmatprep.subr.mxu1 %v5224_v33 }
 0x401   : > { %4332 = vmatmul.mubr.msk.f32.vlgmr.msra.gmra.mrb[2].mxu1 %vm780_vm3, %v768_v25  ;;  %v1029_v34 = vpop.permute.xlu1 %1028 }
 0x402   : > { %4335 = vmatpush3.xpose.msk.msra.mxu0 %vm780_vm3, %v1029_v34  ;;  %4341 = vmatprep.mubr.msk.f32.mxu1 %vm5225_vm1, %v5224_v33 }
 0x403   : > { %4344 = vmatprep.subr.mxu0 %v5224_v33 }
 0x405   : > { %4337 = vmatmul.mubr.msk.f32.vlgmr.msra.gmra.mrb[6].mxu0 %vm780_vm3, %v770_v27 }
 0x406   : > { %4346 = vmatprep.mubr.msk.f32.mxu0 %vm5225_vm1, %v5224_v33 }
 0x4ce   : > { %v851_v35 = vpop.f32.mrb[4].mxu0 }
 0x4cf   : > { %v4323_v36 = vpop.f32.mrb[5].mxu0  ;;  %v1105_v37 = vsel %vm1104_vm4, %v851_v35, -inf }
 0x4d0   : > { %v934_v38 = vpop.f32.mrb[0].mxu1  ;;  %1106 = vmax.xlane.f32.xlu0 %v1105_v37 }
 0x4d1   : > { %v4328_v39 = vpop.f32.mrb[1].mxu1  ;;  %v1108_v40 = vsel %vm1104_vm4, %v934_v38, -inf }
 0x4d2   : > { %1109 = vmax.xlane.f32.xlu1 %v1108_v40 }
 0x4d4   : > { %v1017_v41 = vpop.f32.mrb[2].mxu1 }
 0x4d5   : > { %v4333_v42 = vpop.f32.mrb[3].mxu1  ;;  %v1111_v43 = vsel %vm1104_vm4, %v1017_v41, -inf }
 0x4d6   : > { %1112 = vmax.xlane.f32.xlu0 %v1111_v43 }
 0x4d8   : > { %v1100_v44 = vpop.f32.mrb[6].mxu0 }
 0x4d9   : > { %v4338_v45 = vpop.f32.mrb[7].mxu0  ;;  %v1114_v46 = vsel %vm1104_vm4, %v1100_v44, -inf }
 0x4da   : > { %1115 = vmax.xlane.f32.xlu0 %v1114_v46 }
 0x4e3   : > { %1228 = vrot.lane.b32.xlu1 %v5740_v26, %s5228_s30 }
 0x4e7   : > { %1305 = vrot.lane.b32.xlu1 %v5745_v28, %s5228_s30 }
 0x4eb   : > { %1382 = vrot.lane.b32.xlu1 %v5749_v29, %s5228_s30 }
 0x4ef   : > { %1539 = vrot.lane.b32.xlu1 %v5740_v26, %s5229_s12 }
 0x4f0   : > { %1149 = vrot.lane.b32.xlu0 %v5736_v23, %s5228_s30  ;;  %s5239_s30 = smov 16  }
 0x4f4   : > { %1461 = vrot.lane.b32.xlu0 %v5736_v23, %s5229_s12 }
 0x55d   : > { %v1107_v47 = vpop.xlane.xlu0 %1106 }
 0x55e   : > { %v1117_v48 = vsub.f32 %v851_v35, %v1107_v47 }
 0x55f   : > { %v1110_v49 = vpop.xlane.xlu1 %1109 }
 0x560   : > { %v1121_v50 = vmul.f32 1.442695, %v1117_v48  ;;  %v1118_v51 = vsub.f32 %v934_v38, %v1110_v49 }
 0x562   : > { %4704 = vpow2.f32 %v1121_v50  ;;  %v1123_v52 = vmul.f32 1.442695, %v1118_v51 }
 0x563   : > { %v1229_v53 = vpop.permute.xlu1 %1228  ;;  %v1113_v54 = vpop.xlane.xlu0 %1112 }
 0x564   : > { %4706 = vpow2.f32 %v1123_v52  ;;  %v1119_v55 = vsub.f32 %v1017_v41, %v1113_v54  ;;  %4345 = vmatpush3.msk.msra.mxu0 %vm1155_vm5, %v1229_v53 }
 0x565   : > { %4354 = vmatprep.subr.mxu0 %v5224_v33 }
 0x566   : > { %v1125_v56 = vmul.f32 1.442695, %v1119_v55 }
 0x567   : > { %v1116_v57 = vpop.xlane.xlu0 %1115  ;;  %v1306_v9 = vpop.permute.xlu1 %1305 }
 0x568   : > { %4708 = vpow2.f32 %v1125_v56  ;;  %v1120_v58 = vsub.f32 %v1100_v44, %v1116_v57 }
 0x56a   : > { %v1127_v59 = vmul.f32 1.442695, %v1120_v58 }
 0x56b   : > { %v1150_v60 = vpop.permute.xlu0 %1149  ;;  %v1383_v10 = vpop.permute.xlu1 %1382 }
 0x56c   : > { %v4705_v61 = vpop.eup %4704  ;;  %4710 = vpow2.f32 %v1127_v59  ;;  %4340 = vmatpush3.msk.msra.mxu1 %vm1155_vm5, %v1150_v60 }
 0x56d   : > { %v1129_v62 = vsel %vm1104_vm4, %v4705_v61, 0.0  ;;  %4349 = vmatprep.subr.mxu1 %v5224_v33 }
 0x56e   : > { %v4707_v63 = vpop.eup %4706  ;;  %1130 = vadd.xlane.f32.xlu0 %v1129_v62 }
 0x56f   : > { %v1132_v0 = vsel %vm1104_vm4, %v4707_v63, 0.0  ;;  %v1462_v12 = vpop.permute.xlu0 %1461  ;;  %v1540_v13 = vpop.permute.xlu1 %1539 }
 0x570   : > { %1133 = vadd.xlane.f32.xlu1 %v1132_v0 }
 0x572   : > { %v4709_v1 = vpop.eup %4708 }
 0x573   : > { %v1135_v2 = vsel %vm1104_vm4, %v4709_v1, 0.0 }
 0x574   : > { %1136 = vadd.xlane.f32.xlu0 %v1135_v2 }
 0x576   : > { %v4711_v6 = vpop.eup %4710 }
 0x577   : > { %v1138_v8 = vsel %vm1104_vm4, %v4711_v6, 0.0 }
 0x578   : > { %1139 = vadd.xlane.f32.xlu1 %v1138_v8 }
 0x589   : > { %1537 = vrot.lane.b32.xlu1 %v5740_v26, %s5230_s26 }
 0x58a   : > { %1459 = vrot.lane.b32.xlu0 %v5736_v23, %s5230_s26 }
 0x58d   : > { %1695 = vrot.lane.b32.xlu1 %v5749_v29, %s5229_s12 }
 0x58e   : > { %1617 = vrot.lane.b32.xlu0 %v5745_v28, %s5229_s12  ;;  %s5240_s12 = smov 24  }
 0x591   : > { %1693 = vrot.lane.b32.xlu1 %v5749_v29, %s5230_s26 }
 0x592   : > { %1615 = vrot.lane.b32.xlu0 %v5745_v28, %s5230_s26  ;;  %s4232_s26 = sshll.u32 %s5329_s27, 6  ;;  %s3919_s27 = scalar_lea.sflag [#allocation4], %s5661_s17 }
 0x5fb   : > { %v1131_v14 = vpop.xlane.xlu0 %1130 }
 0x5fc   : > { %4712 = vrcp.f32 %v1131_v14 }
 0x5fd   : > { %v1134_v15 = vpop.xlane.xlu1 %1133 }
 0x5fe   : > { %4714 = vrcp.f32 %v1134_v15 }
 0x601   : > { %v1137_v16 = vpop.xlane.xlu0 %1136 }
 0x602   : > { %4716 = vrcp.f32 %v1137_v16 }
 0x605   : > { %v1140_v17 = vpop.xlane.xlu1 %1139  ;;  %v1460_v22 = vpop.permute.xlu0 %1459 }
 0x606   : > { %v4713_v18 = vpop.eup %4712  ;;  %4718 = vrcp.f32 %v1140_v17 }
 0x607   : > { %v1145_v19 = vmul.f32 %v4713_v18, %v4705_v61 }
 0x608   : > { %v4715_v20 = vpop.eup %4714 }
 0x609   : > { %v1146_v21 = vmul.f32 %v4715_v20, %v4707_v63  ;;  %4342 = vmatmul.mubr.msk.f32.vlgmr.msra.gmra.mrb[4].mxu1 %vm1151_vm6, %v1145_v19  ;;  %v1538_v27 = vpop.permute.xlu1 %1537  ;;  %v1618_v32 = vpop.permute.xlu0 %1617 }
 0x60a   : > { %4350 = vmatpush3.msk.msra.mxu1 %vm1155_vm5, %v1306_v9  ;;  %4351 = vmatprep.mubr.msk.f32.mxu1 %vm5225_vm1, %v5224_v33 }
 0x60b   : > { %4347 = vmatmul.mubr.msk.f32.vlgmr.msra.gmra.mrb[8].mxu0 %vm1151_vm6, %v1146_v21  ;;  %4359 = vmatprep.subr.mxu1 %v5224_v33 }
 0x60c   : > { %v4717_v24 = vpop.eup %4716  ;;  %4355 = vmatpush3.msk.msra.mxu0 %vm1155_vm5, %v1383_v10  ;;  %4356 = vmatprep.mubr.msk.f32.mxu0 %vm5225_vm1, %v5224_v33 }
 0x60d   : > { %v1147_v25 = vmul.f32 %v4717_v24, %v4709_v1  ;;  %4364 = vmatprep.subr.mxu0 %v5224_v33  ;;  %v1696_v34 = vpop.permute.xlu1 %1695  ;;  %v1616_v35 = vpop.permute.xlu0 %1615 }
 0x60f   : > { %4352 = vmatmul.mubr.msk.f32.vlgmr.msra.gmra.mrb[6].mxu1 %vm1151_vm6, %v1147_v25 }
 0x610   : > { %v4719_v30 = vpop.eup %4718  ;;  %4361 = vmatprep.mubr.msk.f32.mxu1 %vm5225_vm1, %v5224_v33 }
 0x611   : > { %v1148_v31 = vmul.f32 %v4719_v30, %v4711_v6  ;;  %4360 = vmatpush3.xpose.msk.msra.mxu1 %vm780_vm3, %v1462_v12  ;;  %v1694_v36 = vpop.permute.xlu1 %1693 }
 0x612   : > { %4369 = vmatprep.subr.mxu1 %v5224_v33 }
 0x613   : > { %4357 = vmatmul.mubr.msk.f32.vlgmr.msra.gmra.mrb[10].mxu0 %vm1151_vm6, %v1148_v31 }
 0x614   : > { %4362 = vmatmul.mubr.msk.f32.vlgmr.msra.gmra.mrb[8].mxu1 %vm780_vm3, %v1460_v22  ;;  %4365 = vmatpush3.xpose.msk.msra.mxu0 %vm780_vm3, %v1540_v13 }
 0x615   : > { %4370 = vmatpush3.xpose.msk.msra.mxu1 %vm780_vm3, %v1618_v32  ;;  %4366 = vmatprep.mubr.msk.f32.mxu0 %vm5225_vm1, %v5224_v33 }
 0x616   : > { %4371 = vmatprep.mubr.msk.f32.mxu1 %vm5225_vm1, %v5224_v33  ;;  %4374 = vmatprep.subr.mxu0 %v5224_v33 }
 0x617   : > { %4367 = vmatmul.mubr.msk.f32.vlgmr.msra.gmra.mrb[12].mxu0 %vm780_vm3, %v1538_v27  ;;  %4379 = vmatprep.subr.mxu1 %v5224_v33 }
 0x618   : > { %4372 = vmatmul.mubr.msk.f32.vlgmr.msra.gmra.mrb[10].mxu1 %vm780_vm3, %v1616_v35  ;;  %4375 = vmatpush3.xpose.msk.msra.mxu0 %vm780_vm3, %v1696_v34 }
 0x619   : > { %4376 = vmatprep.mubr.msk.f32.mxu0 %vm5225_vm1, %v5224_v33  ;;  %4384 = vmatprep.subr.mxu0 %v5224_v33 }
 0x61a   : > { %4381 = vmatprep.mubr.msk.f32.mxu1 %vm5225_vm1, %v5224_v33 }
 0x61b   : > { %4377 = vmatmul.mubr.msk.f32.vlgmr.msra.gmra.mrb[14].mxu0 %vm780_vm3, %v1694_v36 }
 0x61c   : > { %4386 = vmatprep.mubr.msk.f32.mxu0 %vm5225_vm1, %v5224_v33 }
 0x6dc   : > { %v5836_v37 = vpop.f32.mrb[4].mxu1 }
 0x6dd   : > { %v4343_v38 = vpop.f32.mrb[5].mxu1 }
 0x6de   : > { %v5838_v39 = vpop.f32.mrb[8].mxu0 }
 0x6df   : > { %v4348_v40 = vpop.f32.mrb[9].mxu0 }
 0x6e2   : > { %v5840_v41 = vpop.f32.mrb[6].mxu1 }
 0x6e3   : > { %v4353_v42 = vpop.f32.mrb[7].mxu1 }
 0x6e6   : > { %v5842_v43 = vpop.f32.mrb[10].mxu0 }
 0x6e7   : > { %v1533_v44 = vpop.f32.mrb[8].mxu1  ;;  %v4358_v45 = vpop.f32.mrb[11].mxu0 }
 0x6e8   : > { %v4363_v46 = vpop.f32.mrb[9].mxu1  ;;  %v1771_v47 = vsel %vm1104_vm4, %v1533_v44, -inf }
 0x6e9   : > { %1772 = vmax.xlane.f32.xlu0 %v1771_v47 }
 0x6ea   : > { %v1611_v48 = vpop.f32.mrb[12].mxu0 }
 0x6eb   : > { %v1689_v49 = vpop.f32.mrb[10].mxu1  ;;  %v4368_v50 = vpop.f32.mrb[13].mxu0  ;;  %v1774_v51 = vsel %vm1104_vm4, %v1611_v48, -inf }
 0x6ec   : > { %v4373_v52 = vpop.f32.mrb[11].mxu1  ;;  %v1777_v53 = vsel %vm1104_vm4, %v1689_v49, -inf  ;;  %1775 = vmax.xlane.f32.xlu1 %v1774_v51 }
 0x6ed   : > { %1778 = vmax.xlane.f32.xlu0 %v1777_v53 }
 0x6ee   : > { %v1767_v54 = vpop.f32.mrb[14].mxu0 }
 0x6ef   : > { %v4378_v55 = vpop.f32.mrb[15].mxu0  ;;  %v1780_v56 = vsel %vm1104_vm4, %v1767_v54, -inf }
 0x6f1   : > { %1781 = vmax.xlane.f32.xlu0 %v1780_v56 }
 0x6fd   : > { %1892 = vrot.lane.b32.xlu1 %v5740_v26, %s5231_s25 }
 0x701   : > { %1969 = vrot.lane.b32.xlu1 %v5745_v28, %s5231_s25 }
 0x705   : > { %2046 = vrot.lane.b32.xlu1 %v5749_v29, %s5231_s25 }
 0x707   : > { %1815 = vrot.lane.b32.xlu0 %v5736_v23, %s5231_s25  ;;  %s577_s25 = scalar_lea.vmem [#allocation22], %s4128_s15 }
 0x709   : > { %2203 = vrot.lane.b32.xlu1 %v5740_v26, %s5232_s19 }
 0x70b   : > { %2125 = vrot.lane.b32.xlu0 %v5736_v23, %s5232_s19 }
 0x776   : > { %v1773_v57 = vpop.xlane.xlu0 %1772 }
 0x777   : > { %v1783_v58 = vsub.f32 %v1533_v44, %v1773_v57 }
 0x779   : > { %v1787_v59 = vmul.f32 1.442695, %v1783_v58  ;;  %v1776_v60 = vpop.xlane.xlu1 %1775 }
 0x77a   : > { %v1779_v61 = vpop.xlane.xlu0 %1778  ;;  %v1784_v62 = vsub.f32 %v1611_v48, %v1776_v60 }
 0x77b   : > { %4720 = vpow2.f32 %v1787_v59  ;;  %v1785_v63 = vsub.f32 %v1689_v49, %v1779_v61 }
 0x77c   : > { %v1789_v0 = vmul.f32 1.442695, %v1784_v62 }
 0x77d   : > { %v1791_v1 = vmul.f32 1.442695, %v1785_v63  ;;  %v1893_v2 = vpop.permute.xlu1 %1892 }
 0x77e   : > { %4722 = vpow2.f32 %v1789_v0  ;;  %v1782_v6 = vpop.xlane.xlu0 %1781  ;;  %4385 = vmatpush3.msk.msra.mxu0 %vm1155_vm5, %v1893_v2 }
 0x77f   : > { %4724 = vpow2.f32 %v1791_v1  ;;  %4394 = vmatprep.subr.mxu0 %v5224_v33  ;;  %v1786_v16 = vsub.f32 %v1767_v54, %v1782_v6 }
 0x781   : > { %v1793_v17 = vmul.f32 1.442695, %v1786_v16  ;;  %v1970_v20 = vpop.permute.xlu1 %1969 }
 0x782   : > { %v1816_v8 = vpop.permute.xlu0 %1815 }
 0x783   : > { %4380 = vmatpush3.msk.msra.mxu1 %vm1155_vm5, %v1816_v8  ;;  %4726 = vpow2.f32 %v1793_v17 }
 0x784   : > { %4389 = vmatprep.subr.mxu1 %v5224_v33 }
 0x785   : > { %v4721_v9 = vpop.eup %4720  ;;  %v2047_v21 = vpop.permute.xlu1 %2046 }
 0x786   : > { %v1795_v10 = vsel %vm1104_vm4, %v4721_v9, 0.0  ;;  %v2126_v22 = vpop.permute.xlu0 %2125 }
 0x787   : > { %1796 = vadd.xlane.f32.xlu0 %v1795_v10 }
 0x788   : > { %v4723_v12 = vpop.eup %4722 }
 0x789   : > { %v4725_v13 = vpop.eup %4724  ;;  %v1798_v14 = vsel %vm1104_vm4, %v4723_v12, 0.0  ;;  %v2204_v24 = vpop.permute.xlu1 %2203 }
 0x78a   : > { %1799 = vadd.xlane.f32.xlu1 %v1798_v14  ;;  %v1801_v15 = vsel %vm1104_vm4, %v4725_v13, 0.0 }
 0x78b   : > { %1802 = vadd.xlane.f32.xlu0 %v1801_v15 }
 0x78d   : > { %v4727_v18 = vpop.eup %4726 }
 0x78e   : > { %v1804_v19 = vsel %vm1104_vm4, %v4727_v18, 0.0 }
 0x79b   : > { %2201 = vrot.lane.b32.xlu1 %v5740_v26, %s5233_s1 }
 0x7a1   : > { %2123 = vrot.lane.b32.xlu0 %v5736_v23, %s5233_s1 }
 0x7a5   : > { %2281 = vrot.lane.b32.xlu0 %v5745_v28, %s5232_s19 }
 0x7a9   : > { %2279 = vrot.lane.b32.xlu0 %v5745_v28, %s5233_s1 }
 0x7ad   : > { %2479 = vrot.lane.b32.xlu0 %v5736_v23, %s5234_s16 }
 0x7bf   : > { %1805 = vadd.xlane.f32.xlu1 %v1804_v19 }
 0x7d0   : > { %2359 = vrot.lane.b32.xlu1 %v5749_v29, %s5232_s19  ;;  %s3932_s19 = sshll.u32 %s577_s25, 4  ;;  %s6093_s19 = int_to_ptr.vmem [resolvable:$true] %s3932_s19 }
 0x7d1   : > { %s5116_s15 = scalar_lea.vmem %s6093_s19, 64 }
 0x7d2   : > { %p5117_p2 = scmp.ne.s32.totalorder %s6093_s19, %s5116_s15 }
 0x7d4   : > { %2357 = vrot.lane.b32.xlu1 %v5749_v29, %s5233_s1  ;;  %p5118_p6 = pnand %p5117_p2, %p6195_p8 }
 0x7d6   : > { %p5119_p11 = pneg %p5118_p6 }
 0x7d8   : > { %2556 = vrot.lane.b32.xlu1 %v5740_v26, %s5234_s16 }
 0x7dc   : > { %2633 = vrot.lane.b32.xlu1 %v5745_v28, %s5234_s16 }
 0x7e0   : > { %2710 = vrot.lane.b32.xlu1 %v5749_v29, %s5234_s16 }
 0x814   : > { %v1797_v25 = vpop.xlane.xlu0 %1796 }
 0x815   : > { %4728 = vrcp.f32 %v1797_v25 }
 0x817   : > { %v1800_v27 = vpop.xlane.xlu1 %1799 }
 0x818   : > { %4730 = vrcp.f32 %v1800_v27  ;;  %v1803_v30 = vpop.xlane.xlu0 %1802 }
 0x819   : > { %4732 = vrcp.f32 %v1803_v30 }
 0x81b   : > { %v2202_v46 = vpop.permute.xlu1 %2201 }
 0x81c   : > { %v2124_v32 = vpop.permute.xlu0 %2123 }
 0x81f   : > { %v4729_v31 = vpop.eup %4728 }
 0x820   : > { %v1811_v34 = vmul.f32 %v4729_v31, %v4721_v9  ;;  %v2282_v42 = vpop.permute.xlu0 %2281 }
 0x822   : > { %v4731_v35 = vpop.eup %4730  ;;  %4382 = vmatmul.mubr.msk.f32.vlgmr.msra.gmra.mrb[12].mxu1 %vm1151_vm6, %v1811_v34 }
 0x823   : > { %v4733_v36 = vpop.eup %4732  ;;  %v1812_v38 = vmul.f32 %v4731_v35, %v4723_v12  ;;  %4390 = vmatpush3.msk.msra.mxu1 %vm1155_vm5, %v1970_v20  ;;  %4391 = vmatprep.mubr.msk.f32.mxu1 %vm5225_vm1, %v5224_v33 }
 0x824   : > { %v1813_v40 = vmul.f32 %v4733_v36, %v4725_v13  ;;  %4399 = vmatprep.subr.mxu1 %v5224_v33  ;;  %v2280_v44 = vpop.permute.xlu0 %2279 }
 0x825   : > { %4387 = vmatmul.mubr.msk.f32.vlgmr.msra.gmra.mrb[16].mxu0 %vm1151_vm6, %v1812_v38 }
 0x826   : > { %4392 = vmatmul.mubr.msk.f32.vlgmr.msra.gmra.mrb[14].mxu1 %vm1151_vm6, %v1813_v40  ;;  %4395 = vmatpush3.msk.msra.mxu0 %vm1155_vm5, %v2047_v21 }
 0x827   : > { %4401 = vmatprep.mubr.msk.f32.mxu1 %vm5225_vm1, %v5224_v33  ;;  %4396 = vmatprep.mubr.msk.f32.mxu0 %vm5225_vm1, %v5224_v33 }
 0x828   : > { %4404 = vmatprep.subr.mxu0 %v5224_v33  ;;  %v2480_v45 = vpop.permute.xlu0 %2479 }
 0x82a   : > { %4400 = vmatpush3.xpose.msk.msra.mxu1 %vm780_vm3, %v2126_v22 }
 0x82b   : > { %4409 = vmatprep.subr.mxu1 %v5224_v33 }
 0x82d   : > { %4402 = vmatmul.mubr.msk.f32.vlgmr.msra.gmra.mrb[16].mxu1 %vm780_vm3, %v2124_v32 }
 0x82e   : > { %4410 = vmatpush3.xpose.msk.msra.mxu1 %vm780_vm3, %v2282_v42  ;;  %4411 = vmatprep.mubr.msk.f32.mxu1 %vm5225_vm1, %v5224_v33 }
 0x82f   : > { %4419 = vmatprep.subr.mxu1 %v5224_v33 }
 0x831   : > { %4412 = vmatmul.mubr.msk.f32.vlgmr.msra.gmra.mrb[18].mxu1 %vm780_vm3, %v2280_v44 }
 0x832   : > { %4420 = vmatpush3.msk.msra.mxu1 %vm1155_vm5, %v2480_v45  ;;  %4421 = vmatprep.mubr.msk.f32.mxu1 %vm5225_vm1, %v5224_v33 }
 0x833   : > { %4429 = vmatprep.subr.mxu1 %v5224_v33 }
 0x84c   : > { %v1806_v47 = vpop.xlane.xlu1 %1805 }
 0x84d   : > { %4734 = vrcp.f32 %v1806_v47 }
 0x850   : > { %v2360_v48 = vpop.permute.xlu1 %2359 }
 0x854   : > { %v2358_v51 = vpop.permute.xlu1 %2357 }
 0x857   : > { %v4735_v49 = vpop.eup %4734 }
 0x858   : > { %v1814_v50 = vmul.f32 %v4735_v49, %v4727_v18  ;;  %v2557_v52 = vpop.permute.xlu1 %2556 }
 0x85a   : > { %4397 = vmatmul.mubr.msk.f32.vlgmr.msra.gmra.mrb[18].mxu0 %vm1151_vm6, %v1814_v50 }
 0x85b   : > { %4405 = vmatpush3.xpose.msk.msra.mxu0 %vm780_vm3, %v2204_v24  ;;  %4406 = vmatprep.mubr.msk.f32.mxu0 %vm5225_vm1, %v5224_v33 }
 0x85c   : > { %4414 = vmatprep.subr.mxu0 %v5224_v33  ;;  %v2634_v19 = vpop.permute.xlu1 %2633 }
 0x85e   : > { %4407 = vmatmul.mubr.msk.f32.vlgmr.msra.gmra.mrb[20].mxu0 %vm780_vm3, %v2202_v46 }
 0x85f   : > { %4415 = vmatpush3.xpose.msk.msra.mxu0 %vm780_vm3, %v2360_v48  ;;  %4416 = vmatprep.mubr.msk.f32.mxu0 %vm5225_vm1, %v5224_v33 }
 0x860   : > { %4424 = vmatprep.subr.mxu0 %v5224_v33  ;;  %v2711_v20 = vpop.permute.xlu1 %2710 }
 0x862   : > { %4417 = vmatmul.mubr.msk.f32.vlgmr.msra.gmra.mrb[22].mxu0 %vm780_vm3, %v2358_v51 }
 0x863   : > { %4425 = vmatpush3.msk.msra.mxu0 %vm1155_vm5, %v2557_v52  ;;  %4426 = vmatprep.mubr.msk.f32.mxu0 %vm5225_vm1, %v5224_v33 }
 0x864   : > { %4434 = vmatprep.subr.mxu0 %v5224_v33 }
 0x8f5   : > { %v5916_v53 = vpop.f32.mrb[12].mxu1 }
 0x8f6   : > { %v4383_v54 = vpop.f32.mrb[13].mxu1 }
 0x8f8   : > { %v5918_v55 = vpop.f32.mrb[16].mxu0 }
 0x8f9   : > { %v5920_v56 = vpop.f32.mrb[14].mxu1  ;;  %v4388_v57 = vpop.f32.mrb[17].mxu0 }
 0x8fa   : > { %v4393_v58 = vpop.f32.mrb[15].mxu1 }
 0x900   : > { %v2197_v59 = vpop.f32.mrb[16].mxu1 }
 0x901   : > { %v4403_v60 = vpop.f32.mrb[17].mxu1  ;;  %v2435_v61 = vsel %vm1104_vm4, %v2197_v59, -inf }
 0x902   : > { %2436 = vmax.xlane.f32.xlu0 %v2435_v61 }
 0x904   : > { %v2353_v62 = vpop.f32.mrb[18].mxu1 }
 0x905   : > { %v4413_v63 = vpop.f32.mrb[19].mxu1  ;;  %v2441_v0 = vsel %vm1104_vm4, %v2353_v62, -inf }
 0x906   : > { %2442 = vmax.xlane.f32.xlu0 %v2441_v0 }
 0x92d   : > { %v5924_v1 = vpop.f32.mrb[18].mxu0 }
 0x92e   : > { %v4398_v2 = vpop.f32.mrb[19].mxu0 }
 0x931   : > { %v2275_v6 = vpop.f32.mrb[20].mxu0 }
 0x932   : > { %v4408_v8 = vpop.f32.mrb[21].mxu0  ;;  %v2438_v9 = vsel %vm1104_vm4, %v2275_v6, -inf }
 0x933   : > { %2439 = vmax.xlane.f32.xlu1 %v2438_v9 }
 0x935   : > { %v2431_v10 = vpop.f32.mrb[22].mxu0 }
 0x936   : > { %v4418_v12 = vpop.f32.mrb[23].mxu0  ;;  %v2444_v13 = vsel %vm1104_vm4, %v2431_v10, -inf }
 0x937   : > { %2445 = vmax.xlane.f32.xlu0 %v2444_v13 }
 0x944   : > { %2867 = vrot.lane.b32.xlu1 %v5740_v26, %s5235_s20 }
 0x948   : > { %2865 = vrot.lane.b32.xlu1 %v5740_v26, %s5236_s28 }
 0x94d   : > { %2789 = vrot.lane.b32.xlu0 %v5736_v23, %s5235_s20 }
 0x98f   : > { %v2437_v14 = vpop.xlane.xlu0 %2436 }
 0x990   : > { %v2447_v15 = vsub.f32 %v2197_v59, %v2437_v14 }
 0x992   : > { %v2451_v16 = vmul.f32 1.442695, %v2447_v15 }
 0x993   : > { %v2443_v21 = vpop.xlane.xlu0 %2442 }
 0x994   : > { %4736 = vpow2.f32 %v2451_v16  ;;  %v2449_v22 = vsub.f32 %v2353_v62, %v2443_v21 }
 0x996   : > { %v2455_v27 = vmul.f32 1.442695, %v2449_v22 }
 0x99e   : > { %v4737_v17 = vpop.eup %4736 }
 0x99f   : > { %v2459_v18 = vsel %vm1104_vm4, %v4737_v17, 0.0 }
 0x9a0   : > { %2460 = vadd.xlane.f32.xlu0 %v2459_v18 }
 0x9b6   : > { %2787 = vrot.lane.b32.xlu0 %v5736_v23, %s5236_s28 }
 0x9c0   : > { %v2440_v24 = vpop.xlane.xlu1 %2439 }
 0x9c1   : > { %v2448_v25 = vsub.f32 %v2275_v6, %v2440_v24 }
 0x9c3   : > { %v2453_v30 = vmul.f32 1.442695, %v2448_v25 }
 0x9c4   : > { %v2446_v36 = vpop.xlane.xlu0 %2445  ;;  %v2868_v49 = vpop.permute.xlu1 %2867 }
 0x9c5   : > { %4738 = vpow2.f32 %v2453_v30  ;;  %v2450_v38 = vsub.f32 %v2431_v10, %v2446_v36 }
 0x9c6   : > { %4740 = vpow2.f32 %v2455_v27 }
 0x9c7   : > { %v2457_v40 = vmul.f32 1.442695, %v2450_v38 }
 0x9c8   : > { %v2790_v45 = vpop.permute.xlu0 %2789  ;;  %v2866_v50 = vpop.permute.xlu1 %2865 }
 0x9c9   : > { %4742 = vpow2.f32 %v2457_v40 }
 0x9cf   : > { %v4739_v31 = vpop.eup %4738 }
 0x9d0   : > { %v2462_v32 = vsel %vm1104_vm4, %v4739_v31, 0.0  ;;  %v4741_v34 = vpop.eup %4740 }
 0x9d1   : > { %2463 = vadd.xlane.f32.xlu1 %v2462_v32  ;;  %v2465_v35 = vsel %vm1104_vm4, %v4741_v34, 0.0 }
 0x9d3   : > { %v4743_v42 = vpop.eup %4742 }
 0x9d4   : > { %v2468_v44 = vsel %vm1104_vm4, %v4743_v42, 0.0 }
 0x9d5   : > { %2466 = vadd.xlane.f32.xlu0 %v2465_v35 }
 0x9e2   : > { %3023 = vrot.lane.b32.xlu1 %v5749_v29, %s5235_s20 }
 0x9eb   : > { %2945 = vrot.lane.b32.xlu0 %v5745_v28, %s5235_s20  ;;  %s6194_s20 = sld [smem:[#allocation35_spill]] }
 0x9ef   : > { %2943 = vrot.lane.b32.xlu0 %v5745_v28, %s5236_s28 }
 0xa06   : > { %2469 = vadd.xlane.f32.xlu1 %v2468_v44 }
 0xa17   : > { %3021 = vrot.lane.b32.xlu1 %v5749_v29, %s5236_s28  ;;  %s6089_s28 = scalar_lea.hbm %s6194_s20, %s4232_s26 }
 0xa2d   : > { %v2461_v46 = vpop.xlane.xlu0 %2460 }
 0xa2e   : > { %4744 = vrcp.f32 %v2461_v46 }
 0xa31   : > { %v2788_v51 = vpop.permute.xlu0 %2787 }
 0xa38   : > { %v4745_v47 = vpop.eup %4744 }
 0xa39   : > { %v2475_v48 = vmul.f32 %v4745_v47, %v4737_v17 }
 0xa3b   : > { %4422 = vmatmul.mubr.msk.f32.vlgmr.msra.gmra.mrb[20].mxu1 %vm1151_vm6, %v2475_v48 }
 0xa3c   : > { %4430 = vmatpush3.msk.msra.mxu1 %vm1155_vm5, %v2634_v19  ;;  %4431 = vmatprep.mubr.msk.f32.mxu1 %vm5225_vm1, %v5224_v33 }
 0xa3d   : > { %4439 = vmatprep.subr.mxu1 %v5224_v33 }
 0xa5e   : > { %v2464_v52 = vpop.xlane.xlu1 %2463 }
 0xa5f   : > { %4746 = vrcp.f32 %v2464_v52 }
 0xa62   : > { %v2467_v54 = vpop.xlane.xlu0 %2466  ;;  %v3024_v63 = vpop.permute.xlu1 %3023 }
 0xa63   : > { %4748 = vrcp.f32 %v2467_v54 }
 0xa66   : > { %v2946_v61 = vpop.permute.xlu0 %2945 }
 0xa69   : > { %v4747_v57 = vpop.eup %4746 }
 0xa6a   : > { %v2476_v58 = vmul.f32 %v4747_v57, %v4739_v31  ;;  %v2944_v62 = vpop.permute.xlu0 %2943 }
 0xa6c   : > { %4427 = vmatmul.mubr.msk.f32.vlgmr.msra.gmra.mrb[24].mxu0 %vm1151_vm6, %v2476_v58 }
 0xa6d   : > { %v4749_v59 = vpop.eup %4748  ;;  %4435 = vmatpush3.msk.msra.mxu0 %vm1155_vm5, %v2711_v20  ;;  %4436 = vmatprep.mubr.msk.f32.mxu0 %vm5225_vm1, %v5224_v33 }
 0xa6e   : > { %v2477_v60 = vmul.f32 %v4749_v59, %v4741_v34  ;;  %4444 = vmatprep.subr.mxu0 %v5224_v33 }
 0xa70   : > { %4432 = vmatmul.mubr.msk.f32.vlgmr.msra.gmra.mrb[22].mxu1 %vm1151_vm6, %v2477_v60 }
 0xa71   : > { %4440 = vmatpush3.xpose.msk.msra.mxu1 %vm780_vm3, %v2790_v45  ;;  %4441 = vmatprep.mubr.msk.f32.mxu1 %vm5225_vm1, %v5224_v33 }
 0xa72   : > { %4449 = vmatprep.subr.mxu1 %v5224_v33 }
 0xa74   : > { %4442 = vmatmul.mubr.msk.f32.vlgmr.msra.gmra.mrb[24].mxu1 %vm780_vm3, %v2788_v51 }
 0xa75   : > { %4450 = vmatpush3.xpose.msk.msra.mxu1 %vm780_vm3, %v2946_v61  ;;  %4451 = vmatprep.mubr.msk.f32.mxu1 %vm5225_vm1, %v5224_v33 }
 0xa76   : > { %4459 = vmatprep.subr.mxu1 %v5224_v33 }
 0xa78   : > { %4452 = vmatmul.mubr.msk.f32.vlgmr.msra.gmra.mrb[26].mxu1 %vm780_vm3, %v2944_v62 }
 0xa79   : > { %4461 = vmatprep.mubr.msk.f32.mxu1 %vm5225_vm1, %v5224_v33 }
 0xa93   : > { %v2470_v0 = vpop.xlane.xlu1 %2469 }
 0xa94   : > { %4750 = vrcp.f32 %v2470_v0 }
 0xa97   : > { %v3022_v8 = vpop.permute.xlu1 %3021 }
 0xa9e   : > { %v4751_v2 = vpop.eup %4750 }
 0xa9f   : > { %v2478_v6 = vmul.f32 %v4751_v2, %v4743_v42 }
 0xaa1   : > { %4437 = vmatmul.mubr.msk.f32.vlgmr.msra.gmra.mrb[26].mxu0 %vm1151_vm6, %v2478_v6 }
 0xaa2   : > { %4445 = vmatpush3.xpose.msk.msra.mxu0 %vm780_vm3, %v2868_v49  ;;  %4446 = vmatprep.mubr.msk.f32.mxu0 %vm5225_vm1, %v5224_v33 }
 0xaa3   : > { %4454 = vmatprep.subr.mxu0 %v5224_v33 }
 0xaa5   : > { %4447 = vmatmul.mubr.msk.f32.vlgmr.msra.gmra.mrb[28].mxu0 %vm780_vm3, %v2866_v50 }
 0xaa6   : > { %4455 = vmatpush3.xpose.msk.msra.mxu0 %vm780_vm3, %v3024_v63  ;;  %4456 = vmatprep.mubr.msk.f32.mxu0 %vm5225_vm1, %v5224_v33 }
 0xaa7   : > { %4464 = vmatprep.subr.mxu0 %v5224_v33 }
 0xaa9   : > { %4457 = vmatmul.mubr.msk.f32.vlgmr.msra.gmra.mrb[30].mxu0 %vm780_vm3, %v3022_v8 }
 0xaaa   : > { %4466 = vmatprep.mubr.msk.f32.mxu0 %vm5225_vm1, %v5224_v33 }
 0xb0e   : > { %v2552_v9 = vpop.f32.mrb[20].mxu1 }
 0xb0f   : > { %v4423_v10 = vpop.f32.mrb[21].mxu1 }
 0xb3f   : > { %v2629_v12 = vpop.f32.mrb[24].mxu0 }
 0xb40   : > { %v4428_v13 = vpop.f32.mrb[25].mxu0 }
 0xb43   : > { %v2706_v14 = vpop.f32.mrb[22].mxu1 }
 0xb44   : > { %v4433_v15 = vpop.f32.mrb[23].mxu1 }
 0xb47   : > { %v2861_v16 = vpop.f32.mrb[24].mxu1 }
 0xb48   : > { %v4443_v17 = vpop.f32.mrb[25].mxu1  ;;  %v3099_v18 = vsel %vm1104_vm4, %v2861_v16, -inf }
 0xb49   : > { %3100 = vmax.xlane.f32.xlu0 %v3099_v18  ;;  %v4688_v18 = vld [vmem:[#allocation10] sm:$0xff]  }
 0xb4b   : > { %v3017_v19 = vpop.f32.mrb[26].mxu1 }
 0xb4c   : > { %v4453_v20 = vpop.f32.mrb[27].mxu1  ;;  %v3105_v21 = vsel %vm1104_vm4, %v3017_v19, -inf }
 0xb4d   : > { %3106 = vmax.xlane.f32.xlu0 %v3105_v21 }
 0xb74   : > { %v2783_v22 = vpop.f32.mrb[26].mxu0 }
 0xb75   : > { %v4438_v24 = vpop.f32.mrb[27].mxu0 }
 0xb78   : > { %v2939_v25 = vpop.f32.mrb[28].mxu0 }
 0xb79   : > { %v4448_v27 = vpop.f32.mrb[29].mxu0  ;;  %v3102_v30 = vsel %vm1104_vm4, %v2939_v25, -inf }
 0xb7a   : > { %3103 = vmax.xlane.f32.xlu1 %v3102_v30 }
 0xb7c   : > { %v3095_v31 = vpop.f32.mrb[30].mxu0 }
 0xb7d   : > { %v4458_v32 = vpop.f32.mrb[31].mxu0  ;;  %v3108_v34 = vsel %vm1104_vm4, %v3095_v31, -inf }
 0xb7e   : > { %3109 = vmax.xlane.f32.xlu0 %v3108_v34 }
 0xbd6   : > { %v3101_v35 = vpop.xlane.xlu0 %3100 }
 0xbd7   : > { %v3111_v36 = vsub.f32 %v2861_v16, %v3101_v35 }
 0xbd9   : > { %v3115_v38 = vmul.f32 1.442695, %v3111_v36 }
 0xbda   : > { %v3107_v40 = vpop.xlane.xlu0 %3106 }
 0xbdb   : > { %4752 = vpow2.f32 %v3115_v38  ;;  %v3113_v42 = vsub.f32 %v3017_v19, %v3107_v40  ;;  %v4689_v19 = vld [vmem:[#allocation10 + $0x8] sm:$0xff]  }
 0xbdd   : > { %v3119_v44 = vmul.f32 1.442695, %v3113_v42 }
 0xbdf   : > { %4754 = vpow2.f32 %v3119_v44 }
 0xbe5   : > { %v4753_v45 = vpop.eup %4752 }
 0xbe6   : > { %v3123_v46 = vsel %vm1104_vm4, %v4753_v45, 0.0 }
 0xbe7   : > { %3124 = vadd.xlane.f32.xlu0 %v3123_v46 }
 0xbe9   : > { %v4755_v47 = vpop.eup %4754 }
 0xbea   : > { %v3129_v48 = vsel %vm1104_vm4, %v4755_v47, 0.0 }
 0xbeb   : > { %3130 = vadd.xlane.f32.xlu0 %v3129_v48 }
 0xc01   : > { %3143 = vrot.lane.b32.xlu0 %v5736_v23, %s5237_s14 }
 0xc05   : > { %3455 = vrot.lane.b32.xlu0 %v5916_v53, %s5238_s3 }
 0xc07   : > { %v3104_v49 = vpop.xlane.xlu1 %3103 }
 0xc08   : > { %v3112_v50 = vsub.f32 %v2939_v25, %v3104_v49 }
 0xc09   : > { %3459 = vrot.lane.b32.xlu0 %v5920_v56, %s5238_s3 }
 0xc0a   : > { %v3117_v51 = vmul.f32 1.442695, %v3112_v50 }
 0xc0b   : > { %v3110_v23 = vpop.xlane.xlu0 %3109 }
 0xc0c   : > { %4756 = vpow2.f32 %v3117_v51  ;;  %v3114_v53 = vsub.f32 %v3095_v31, %v3110_v23 }
 0xc0d   : > { %3471 = vrot.lane.b32.xlu0 %v2552_v9, %s5239_s30 }
 0xc0e   : > { %v3121_v57 = vmul.f32 1.442695, %v3114_v53 }
 0xc10   : > { %4758 = vpow2.f32 %v3121_v57 }
 0xc11   : > { %3475 = vrot.lane.b32.xlu0 %v2706_v14, %s5239_s30 }
 0xc16   : > { %v4757_v52 = vpop.eup %4756 }
 0xc17   : > { %v3126_v54 = vsel %vm1104_vm4, %v4757_v52, 0.0 }
 0xc18   : > { %3127 = vadd.xlane.f32.xlu1 %v3126_v54 }
 0xc1a   : > { %v4759_v56 = vpop.eup %4758 }
 0xc1b   : > { %v3132_v58 = vsel %vm1104_vm4, %v4759_v56, 0.0 }
 0xc29   : > { %3220 = vrot.lane.b32.xlu1 %v5740_v26, %s5237_s14 }
 0xc2d   : > { %3297 = vrot.lane.b32.xlu1 %v5745_v28, %s5237_s14 }
 0xc51   : > { %3133 = vadd.xlane.f32.xlu1 %v3132_v58 }
 0xc62   : > { %3374 = vrot.lane.b32.xlu1 %v5749_v29, %s5237_s14  ;;  %s5241_s14 = smov [#allocation22]  }
 0xc66   : > { %3457 = vrot.lane.b32.xlu1 %v5918_v55, %s5238_s3 }
 0xc6a   : > { %3461 = vrot.lane.b32.xlu1 %v5924_v1, %s5238_s3  ;;  %s5120_s3 = sshll.u32 %s5241_s14, 4  ;;  %s5121_s3 = int_to_ptr.vmem [resolvable:$false] %s5120_s3 }
 0xc6b   : > { %p5123_p12 = scmp.lt.s32.totalorder %s6093_s19, %s5121_s3 }
 0xc6e   : > { %3473 = vrot.lane.b32.xlu1 %v2629_v12, %s5239_s30 }
 0xc72   : > { %3477 = vrot.lane.b32.xlu1 %v2783_v22, %s5239_s30 }
 0xc74   : > { %v3125_v26 = vpop.xlane.xlu0 %3124 }
 0xc75   : > { %4760 = vrcp.f32 %v3125_v26 }
 0xc78   : > { %v3131_v28 = vpop.xlane.xlu0 %3130 }
 0xc79   : > { %4762 = vrcp.f32 %v3131_v28 }
 0xc7c   : > { %v3144_v59 = vpop.permute.xlu0 %3143 }
 0xc7d   : > { %4460 = vmatpush3.msk.msra.mxu1 %vm1155_vm5, %v3144_v59 }
 0xc7e   : > { %4469 = vmatprep.subr.mxu1 %v5224_v33 }
 0xc7f   : > { %v4761_v60 = vpop.eup %4760 }
 0xc80   : > { %v3139_v61 = vmul.f32 %v4761_v60, %v4753_v45  ;;  %v3456_v22 = vpop.permute.xlu0 %3455 }
 0xc81   : > { %v3499_v36 = vsel %vm780_vm3, %v5836_v37, %v3456_v22 }
 0xc82   : > { %4462 = vmatmul.mubr.msk.f32.vlgmr.msra.gmra.mrb[28].mxu1 %vm1151_vm6, %v3139_v61 }
 0xc83   : > { %4471 = vmatprep.mubr.msk.f32.mxu1 %vm5225_vm1, %v5224_v33  ;;  %v4763_v1 = vpop.eup %4762 }
 0xc84   : > { %v3141_v62 = vmul.f32 %v4763_v1, %v4755_v47  ;;  %v3460_v25 = vpop.permute.xlu0 %3459 }
 0xc85   : > { %v3501_v49 = vsel %vm780_vm3, %v5840_v41, %v3460_v25  ;;  %v4213_v41 = vld [vmem:[#allocation11] ss:$0 sm:$0xff] }
 0xc88   : > { %v3472_v30 = vpop.permute.xlu0 %3471 }
 0xc89   : > { %v3504_v40 = vsel %vm3503_vm7, %v3499_v36, %v3472_v30 }
 0xc8c   : > { %v3476_v32 = vpop.permute.xlu0 %3475 }
 0xc8d   : > { %v3506_v51 = vsel %vm3503_vm7, %v3501_v49, %v3476_v32 }
 0xca5   : > { %v3128_v29 = vpop.xlane.xlu1 %3127 }
 0xca6   : > { %4764 = vrcp.f32 %v3128_v29 }
 0xca9   : > { %v3221_v55 = vpop.permute.xlu1 %3220 }
 0xcaa   : > { %4465 = vmatpush3.msk.msra.mxu0 %vm1155_vm5, %v3221_v55 }
 0xcab   : > { %4474 = vmatprep.subr.mxu0 %v5224_v33 }
 0xcad   : > { %v3298_v63 = vpop.permute.xlu1 %3297 }
 0xcae   : > { %4470 = vmatpush3.msk.msra.mxu1 %vm1155_vm5, %v3298_v63 }
 0xcaf   : > { %4472 = vmatmul.mubr.msk.f32.vlgmr.msra.gmra.mrb[30].mxu1 %vm1151_vm6, %v3141_v62  ;;  %4479 = vmatprep.subr.bf16.mxu1 %v5224_v33 }
 0xcb0   : > { %v4765_v0 = vpop.eup %4764  ;;  %4483 = vmatprep.mubr.msk.bf16.mxu1 %vm5225_vm1, %v5224_v33  ;;  %4480 = vmatpush3.bf16.msra.mxu1 %v4688_v18 }
 0xcb1   : > { %v3140_v2 = vmul.f32 %v4765_v0, %v4757_v52  ;;  %4481 = vmatprep.subr.bf16.mxu1 %v5224_v33 }
 0xcb3   : > { %4467 = vmatmul.mubr.msk.f32.vlgmr.msra.gmra.mrb[32].mxu0 %vm1151_vm6, %v3140_v2 }
 0xcb4   : > { %4476 = vmatprep.mubr.msk.f32.mxu0 %vm5225_vm1, %v5224_v33  ;;  %4482 = vmatpush3.bf16.msra.mxu1 %v4689_v19 }
 0xcb5   : > { %4495 = vmatprep.subr.bf16.mxu1 %v5224_v33 }
 0xcde   : > { %v3134_v6 = vpop.xlane.xlu1 %3133 }
 0xcdf   : > { %4766 = vrcp.f32 %v3134_v6 }
 0xce2   : > { %v3375_v8 = vpop.permute.xlu1 %3374 }
 0xce3   : > { %4475 = vmatpush3.msk.msra.mxu0 %vm1155_vm5, %v3375_v8 }
 0xce4   : > { %4487 = vmatprep.subr.bf16.mxu0 %v5224_v33 }
 0xce6   : > { %v3458_v24 = vpop.permute.xlu1 %3457 }
 0xce7   : > { %v3500_v38 = vsel %vm780_vm3, %v5838_v39, %v3458_v24 }
 0xce9   : > { %v4767_v9 = vpop.eup %4766 }
 0xcea   : > { %v3142_v10 = vmul.f32 %v4767_v9, %v4759_v56  ;;  %v3462_v27 = vpop.permute.xlu1 %3461 }
 0xceb   : > { %v3502_v50 = vsel %vm780_vm3, %v5842_v43, %v3462_v27 }
 0xcec   : > { %4477 = vmatmul.mubr.msk.f32.vlgmr.msra.gmra.mrb[34].mxu0 %vm1151_vm6, %v3142_v10 }
 0xced   : > { %4491 = vmatprep.mubr.msk.bf16.mxu0 %vm5225_vm1, %v5224_v33 }
 0xcee   : > { %v3474_v31 = vpop.permute.xlu1 %3473 }
 0xcef   : > { %v3505_v42 = vsel %vm3503_vm7, %v3500_v38, %v3474_v31  ;;  %v4690_v38 = vld [vmem:[#allocation16] sm:$0xff]  }
 0xcf0   : > { %4488 = vmatpush3.bf16.msra.mxu0 %v4690_v38 }
 0xcf1   : > { %4489 = vmatprep.subr.bf16.mxu0 %v5224_v33 }
 0xcf2   : > { %v3478_v34 = vpop.permute.xlu1 %3477 }
 0xcf3   : > { %v3507_v37 = vsel %vm3503_vm7, %v3502_v50, %v3478_v34 }
 0xd55   : > { %v3216_v12 = vpop.f32.mrb[28].mxu1 }
 0xd56   : > { %3487 = vrot.lane.b32.xlu0 %v3216_v12, %s5240_s12  ;;  %v4463_v13 = vpop.f32.mrb[29].mxu1 }
 0xd82   : > { %v3370_v14 = vpop.f32.mrb[30].mxu1 }
 0xd83   : > { %3491 = vrot.lane.b32.xlu0 %v3370_v14, %s5240_s12  ;;  %v4473_v15 = vpop.f32.mrb[31].mxu1 }
 0xd86   : > { %v3293_v16 = vpop.f32.mrb[32].mxu0 }
 0xd87   : > { %3489 = vrot.lane.b32.xlu1 %v3293_v16, %s5240_s12  ;;  %v4468_v17 = vpop.f32.mrb[33].mxu0 }
 0xdbf   : > { %v3447_v20 = vpop.f32.mrb[34].mxu0 }
 0xdc0   : > { %3493 = vrot.lane.b32.xlu1 %v3447_v20, %s5240_s12  ;;  %v4478_v21 = vpop.f32.mrb[35].mxu0  ;;  %s5122_s12 = scalar_lea.vmem %s5121_s3, 128 }
 0xdc1   : > { %p5124_p0 = scmp.lt.s32.totalorder %s5122_s12, %s5116_s15 }
 0xdc3   : > { %p5125_p5 = por %p5124_p0, %p5123_p12 }
 0xdc5   : > { %p5126_p9 = pnand %p5125_p5, %p5119_p11 }
 0xdc8   : > { %v3488_v35 = vpop.permute.xlu0 %3487 }
 0xdc9   : > { %v3509_v45 = vsel %vm3508_vm8, %v3504_v40, %v3488_v35  ;;  %v4691_v40 = vld [vmem:[#allocation16 + $0x8] sm:$0xff]  }
 0xdca   : > { %4490 = vmatpush3.bf16.msra.mxu0 %v4691_v40 }
 0xdf5   : > { %v3492_v48 = vpop.permute.xlu0 %3491 }
 0xdf6   : > { %v3511_v39 = vsel %vm3508_vm8, %v3506_v51, %v3492_v48 }
 0xdf9   : > { %v3490_v44 = vpop.permute.xlu1 %3489 }
 0xdfa   : > { %v3510_v46 = vsel %vm3508_vm8, %v3505_v42, %v3490_v44 }
 0xdfb   : > { %v3517_v47 = vcombine.low %v3509_v45, %v3510_v46 }
 0xdfd   : > { %v3525_v53 = vrot.slane %v3517_v47, %v5727_v11 }
 0xe32   : > { %v3494_v52 = vpop.permute.xlu1 %3493 }
 0xe33   : > { %v3512_v54 = vsel %vm3508_vm8, %v3507_v37, %v3494_v52 }
 0xe34   : > { %v3518_v23 = vcombine.low %v3511_v39, %v3512_v54 }
 0xe36   : > { %v3532_v57 = vrot.slane %v3518_v23, %v5727_v11 }
 0xe38   : > { %v3533_v56 = vcombine.low %v3525_v53, %v3532_v57 }
 0xe3a   : > { %v3535_v58 = vpack.c.bf16 %v3533_v56, %v3533_v56 }
 0xe3c   : > { %4484 = vmatmul.mubr.msk.bf16.vlgmr.msra.gmra.mrb[32].mxu1 %vm709_vm2, %v3535_v58  ;;  %v4214_v58 = vld [vmem:[#allocation13] ss:$0 sm:$0xff] }
 0xe3d   : > { %4503 = vmatprep.mubr.msk.bf16.mxu1 %vm5225_vm1, %v5224_v33 }
 0xf0f   : > { %v3585_v43 = vpop.f32.mrb[32].mxu1 }
 0xf10   : > { %v3592_v26 = vcombine.high %v3585_v43, %v3585_v43  ;;  %v3599_v28 = vrot.slane %v3585_v43, %v5727_v11  ;;  %v4485_v59 = vpop.f32.mrb[33].mxu1 }
 0xf11   : > { %v3588_v60 = vpop.f32.mrb[34].mxu1  ;;  %v4215_v59 = vld [vmem:[#allocation14] ss:$0 sm:$0xff] }
 0xf12   : > { %v3606_v61 = vrot.slane %v3592_v26, %v5727_v11  ;;  %v3607_v29 = vcombine.high %v3599_v28, %v3599_v28  ;;  %v3619_v55 = vadd.f32 %v4213_v41, %v3599_v28  ;;  %v4486_v1 = vpop.f32.mrb[35].mxu1 }
 0xf14   : > { %v3608_v62 = vcombine.high %v3606_v61, %v3606_v61  ;;  %v3620_v63 = vadd.f32 %v4213_v41, %v3607_v29  ;;  %v3621_v0 = vadd.f32 %v4213_v41, %v3606_v61  ;;  %v6042_v2 = vadd.f32 %v3619_v55, %v5695_v3 }
 0xf16   : > { %v3622_v6 = vadd.f32 %v4213_v41, %v3608_v62  ;;  %v3643_v8 = vsel %vm600_vm0, %v6042_v2, 0.0  ;;  %v6047_v9 = vadd.f32 %v3620_v63, %v5699_v5  ;;  %v6050_v10 = vadd.f32 %v3621_v0, %v5697_v4 }
 0xf17   : > { %3644 = vadd.xlane.f32.xlu0 %v3643_v8 }
 0xf18   : > { %v3646_v12 = vsel %vm600_vm0, %v6047_v9, 0.0  ;;  %v3649_v13 = vsel %vm600_vm0, %v6050_v10, 0.0  ;;  %v6057_v3 = vadd.f32 %v3622_v6, %v5701_v7 }
 0xf19   : > { %3647 = vadd.xlane.f32.xlu1 %v3646_v12 }
 0xf1a   : > { %v3652_v14 = vsel %vm600_vm0, %v6057_v3, 0.0 }
 0xf1b   : > { %3650 = vadd.xlane.f32.xlu0 %v3649_v13 }
 0xf1f   : > { %3653 = vadd.xlane.f32.xlu0 %v3652_v14 }
 0xfa4   : > { %v3645_v5 = vpop.xlane.xlu0 %3644 }
 0xfa5   : > { %v3655_v15 = vmul.f32 0.03125, %v3645_v5  ;;  %v4692_v5 = vld [vmem:[#allocation19] sm:$0xff]  }
 0xfa6   : > { %v3648_v4 = vpop.xlane.xlu1 %3647  ;;  %4496 = vmatpush3.bf16.msra.mxu1 %v4692_v5 }
 0xfa7   : > { %v3659_v16 = vsub.f32 %v6042_v2, %v3655_v15  ;;  %v3656_v17 = vmul.f32 0.03125, %v3648_v4  ;;  %v4693_v15 = vld [vmem:[#allocation19 + $0x8] sm:$0xff]   ;;  %4497 = vmatprep.subr.bf16.mxu1 %v5224_v33  ;;  %v4694_v4 = vld [vmem:[#allocation19 + $0x10] sm:$0xff]  }
 0xfa8   : > { %v3651_v18 = vpop.xlane.xlu0 %3650 }
 0xfa9   : > { %v3660_v19 = vsub.f32 %v6047_v9, %v3656_v17  ;;  %v3657_v20 = vmul.f32 0.03125, %v3651_v18  ;;  %v3663_v21 = vmul.f32 %v3659_v16, %v3659_v16  ;;  %v4216_v17 = vld [vmem:[#allocation17] ss:$0 sm:$0xff] }
 0xfaa   : > { %4498 = vmatpush3.bf16.msra.mxu1 %v4693_v15 }
 0xfab   : > { %v3661_v22 = vsub.f32 %v6050_v10, %v3657_v20  ;;  %v3667_v7 = vsel %vm600_vm0, %v3663_v21, 0.0  ;;  %v3664_v24 = vmul.f32 %v3660_v19, %v3660_v19  ;;  %4499 = vmatprep.subr.bf16.mxu1 %v5224_v33 }
 0xfac   : > { %3668 = vadd.xlane.f32.xlu0 %v3667_v7  ;;  %v3654_v25 = vpop.xlane.xlu0 %3653 }
 0xfad   : > { %v3658_v27 = vmul.f32 0.03125, %v3654_v25  ;;  %v3670_v30 = vsel %vm600_vm0, %v3664_v24, 0.0  ;;  %v3665_v31 = vmul.f32 %v3661_v22, %v3661_v22 }
 0xfae   : > { %3671 = vadd.xlane.f32.xlu1 %v3670_v30  ;;  %4500 = vmatpush3.bf16.msra.mxu1 %v4694_v4 }
 0xfaf   : > { %v3662_v32 = vsub.f32 %v6057_v3, %v3658_v27  ;;  %v3673_v34 = vsel %vm600_vm0, %v3665_v31, 0.0  ;;  %4501 = vmatprep.subr.bf16.mxu1 %v5224_v33  ;;  %v4220_v33 = vld [vmem:[#allocation20] ss:$0 sm:$0xff] }
 0xfb0   : > { %3674 = vadd.xlane.f32.xlu0 %v3673_v34 }
 0xfb1   : > { %v3666_v35 = vmul.f32 %v3662_v32, %v3662_v32 }
 0xfb3   : > { %v3676_v36 = vsel %vm600_vm0, %v3666_v35, 0.0 }
 0xfb4   : > { %3677 = vadd.xlane.f32.xlu1 %v3676_v36 }
0x1039   : > { %v3669_v42 = vpop.xlane.xlu0 %3668 }
0x103a   : > { %v3679_v44 = vmul.f32 0.03125, %v3669_v42 }
0x103b   : > { %v3672_v45 = vpop.xlane.xlu1 %3671 }
0x103c   : > { %v3683_v46 = vadd.f32 1e-05, %v3679_v44  ;;  %v3680_v47 = vmul.f32 0.03125, %v3672_v45 }
0x103d   : > { %v3675_v48 = vpop.xlane.xlu0 %3674 }
0x103e   : > { %4768 = vrsqrt.f32 %v3683_v46  ;;  %v3684_v49 = vadd.f32 1e-05, %v3680_v47  ;;  %v3681_v50 = vmul.f32 0.03125, %v3675_v48 }
0x1040   : > { %4770 = vrsqrt.f32 %v3684_v49  ;;  %v3685_v51 = vadd.f32 1e-05, %v3681_v50 }
0x1041   : > { %v3678_v37 = vpop.xlane.xlu1 %3677 }
0x1042   : > { %4772 = vrsqrt.f32 %v3685_v51  ;;  %v3682_v52 = vmul.f32 0.03125, %v3678_v37 }
0x1044   : > { %v3686_v39 = vadd.f32 1e-05, %v3682_v52 }
0x1046   : > { %4774 = vrsqrt.f32 %v3686_v39 }
0x1048   : > { %v4769_v54 = vpop.eup %4768 }
0x1049   : > { %v3691_v53 = vmul.f32 %v4769_v54, %v3659_v16  ;;  %v4695_v16 = vld [vmem:[#allocation19 + $0x18] sm:$0xff]  }
0x104a   : > { %v4771_v23 = vpop.eup %4770  ;;  %4502 = vmatpush3.bf16.msra.mxu1 %v4695_v16 }
0x104b   : > { %v3692_v57 = vmul.f32 %v4771_v23, %v3660_v19  ;;  %v3701_v26 = vmul.f32 %v4214_v58, %v3691_v53 }
0x104c   : > { %v4773_v56 = vpop.eup %4772 }
0x104d   : > { %v3702_v41 = vmul.f32 %v4214_v58, %v3692_v57  ;;  %v3693_v43 = vmul.f32 %v4773_v56, %v3661_v22  ;;  %v3711_v55 = vadd.f32 %v4215_v59, %v3701_v26 }
0x104f   : > { %v3712_v60 = vadd.f32 %v4215_v59, %v3702_v41  ;;  %v3703_v61 = vmul.f32 %v4214_v58, %v3693_v43 }
0x1050   : > { %v4775_v28 = vpop.eup %4774 }
0x1051   : > { %v3694_v29 = vmul.f32 %v4775_v28, %v3662_v32  ;;  %v3713_v62 = vadd.f32 %v4215_v59, %v3703_v61  ;;  %v3719_v0 = vcombine.low %v3711_v55, %v3712_v60 }
0x1053   : > { %v3704_v1 = vmul.f32 %v4214_v58, %v3694_v29  ;;  %v3727_v8 = vrot.slane %v3719_v0, %v5727_v11 }
0x1055   : > { %v3714_v63 = vadd.f32 %v4215_v59, %v3704_v1 }
0x1057   : > { %v3720_v6 = vcombine.low %v3713_v62, %v3714_v63 }
0x1059   : > { %v3734_v12 = vrot.slane %v3720_v6, %v5727_v11 }
0x105b   : > { %v3735_v13 = vcombine.low %v3727_v8, %v3734_v12 }
0x105d   : > { %v3737_v14 = vpack.c.bf16 %v3735_v13, %v3735_v13 }
0x105f   : > { %4492 = vmatmul.mubr.msk.bf16.vlgmr.msra.gmra.mrb[36].mxu0 %vm709_vm2, %v3737_v14 }
0x1132   : > { %v3793_v18 = vpop.f32.mrb[36].mxu0 }
0x1133   : > { %v3794_v19 = vadd.f32 %v4216_v17, %v3793_v18  ;;  %v4493_v20 = vpop.f32.mrb[37].mxu0 }
0x1134   : > { %v3796_v21 = vpop.f32.mrb[38].mxu0 }
0x1135   : > { %v3800_v22 = vmul.f32 0.044715, %v3794_v19  ;;  %v4494_v7 = vpop.f32.mrb[39].mxu0  ;;  %v3799_v32 = vmul.f32 0.5, %v3794_v19 }
0x1137   : > { %v3801_v24 = vmul.f32 %v3800_v22, %v3794_v19 }
0x1139   : > { %v3802_v25 = vmul.f32 %v3801_v24, %v3794_v19 }
0x113b   : > { %v3803_v27 = vadd.f32 %v3802_v25, %v3794_v19 }
0x113d   : > { %v3804_v30 = vmul.f32 0.7978846, %v3803_v27 }
0x113f   : > { %4776 = vtanh.f32 %v3804_v30 }
0x1149   : > { %v4777_v31 = vpop.eup %4776 }
0x114a   : > { %v3806_v34 = vadd.f32 1.0, %v4777_v31 }
0x114c   : > { %v3807_v35 = vmul.f32 %v3806_v34, %v3799_v32 }
0x114e   : > { %v3808_v36 = vpack.c.bf16 %v3807_v35, %v3807_v35 }
0x1150   : > { %4504 = vmatmul.mubr.msk.bf16.vlgmr.msra.gmra.mrb[36].mxu1 %vm3839_vm9, %v3808_v36 }
0x1223   : > { %v3877_v38 = vpop.f32.mrb[36].mxu1 }
0x1224   : > { %v3878_v40 = vadd.f32 %v4220_v33, %v3877_v38  ;;  %v4505_v42 = vpop.f32.mrb[37].mxu1 }
0x1225   : > { %v3880_v44 = vpop.f32.mrb[38].mxu1 }
0x1226   : > { %v3884_v45 = vcombine.high %v3878_v40, %v3878_v40  ;;  %v3891_v46 = vrot.slane %v3878_v40, %v5727_v11  ;;  %v4506_v47 = vpop.f32.mrb[39].mxu1 }
0x1228   : > { %v3898_v48 = vrot.slane %v3884_v45, %v5727_v11  ;;  %v3899_v49 = vcombine.high %v3891_v46, %v3891_v46  ;;  %v3905_v50 = vadd.f32 %v3891_v46, %v6042_v2 }
0x122a   : > { %v3900_v51 = vcombine.high %v3898_v48, %v3898_v48  ;;  %v3906_v37 = vadd.f32 %v3899_v49, %v6047_v9  ;;  %v3907_v52 = vadd.f32 %v3898_v48, %v6050_v10  ;;  %v3909_v39 = vpack.c.bf16 %v3905_v50, %v3905_v50 }
0x122c   : > { %v3908_v54 = vadd.f32 %v3900_v51, %v6057_v3  ;;  %v3910_v23 = vpack.c.bf16 %v3906_v37, %v3906_v37  ;;  %v3911_v11 = vpack.c.bf16 %v3907_v52, %v3907_v52  ;;  %3914 = vst.msk [vmem:[%s577_s25] sm:$0x1] %vm3913_vm10, %v3909_v39 }
0x122e   : > { %v3912_v2 = vpack.c.bf16 %v3908_v54, %v3908_v54  ;;  %3915 = vst.msk [vmem:[%s577_s25 + $0x1] sm:$0x1] %vm3913_vm10, %v3910_v23  ;;  %3916 = vst.msk [vmem:[%s577_s25 + $0x2] sm:$0x1] %vm3913_vm10, %v3911_v11 }
0x1230   : > { %3917 = vst.msk [vmem:[%s577_s25 + $0x3] sm:$0x1] %vm3913_vm10, %v3912_v2 }
0x1231   : > { %5129 = shalt.err (!%p5126_p9)
}
0x1232   : > { %s5130_s26 = scalar_lea.hbm %s6089_s28, 64  ;;  %s5134_s16 = scalar_lea.hbm %s6194_s20, 128 }
0x1233   : > { %p5131_p7 = scmp.ne.s32.totalorder %s6089_s28, %s5130_s26  ;;  %p5135_p13 = scmp.lt.u32.totalorder %s6089_s28, %s6194_s20 }
0x1234   : > { %p5136_p1 = scmp.lt.u32.totalorder %s5134_s16, %s5130_s26  ;;  %p5138_p2 = scmp.lt.u32.totalorder %s5130_s26, %s6089_s28 }
0x1235   : > { %p5132_p10 = pnand %p5131_p7, %p6195_p8 }
0x1236   : > { %p5137_p3 = por %p5136_p1, %p5135_p13 }
0x1237   : > { %p5133_p4 = pneg %p5132_p10 }
0x1238   : > { %p5139_p6 = por %p5138_p2, %p5137_p3 }
0x123a   : > { %p5140_p11 = pnand %p5139_p6, %p5133_p4 }
0x123c   : > { %5143 = shalt.err (!%p5140_p11)
}
0x123d   : > { %s5242_s15 = smov 1  }
0x123e   : > { %4553 = dma.vmem_to_hbm [thread:$0]  (%p6195_p8), %s6093_s19, 64, %s6089_s28, %s3919_s27, %s5239_s30, %s5239_s30, %s5242_s15  }
0x123f PF: > { %s3947_s12 = sand.u32 1, %s5194_s21   ;;  %p6196_p12 = scmp.ne.s32.totalorder %s6178_s29, 0 }
0x1240   : > { %p6197_p0 = scmp.ge.s32.totalorder %s5206_s24, 2  ;;  %s3948_s26 = scalar_lea.sflag [#allocation4], %s3947_s12 }
0x1242   : > { %p4594_p5 = pnand %p6197_p0, %p6196_p12 }
0x1244   : > { %5189 = dma.done.wait (!%p4594_p5), %s3948_s26, 64  }
0x1245   : > { %5191 = vsyncadd (!%p4594_p5), %s3948_s26, 4294967232  ;;  %p31_p9 = scmp.ge.s32.totalorder %s5588_s13, 4   ;;  %s6198_s21 = smov %s5198_s22 }
0x1246   : > { %s6199_s22 = smov %s5202_s23  ;;  %s6200_s23 = smov %s5600_s2 }
0x1247   : > { %s6201_s24 = smov %s5588_s13  ;;  %33 = sbr.rel (!%p31_p9) target bundleno = 16 (0x10), region = 157 }
0x124e   :  { %3953 = vsyncpa [#allocation3], 1 }
0x124f   :  { %3955 = vsyncpa [#allocation3 + $0x1], 1 }
0x1250   :  { %3956 = vsyncpa [#allocation6], 1 }
0x1251   :  { %3957 = vsyncpa [#allocation9], 1 }
0x1252   :  { %3958 = vsyncpa [#allocation12], 1 }
0x1253   :  { %3959 = vsyncpa [#allocation15], 1 }
0x1254   :  { %3960 = vsyncpa [#allocation18], 1 }
0x1255   :  { %3961 = vsyncpa [#allocation21], 1 }
0x1256   :  { %3962 = vsyncpa [#allocation4], 1 }
0x1257   :  { %3964 = vsyncpa [#allocation4 + $0x1], 1 }

</bundles_post_ra>
